<compile_context>
chip_gen: v7x
topology: tpu7x:2x2x1
jax: 0.10.0
libtpu: 0.0.40
codegen_flags: <defaults>
</compile_context>

<pallas_src>
import functools

import jax
import jax.numpy as jnp
from jax import lax
from jax.experimental import pallas as pl
from jax.experimental.pallas import tpu as pltpu

BN_EPS = 1e-5
LANE = 128
VMEM_LIMIT = 64 * 1024 * 1024


def _round_up(x, m):
    return ((x + m - 1) // m) * m


def _conv_taps(x_ref, w_ref, *, K, Wp, Mout):
    """K*K accumulated MXU matmuls over row-shifted slices of the flat image.

    x_ref: (1, Mflat, Cin_p) bf16   (halo-padded image, spatial flattened)
    w_ref: (K*K, Cin_p, Cout_p) bf16
    returns (Mout, Cout_p) f32 conv output (Mout = H*Wp; junk cols masked later)
    """
    acc = None
    for kh in range(K):
        for kw in range(K):
            s = kh * Wp + kw                             # static shift
            xs = x_ref[0, s:s + Mout, :]                 # (Mout, Cin_p) bf16
            contrib = jnp.dot(xs, w_ref[kh * K + kw],
                              preferred_element_type=jnp.float32)
            acc = contrib if acc is None else acc + contrib
    return acc


def _stats_kernel(x_ref, w_ref, mask_ref, sum_ref, ssq_ref, *, K, Wp, Mout):
    """Pass 1: per-channel sum / sum-of-squares of the conv output (masked)."""
    conv = _conv_taps(x_ref, w_ref, K=K, Wp=Wp, Mout=Mout)   # (Mout, Cout_p) f32
    conv = conv * mask_ref[...]          # zero the (Wp - W) junk columns per row

    @pl.when(pl.program_id(0) == 0)
    def _():
        sum_ref[...] = jnp.zeros_like(sum_ref)
        ssq_ref[...] = jnp.zeros_like(ssq_ref)

    sum_ref[...] += jnp.sum(conv, axis=0, keepdims=True)
    ssq_ref[...] += jnp.sum(conv * conv, axis=0, keepdims=True)


def _apply_kernel(x_ref, w_ref, scale_ref, bias_ref, alpha_ref, out_ref,
                  *, K, Wp, Mout):
    """Pass 2: recompute conv tile, apply folded BN affine + PReLU."""
    conv = _conv_taps(x_ref, w_ref, K=K, Wp=Wp, Mout=Mout)   # (Mout, Cout_p) f32
    # Hoist the small per-channel params once per tile.
    scale = scale_ref[...]
    bias = bias_ref[...]
    alpha = alpha_ref[...]
    y = conv * scale + bias
    out_ref[0, :, :] = jnp.where(y >= 0.0, y, alpha * y)


@functools.partial(jax.jit, static_argnames=("kernel_size", "padding"))
def conv_block_forward(x, weight, gamma, beta, prelu_alpha,
                       kernel_size=3, padding=1):
    """x: (N, Cin, H, W) NCHW; weight: (Cout, Cin, K, K).  Returns NCHW f32."""
    N, Cin, H, W = x.shape
    Cout = weight.shape[0]
    K = kernel_size
    if K % 2 != 1 or padding != (K - 1) // 2:
        raise NotImplementedError("only odd K, stride 1, 'same' padding supported")
    # TODO(synk): strided conv / LeakyReLU (use_disc) / use_bn=False / use_act=False
    # ConvBlock variants are not implemented; this is the default SRGAN config.

    Hp, Wp = H + 2 * padding, W + 2 * padding
    Cin_p = _round_up(Cin, 8)
    Cout_p = _round_up(Cout, LANE)                 # lane-dense output/stores
    Mout = H * Wp                                  # per-image output rows (incl. junk cols)
    Mflat = _round_up(Mout + (K - 1) * (Wp + 1), 8)

    # NCHW -> NHWC, halo + channel pad, flatten spatial, cast MXU operand to bf16.
    xn = jnp.transpose(x, (0, 2, 3, 1)).astype(jnp.float32)      # (N, H, W, Cin)
    xpad = jnp.pad(xn, ((0, 0), (padding, padding), (padding, padding),
                        (0, Cin_p - Cin)))                        # (N, Hp, Wp, Cin_p)
    xflat = xpad.reshape(N, Hp * Wp, Cin_p)
    xflat = jnp.pad(xflat, ((0, 0), (0, Mflat - Hp * Wp), (0, 0))).astype(jnp.bfloat16)

    # (Cout, Cin, K, K) -> (K*K, Cin_p, Cout_p), zero padded, bf16.
    wt = jnp.transpose(weight.astype(jnp.float32), (2, 3, 1, 0)).reshape(K * K, Cin, Cout)
    wt = jnp.pad(wt, ((0, 0), (0, Cin_p - Cin), (0, Cout_p - Cout))).astype(jnp.bfloat16)

    # Mask of valid output columns (w < W) within each Wp-wide flattened row.
    col = jnp.arange(Mout, dtype=jnp.int32) % Wp
    mask = (col < W).astype(jnp.float32).reshape(Mout, 1)

    # ---------------- Pass 1: global BN statistics (sum / sumsq) ----------------
    stats_fn = functools.partial(_stats_kernel, K=K, Wp=Wp, Mout=Mout)
    sums, ssqs = pl.pallas_call(
        stats_fn,
        grid=(N,),
        in_specs=[
            pl.BlockSpec((1, Mflat, Cin_p), lambda n: (n, 0, 0)),
            pl.BlockSpec((K * K, Cin_p, Cout_p), lambda n: (0, 0, 0)),
            pl.BlockSpec((Mout, 1), lambda n: (0, 0)),
        ],
        out_specs=(
            pl.BlockSpec((1, Cout_p), lambda n: (0, 0)),
            pl.BlockSpec((1, Cout_p), lambda n: (0, 0)),
        ),
        out_shape=(
            jax.ShapeDtypeStruct((1, Cout_p), jnp.float32),
            jax.ShapeDtypeStruct((1, Cout_p), jnp.float32),
        ),
        compiler_params=pltpu.CompilerParams(
            dimension_semantics=("arbitrary",),       # resident accumulator
            vmem_limit_bytes=VMEM_LIMIT),
    )(xflat, wt, mask)

    # Fold batch statistics + gamma/beta into a per-channel affine (f32, tiny).
    count = jnp.float32(N * H * W)
    mean = sums[0] / count
    var = jnp.maximum(ssqs[0] / count - mean * mean, 0.0)   # biased (train-mode BN)
    inv_std = lax.rsqrt(var + BN_EPS)
    gamma_p = jnp.pad(gamma.astype(jnp.float32), (0, Cout_p - Cout))
    beta_p = jnp.pad(beta.astype(jnp.float32), (0, Cout_p - Cout))
    alpha_p = jnp.pad(prelu_alpha.astype(jnp.float32), (0, Cout_p - Cout))
    scale = (gamma_p * inv_std).reshape(1, Cout_p)
    bias = (beta_p - mean * gamma_p * inv_std).reshape(1, Cout_p)
    alpha2 = alpha_p.reshape(1, Cout_p)

    # ---------------- Pass 2: conv recompute + normalize + PReLU ----------------
    apply_fn = functools.partial(_apply_kernel, K=K, Wp=Wp, Mout=Mout)
    out = pl.pallas_call(
        apply_fn,
        grid=(N,),
        in_specs=[
            pl.BlockSpec((1, Mflat, Cin_p), lambda n: (n, 0, 0)),
            pl.BlockSpec((K * K, Cin_p, Cout_p), lambda n: (0, 0, 0)),
            pl.BlockSpec((1, Cout_p), lambda n: (0, 0)),
            pl.BlockSpec((1, Cout_p), lambda n: (0, 0)),
            pl.BlockSpec((1, Cout_p), lambda n: (0, 0)),
        ],
        out_specs=pl.BlockSpec((1, Mout, Cout_p), lambda n: (n, 0, 0)),
        out_shape=jax.ShapeDtypeStruct((N, Mout, Cout_p), jnp.float32),
        compiler_params=pltpu.CompilerParams(
            dimension_semantics=("parallel",),        # independent per image -> megacore
            vmem_limit_bytes=VMEM_LIMIT),
    )(xflat, wt, scale, bias, alpha2)

    # (N, H*Wp, Cout_p) -> (N, H, W, Cout) -> NCHW.  (Consumers that accept
    # channels-last could take the NHWC slice directly and skip the transpose.)
    out = out.reshape(N, H, Wp, Cout_p)[:, :, :W, :Cout]
    return jnp.transpose(out, (0, 3, 1, 2))


def _reference_forward(x, weight, gamma, beta, prelu_alpha, padding=1):
    """Pure-JAX reference.  Operands are quantized to bf16 to mirror the kernel's
    MXU input cast; all accumulation and BN math stays in f32 (like the kernel)."""
    xq = x.astype(jnp.bfloat16).astype(jnp.float32)
    wq = weight.astype(jnp.bfloat16).astype(jnp.float32)
    conv = lax.conv_general_dilated(
        xq, wq, window_strides=(1, 1), padding=[(padding, padding)] * 2,
        dimension_numbers=("NCHW", "OIHW", "NCHW"),
        precision=lax.Precision.HIGHEST)
    mean = jnp.mean(conv, axis=(0, 2, 3), keepdims=True)
    var = jnp.mean((conv - mean) ** 2, axis=(0, 2, 3), keepdims=True)
    y = (conv - mean) * lax.rsqrt(var + BN_EPS)
    y = y * gamma.reshape(1, -1, 1, 1) + beta.reshape(1, -1, 1, 1)
    a = prelu_alpha.reshape(1, -1, 1, 1)
    return jnp.where(y >= 0, y, a * y)


if __name__ == "__main__":
    # Small shapes consistent with the module: batch=2, Cin=4, Cout=8, 16x16,
    # conv kwargs: kernel_size=3, stride=1, padding=1.
    N, Cin, Cout, H, W, K = 2, 4, 8, 16, 16, 3

    key = jax.random.PRNGKey(0)
    kx, kw = jax.random.split(key)
    x = jax.random.normal(kx, (N, Cin, H, W), dtype=jnp.float32)

    # Deterministic parameter init (mirrors PyTorch defaults):
    #   conv weight ~ U(-b, b), b = 1/sqrt(Cin*K*K); BN gamma=1, beta=0;
    #   PReLU slope = 0.25 per channel.
    bound = 1.0 / jnp.sqrt(jnp.float32(Cin * K * K))
    weight = jax.random.uniform(kw, (Cout, Cin, K, K),
                                minval=-bound, maxval=bound, dtype=jnp.float32)
    gamma = jnp.ones((Cout,), dtype=jnp.float32)
    beta = jnp.zeros((Cout,), dtype=jnp.float32)
    prelu_alpha = jnp.full((Cout,), 0.25, dtype=jnp.float32)

    out = conv_block_forward(x, weight, gamma, beta, prelu_alpha,
                             kernel_size=K, padding=1)
    out = jax.block_until_ready(out)

    ref = _reference_forward(x, weight, gamma, beta, prelu_alpha, padding=1)
    assert out.shape == (N, Cout, H, W)
    max_err = float(jnp.max(jnp.abs(out - ref)))
    assert jnp.allclose(out, ref, atol=2e-3, rtol=2e-3), \
        f"mismatch vs reference, max abs err {max_err}"

    print("KERNEL_OK")
</pallas_src>

<mosaic_0001>
module attributes {stable_mosaic.version = 11 : i64} {
  func.func @_stats_kernel(%arg0: i32, %arg1: memref<1x328x8xbf16, #tpu.memory_space<vmem>>, %arg2: memref<9x8x128xbf16, #tpu.memory_space<vmem>>, %arg3: memref<288x1xf32, #tpu.memory_space<vmem>>, %arg4: memref<1x128xf32, #tpu.memory_space<vmem>>, %arg5: memref<1x128xf32, #tpu.memory_space<vmem>>) attributes {dimension_semantics = [#tpu.dimension_semantics<arbitrary>], iteration_bounds = array<i64: 2>, scalar_prefetch = 0 : i64, scratch_operands = 0 : i64, tpu.core_type = #tpu.core_type<tc>, window_params = [{transform_indices = @transform_0, window_bounds = array<i64: 1, 328, 8>}, {pipeline_mode = #tpu.pipeline_mode<synchronous>, transform_indices = @transform_1, window_bounds = array<i64: 9, 8, 128>}, {pipeline_mode = #tpu.pipeline_mode<synchronous>, transform_indices = @transform_2, window_bounds = array<i64: 288, 1>}, {pipeline_mode = #tpu.pipeline_mode<synchronous>, transform_indices = @transform_3, window_bounds = array<i64: 1, 128>}, {pipeline_mode = #tpu.pipeline_mode<synchronous>, transform_indices = @transform_4, window_bounds = array<i64: 1, 128>}]} {
    %c0 = arith.constant 0 : index
    %c0_0 = arith.constant 0 : index
    %c0_1 = arith.constant 0 : index
    %0 = vector.load %arg1[%c0, %c0_0, %c0_1] : memref<1x328x8xbf16, #tpu.memory_space<vmem>>, vector<1x288x8xbf16>
    %1 = vector.shape_cast %0 : vector<1x288x8xbf16> to vector<288x8xbf16>
    %c0_2 = arith.constant 0 : index
    %c0_3 = arith.constant 0 : index
    %c0_4 = arith.constant 0 : index
    %2 = vector.load %arg2[%c0_2, %c0_3, %c0_4] : memref<9x8x128xbf16, #tpu.memory_space<vmem>>, vector<1x8x128xbf16>
    %3 = vector.shape_cast %2 : vector<1x8x128xbf16> to vector<8x128xbf16>
    %cst = arith.constant dense<0.000000e+00> : vector<288x128xf32>
    %4 = tpu.matmul %1, %3, %cst {dimension_numbers = #tpu.dot_dimension_numbers<[1], [0], [0], [1], [0, 0, 1, 1], [], []>} : vector<288x8xbf16>, vector<8x128xbf16>, vector<288x128xf32> -> vector<288x128xf32>
    %c0_5 = arith.constant 0 : index
    %c1 = arith.constant 1 : index
    %c0_6 = arith.constant 0 : index
    %5 = vector.load %arg1[%c0_5, %c1, %c0_6] : memref<1x328x8xbf16, #tpu.memory_space<vmem>>, vector<1x288x8xbf16>
    %6 = vector.shape_cast %5 : vector<1x288x8xbf16> to vector<288x8xbf16>
    %c1_7 = arith.constant 1 : index
    %c0_8 = arith.constant 0 : index
    %c0_9 = arith.constant 0 : index
    %7 = vector.load %arg2[%c1_7, %c0_8, %c0_9] : memref<9x8x128xbf16, #tpu.memory_space<vmem>>, vector<1x8x128xbf16>
    %8 = vector.shape_cast %7 : vector<1x8x128xbf16> to vector<8x128xbf16>
    %cst_10 = arith.constant dense<0.000000e+00> : vector<288x128xf32>
    %9 = tpu.matmul %6, %8, %cst_10 {dimension_numbers = #tpu.dot_dimension_numbers<[1], [0], [0], [1], [0, 0, 1, 1], [], []>} : vector<288x8xbf16>, vector<8x128xbf16>, vector<288x128xf32> -> vector<288x128xf32>
    %10 = arith.addf %4, %9 : vector<288x128xf32>
    %c0_11 = arith.constant 0 : index
    %c2 = arith.constant 2 : index
    %c0_12 = arith.constant 0 : index
    %11 = vector.load %arg1[%c0_11, %c2, %c0_12] : memref<1x328x8xbf16, #tpu.memory_space<vmem>>, vector<1x288x8xbf16>
    %12 = vector.shape_cast %11 : vector<1x288x8xbf16> to vector<288x8xbf16>
    %c2_13 = arith.constant 2 : index
    %c0_14 = arith.constant 0 : index
    %c0_15 = arith.constant 0 : index
    %13 = vector.load %arg2[%c2_13, %c0_14, %c0_15] : memref<9x8x128xbf16, #tpu.memory_space<vmem>>, vector<1x8x128xbf16>
    %14 = vector.shape_cast %13 : vector<1x8x128xbf16> to vector<8x128xbf16>
    %cst_16 = arith.constant dense<0.000000e+00> : vector<288x128xf32>
    %15 = tpu.matmul %12, %14, %cst_16 {dimension_numbers = #tpu.dot_dimension_numbers<[1], [0], [0], [1], [0, 0, 1, 1], [], []>} : vector<288x8xbf16>, vector<8x128xbf16>, vector<288x128xf32> -> vector<288x128xf32>
    %16 = arith.addf %10, %15 : vector<288x128xf32>
    %c0_17 = arith.constant 0 : index
    %c18 = arith.constant 18 : index
    %c0_18 = arith.constant 0 : index
    %17 = vector.load %arg1[%c0_17, %c18, %c0_18] : memref<1x328x8xbf16, #tpu.memory_space<vmem>>, vector<1x288x8xbf16>
    %18 = vector.shape_cast %17 : vector<1x288x8xbf16> to vector<288x8xbf16>
    %c3 = arith.constant 3 : index
    %c0_19 = arith.constant 0 : index
    %c0_20 = arith.constant 0 : index
    %19 = vector.load %arg2[%c3, %c0_19, %c0_20] : memref<9x8x128xbf16, #tpu.memory_space<vmem>>, vector<1x8x128xbf16>
    %20 = vector.shape_cast %19 : vector<1x8x128xbf16> to vector<8x128xbf16>
    %cst_21 = arith.constant dense<0.000000e+00> : vector<288x128xf32>
    %21 = tpu.matmul %18, %20, %cst_21 {dimension_numbers = #tpu.dot_dimension_numbers<[1], [0], [0], [1], [0, 0, 1, 1], [], []>} : vector<288x8xbf16>, vector<8x128xbf16>, vector<288x128xf32> -> vector<288x128xf32>
    %22 = arith.addf %16, %21 : vector<288x128xf32>
    %c0_22 = arith.constant 0 : index
    %c19 = arith.constant 19 : index
    %c0_23 = arith.constant 0 : index
    %23 = vector.load %arg1[%c0_22, %c19, %c0_23] : memref<1x328x8xbf16, #tpu.memory_space<vmem>>, vector<1x288x8xbf16>
    %24 = vector.shape_cast %23 : vector<1x288x8xbf16> to vector<288x8xbf16>
    %c4 = arith.constant 4 : index
    %c0_24 = arith.constant 0 : index
    %c0_25 = arith.constant 0 : index
    %25 = vector.load %arg2[%c4, %c0_24, %c0_25] : memref<9x8x128xbf16, #tpu.memory_space<vmem>>, vector<1x8x128xbf16>
    %26 = vector.shape_cast %25 : vector<1x8x128xbf16> to vector<8x128xbf16>
    %cst_26 = arith.constant dense<0.000000e+00> : vector<288x128xf32>
    %27 = tpu.matmul %24, %26, %cst_26 {dimension_numbers = #tpu.dot_dimension_numbers<[1], [0], [0], [1], [0, 0, 1, 1], [], []>} : vector<288x8xbf16>, vector<8x128xbf16>, vector<288x128xf32> -> vector<288x128xf32>
    %28 = arith.addf %22, %27 : vector<288x128xf32>
    %c0_27 = arith.constant 0 : index
    %c20 = arith.constant 20 : index
    %c0_28 = arith.constant 0 : index
    %29 = vector.load %arg1[%c0_27, %c20, %c0_28] : memref<1x328x8xbf16, #tpu.memory_space<vmem>>, vector<1x288x8xbf16>
    %30 = vector.shape_cast %29 : vector<1x288x8xbf16> to vector<288x8xbf16>
    %c5 = arith.constant 5 : index
    %c0_29 = arith.constant 0 : index
    %c0_30 = arith.constant 0 : index
    %31 = vector.load %arg2[%c5, %c0_29, %c0_30] : memref<9x8x128xbf16, #tpu.memory_space<vmem>>, vector<1x8x128xbf16>
    %32 = vector.shape_cast %31 : vector<1x8x128xbf16> to vector<8x128xbf16>
    %cst_31 = arith.constant dense<0.000000e+00> : vector<288x128xf32>
    %33 = tpu.matmul %30, %32, %cst_31 {dimension_numbers = #tpu.dot_dimension_numbers<[1], [0], [0], [1], [0, 0, 1, 1], [], []>} : vector<288x8xbf16>, vector<8x128xbf16>, vector<288x128xf32> -> vector<288x128xf32>
    %34 = arith.addf %28, %33 : vector<288x128xf32>
    %c0_32 = arith.constant 0 : index
    %c36 = arith.constant 36 : index
    %c0_33 = arith.constant 0 : index
    %35 = vector.load %arg1[%c0_32, %c36, %c0_33] : memref<1x328x8xbf16, #tpu.memory_space<vmem>>, vector<1x288x8xbf16>
    %36 = vector.shape_cast %35 : vector<1x288x8xbf16> to vector<288x8xbf16>
    %c6 = arith.constant 6 : index
    %c0_34 = arith.constant 0 : index
    %c0_35 = arith.constant 0 : index
    %37 = vector.load %arg2[%c6, %c0_34, %c0_35] : memref<9x8x128xbf16, #tpu.memory_space<vmem>>, vector<1x8x128xbf16>
    %38 = vector.shape_cast %37 : vector<1x8x128xbf16> to vector<8x128xbf16>
    %cst_36 = arith.constant dense<0.000000e+00> : vector<288x128xf32>
    %39 = tpu.matmul %36, %38, %cst_36 {dimension_numbers = #tpu.dot_dimension_numbers<[1], [0], [0], [1], [0, 0, 1, 1], [], []>} : vector<288x8xbf16>, vector<8x128xbf16>, vector<288x128xf32> -> vector<288x128xf32>
    %40 = arith.addf %34, %39 : vector<288x128xf32>
    %c0_37 = arith.constant 0 : index
    %c37 = arith.constant 37 : index
    %c0_38 = arith.constant 0 : index
    %41 = vector.load %arg1[%c0_37, %c37, %c0_38] : memref<1x328x8xbf16, #tpu.memory_space<vmem>>, vector<1x288x8xbf16>
    %42 = vector.shape_cast %41 : vector<1x288x8xbf16> to vector<288x8xbf16>
    %c7 = arith.constant 7 : index
    %c0_39 = arith.constant 0 : index
    %c0_40 = arith.constant 0 : index
    %43 = vector.load %arg2[%c7, %c0_39, %c0_40] : memref<9x8x128xbf16, #tpu.memory_space<vmem>>, vector<1x8x128xbf16>
    %44 = vector.shape_cast %43 : vector<1x8x128xbf16> to vector<8x128xbf16>
    %cst_41 = arith.constant dense<0.000000e+00> : vector<288x128xf32>
    %45 = tpu.matmul %42, %44, %cst_41 {dimension_numbers = #tpu.dot_dimension_numbers<[1], [0], [0], [1], [0, 0, 1, 1], [], []>} : vector<288x8xbf16>, vector<8x128xbf16>, vector<288x128xf32> -> vector<288x128xf32>
    %46 = arith.addf %40, %45 : vector<288x128xf32>
    %c0_42 = arith.constant 0 : index
    %c38 = arith.constant 38 : index
    %c0_43 = arith.constant 0 : index
    %47 = vector.load %arg1[%c0_42, %c38, %c0_43] : memref<1x328x8xbf16, #tpu.memory_space<vmem>>, vector<1x288x8xbf16>
    %48 = vector.shape_cast %47 : vector<1x288x8xbf16> to vector<288x8xbf16>
    %c8 = arith.constant 8 : index
    %c0_44 = arith.constant 0 : index
    %c0_45 = arith.constant 0 : index
    %49 = vector.load %arg2[%c8, %c0_44, %c0_45] : memref<9x8x128xbf16, #tpu.memory_space<vmem>>, vector<1x8x128xbf16>
    %50 = vector.shape_cast %49 : vector<1x8x128xbf16> to vector<8x128xbf16>
    %cst_46 = arith.constant dense<0.000000e+00> : vector<288x128xf32>
    %51 = tpu.matmul %48, %50, %cst_46 {dimension_numbers = #tpu.dot_dimension_numbers<[1], [0], [0], [1], [0, 0, 1, 1], [], []>} : vector<288x8xbf16>, vector<8x128xbf16>, vector<288x128xf32> -> vector<288x128xf32>
    %52 = arith.addf %46, %51 : vector<288x128xf32>
    %c0_47 = arith.constant 0 : index
    %c0_48 = arith.constant 0 : index
    %53 = vector.load %arg3[%c0_47, %c0_48] : memref<288x1xf32, #tpu.memory_space<vmem>>, vector<288x1xf32>
    %54 = vector.broadcast %53 : vector<288x1xf32> to vector<288x128xf32>
    %55 = arith.mulf %52, %54 : vector<288x128xf32>
    %c0_i32 = arith.constant 0 : i32
    %56 = arith.cmpi eq, %arg0, %c0_i32 : i32
    %57 = arith.extui %56 : i1 to i32
    %c0_i32_49 = arith.constant 0 : i32
    %58 = arith.cmpi ne, %57, %c0_i32_49 : i32
    scf.if %58 {
      %cst_60 = arith.constant 0.000000e+00 : f32
      %70 = vector.broadcast %cst_60 : f32 to vector<1x128xf32>
      %c0_61 = arith.constant 0 : index
      %c0_62 = arith.constant 0 : index
      %71 = vector.load %arg4[%c0_61, %c0_62] : memref<1x128xf32, #tpu.memory_space<vmem>>, vector<1x128xf32>
      tpu.vector_store %arg4[%c0_61, %c0_62], %70 {strides = array<i32>} : memref<1x128xf32, #tpu.memory_space<vmem>>, vector<1x128xf32>,
      %cst_63 = arith.constant 0.000000e+00 : f32
      %72 = vector.broadcast %cst_63 : f32 to vector<1x128xf32>
      %c0_64 = arith.constant 0 : index
      %c0_65 = arith.constant 0 : index
      %73 = vector.load %arg5[%c0_64, %c0_65] : memref<1x128xf32, #tpu.memory_space<vmem>>, vector<1x128xf32>
      tpu.vector_store %arg5[%c0_64, %c0_65], %72 {strides = array<i32>} : memref<1x128xf32, #tpu.memory_space<vmem>>, vector<1x128xf32>,
    } else {
    }
    %c0_50 = arith.constant 0 : index
    %c0_51 = arith.constant 0 : index
    %59 = vector.load %arg4[%c0_50, %c0_51] : memref<1x128xf32, #tpu.memory_space<vmem>>, vector<1x128xf32>
    %cst_52 = arith.constant dense<0.000000e+00> : vector<128xf32>
    %60 = vector.multi_reduction <add>, %55, %cst_52 [0] : vector<288x128xf32> to vector<128xf32>
    %61 = vector.shape_cast %60 : vector<128xf32> to vector<1x128xf32>
    %62 = arith.addf %59, %61 : vector<1x128xf32>
    %c0_53 = arith.constant 0 : index
    %c0_54 = arith.constant 0 : index
    %63 = vector.load %arg4[%c0_53, %c0_54] : memref<1x128xf32, #tpu.memory_space<vmem>>, vector<1x128xf32>
    tpu.vector_store %arg4[%c0_53, %c0_54], %62 {strides = array<i32>} : memref<1x128xf32, #tpu.memory_space<vmem>>, vector<1x128xf32>,
    %c0_55 = arith.constant 0 : index
    %c0_56 = arith.constant 0 : index
    %64 = vector.load %arg5[%c0_55, %c0_56] : memref<1x128xf32, #tpu.memory_space<vmem>>, vector<1x128xf32>
    %65 = arith.mulf %55, %55 : vector<288x128xf32>
    %cst_57 = arith.constant dense<0.000000e+00> : vector<128xf32>
    %66 = vector.multi_reduction <add>, %65, %cst_57 [0] : vector<288x128xf32> to vector<128xf32>
    %67 = vector.shape_cast %66 : vector<128xf32> to vector<1x128xf32>
    %68 = arith.addf %64, %67 : vector<1x128xf32>
    %c0_58 = arith.constant 0 : index
    %c0_59 = arith.constant 0 : index
    %69 = vector.load %arg5[%c0_58, %c0_59] : memref<1x128xf32, #tpu.memory_space<vmem>>, vector<1x128xf32>
    tpu.vector_store %arg5[%c0_58, %c0_59], %68 {strides = array<i32>} : memref<1x128xf32, #tpu.memory_space<vmem>>, vector<1x128xf32>,
    return
  }
  func.func @transform_0(%arg0: i32) -> (i32, i32, i32) {
    %c0_i32 = arith.constant 0 : i32
    %c0_i32_0 = arith.constant 0 : i32
    %c0_i32_1 = arith.constant 0 : i32
    return %arg0, %c0_i32, %c0_i32_0 : i32, i32, i32
  }
  func.func @transform_1(%arg0: i32) -> (i32, i32, i32) {
    %c0_i32 = arith.constant 0 : i32
    %c0_i32_0 = arith.constant 0 : i32
    %c0_i32_1 = arith.constant 0 : i32
    %c0_i32_2 = arith.constant 0 : i32
    return %c0_i32, %c0_i32_0, %c0_i32_1 : i32, i32, i32
  }
  func.func @transform_2(%arg0: i32) -> (i32, i32) {
    %c0_i32 = arith.constant 0 : i32
    %c0_i32_0 = arith.constant 0 : i32
    %c0_i32_1 = arith.constant 0 : i32
    return %c0_i32, %c0_i32_0 : i32, i32
  }
  func.func @transform_3(%arg0: i32) -> (i32, i32) {
    %c0_i32 = arith.constant 0 : i32
    %c0_i32_0 = arith.constant 0 : i32
    %c0_i32_1 = arith.constant 0 : i32
    return %c0_i32, %c0_i32_0 : i32, i32
  }
  func.func @transform_4(%arg0: i32) -> (i32, i32) {
    %c0_i32 = arith.constant 0 : i32
    %c0_i32_0 = arith.constant 0 : i32
    %c0_i32_1 = arith.constant 0 : i32
    return %c0_i32, %c0_i32_0 : i32, i32
  }
}

module attributes {stable_mosaic.version = 11 : i64} {
  func.func @_apply_kernel(%arg0: i32, %arg1: memref<1x328x8xbf16, #tpu.memory_space<vmem>>, %arg2: memref<9x8x128xbf16, #tpu.memory_space<vmem>>, %arg3: memref<1x128xf32, #tpu.memory_space<vmem>>, %arg4: memref<1x128xf32, #tpu.memory_space<vmem>>, %arg5: memref<1x128xf32, #tpu.memory_space<vmem>>, %arg6: memref<1x288x128xf32, #tpu.memory_space<vmem>>) attributes {dimension_semantics = [#tpu.dimension_semantics<parallel>], iteration_bounds = array<i64: 2>, scalar_prefetch = 0 : i64, scratch_operands = 0 : i64, tpu.core_type = #tpu.core_type<tc>, window_params = [{transform_indices = @transform_0, window_bounds = array<i64: 1, 328, 8>}, {pipeline_mode = #tpu.pipeline_mode<synchronous>, transform_indices = @transform_1, window_bounds = array<i64: 9, 8, 128>}, {pipeline_mode = #tpu.pipeline_mode<synchronous>, transform_indices = @transform_2, window_bounds = array<i64: 1, 128>}, {pipeline_mode = #tpu.pipeline_mode<synchronous>, transform_indices = @transform_3, window_bounds = array<i64: 1, 128>}, {pipeline_mode = #tpu.pipeline_mode<synchronous>, transform_indices = @transform_4, window_bounds = array<i64: 1, 128>}, {transform_indices = @transform_5, window_bounds = array<i64: 1, 288, 128>}]} {
    %c0 = arith.constant 0 : index
    %c0_0 = arith.constant 0 : index
    %c0_1 = arith.constant 0 : index
    %0 = vector.load %arg1[%c0, %c0_0, %c0_1] : memref<1x328x8xbf16, #tpu.memory_space<vmem>>, vector<1x288x8xbf16>
    %1 = vector.shape_cast %0 : vector<1x288x8xbf16> to vector<288x8xbf16>
    %c0_2 = arith.constant 0 : index
    %c0_3 = arith.constant 0 : index
    %c0_4 = arith.constant 0 : index
    %2 = vector.load %arg2[%c0_2, %c0_3, %c0_4] : memref<9x8x128xbf16, #tpu.memory_space<vmem>>, vector<1x8x128xbf16>
    %3 = vector.shape_cast %2 : vector<1x8x128xbf16> to vector<8x128xbf16>
    %cst = arith.constant dense<0.000000e+00> : vector<288x128xf32>
    %4 = tpu.matmul %1, %3, %cst {dimension_numbers = #tpu.dot_dimension_numbers<[1], [0], [0], [1], [0, 0, 1, 1], [], []>} : vector<288x8xbf16>, vector<8x128xbf16>, vector<288x128xf32> -> vector<288x128xf32>
    %c0_5 = arith.constant 0 : index
    %c1 = arith.constant 1 : index
    %c0_6 = arith.constant 0 : index
    %5 = vector.load %arg1[%c0_5, %c1, %c0_6] : memref<1x328x8xbf16, #tpu.memory_space<vmem>>, vector<1x288x8xbf16>
    %6 = vector.shape_cast %5 : vector<1x288x8xbf16> to vector<288x8xbf16>
    %c1_7 = arith.constant 1 : index
    %c0_8 = arith.constant 0 : index
    %c0_9 = arith.constant 0 : index
    %7 = vector.load %arg2[%c1_7, %c0_8, %c0_9] : memref<9x8x128xbf16, #tpu.memory_space<vmem>>, vector<1x8x128xbf16>
    %8 = vector.shape_cast %7 : vector<1x8x128xbf16> to vector<8x128xbf16>
    %cst_10 = arith.constant dense<0.000000e+00> : vector<288x128xf32>
    %9 = tpu.matmul %6, %8, %cst_10 {dimension_numbers = #tpu.dot_dimension_numbers<[1], [0], [0], [1], [0, 0, 1, 1], [], []>} : vector<288x8xbf16>, vector<8x128xbf16>, vector<288x128xf32> -> vector<288x128xf32>
    %10 = arith.addf %4, %9 : vector<288x128xf32>
    %c0_11 = arith.constant 0 : index
    %c2 = arith.constant 2 : index
    %c0_12 = arith.constant 0 : index
    %11 = vector.load %arg1[%c0_11, %c2, %c0_12] : memref<1x328x8xbf16, #tpu.memory_space<vmem>>, vector<1x288x8xbf16>
    %12 = vector.shape_cast %11 : vector<1x288x8xbf16> to vector<288x8xbf16>
    %c2_13 = arith.constant 2 : index
    %c0_14 = arith.constant 0 : index
    %c0_15 = arith.constant 0 : index
    %13 = vector.load %arg2[%c2_13, %c0_14, %c0_15] : memref<9x8x128xbf16, #tpu.memory_space<vmem>>, vector<1x8x128xbf16>
    %14 = vector.shape_cast %13 : vector<1x8x128xbf16> to vector<8x128xbf16>
    %cst_16 = arith.constant dense<0.000000e+00> : vector<288x128xf32>
    %15 = tpu.matmul %12, %14, %cst_16 {dimension_numbers = #tpu.dot_dimension_numbers<[1], [0], [0], [1], [0, 0, 1, 1], [], []>} : vector<288x8xbf16>, vector<8x128xbf16>, vector<288x128xf32> -> vector<288x128xf32>
    %16 = arith.addf %10, %15 : vector<288x128xf32>
    %c0_17 = arith.constant 0 : index
    %c18 = arith.constant 18 : index
    %c0_18 = arith.constant 0 : index
    %17 = vector.load %arg1[%c0_17, %c18, %c0_18] : memref<1x328x8xbf16, #tpu.memory_space<vmem>>, vector<1x288x8xbf16>
    %18 = vector.shape_cast %17 : vector<1x288x8xbf16> to vector<288x8xbf16>
    %c3 = arith.constant 3 : index
    %c0_19 = arith.constant 0 : index
    %c0_20 = arith.constant 0 : index
    %19 = vector.load %arg2[%c3, %c0_19, %c0_20] : memref<9x8x128xbf16, #tpu.memory_space<vmem>>, vector<1x8x128xbf16>
    %20 = vector.shape_cast %19 : vector<1x8x128xbf16> to vector<8x128xbf16>
    %cst_21 = arith.constant dense<0.000000e+00> : vector<288x128xf32>
    %21 = tpu.matmul %18, %20, %cst_21 {dimension_numbers = #tpu.dot_dimension_numbers<[1], [0], [0], [1], [0, 0, 1, 1], [], []>} : vector<288x8xbf16>, vector<8x128xbf16>, vector<288x128xf32> -> vector<288x128xf32>
    %22 = arith.addf %16, %21 : vector<288x128xf32>
    %c0_22 = arith.constant 0 : index
    %c19 = arith.constant 19 : index
    %c0_23 = arith.constant 0 : index
    %23 = vector.load %arg1[%c0_22, %c19, %c0_23] : memref<1x328x8xbf16, #tpu.memory_space<vmem>>, vector<1x288x8xbf16>
    %24 = vector.shape_cast %23 : vector<1x288x8xbf16> to vector<288x8xbf16>
    %c4 = arith.constant 4 : index
    %c0_24 = arith.constant 0 : index
    %c0_25 = arith.constant 0 : index
    %25 = vector.load %arg2[%c4, %c0_24, %c0_25] : memref<9x8x128xbf16, #tpu.memory_space<vmem>>, vector<1x8x128xbf16>
    %26 = vector.shape_cast %25 : vector<1x8x128xbf16> to vector<8x128xbf16>
    %cst_26 = arith.constant dense<0.000000e+00> : vector<288x128xf32>
    %27 = tpu.matmul %24, %26, %cst_26 {dimension_numbers = #tpu.dot_dimension_numbers<[1], [0], [0], [1], [0, 0, 1, 1], [], []>} : vector<288x8xbf16>, vector<8x128xbf16>, vector<288x128xf32> -> vector<288x128xf32>
    %28 = arith.addf %22, %27 : vector<288x128xf32>
    %c0_27 = arith.constant 0 : index
    %c20 = arith.constant 20 : index
    %c0_28 = arith.constant 0 : index
    %29 = vector.load %arg1[%c0_27, %c20, %c0_28] : memref<1x328x8xbf16, #tpu.memory_space<vmem>>, vector<1x288x8xbf16>
    %30 = vector.shape_cast %29 : vector<1x288x8xbf16> to vector<288x8xbf16>
    %c5 = arith.constant 5 : index
    %c0_29 = arith.constant 0 : index
    %c0_30 = arith.constant 0 : index
    %31 = vector.load %arg2[%c5, %c0_29, %c0_30] : memref<9x8x128xbf16, #tpu.memory_space<vmem>>, vector<1x8x128xbf16>
    %32 = vector.shape_cast %31 : vector<1x8x128xbf16> to vector<8x128xbf16>
    %cst_31 = arith.constant dense<0.000000e+00> : vector<288x128xf32>
    %33 = tpu.matmul %30, %32, %cst_31 {dimension_numbers = #tpu.dot_dimension_numbers<[1], [0], [0], [1], [0, 0, 1, 1], [], []>} : vector<288x8xbf16>, vector<8x128xbf16>, vector<288x128xf32> -> vector<288x128xf32>
    %34 = arith.addf %28, %33 : vector<288x128xf32>
    %c0_32 = arith.constant 0 : index
    %c36 = arith.constant 36 : index
    %c0_33 = arith.constant 0 : index
    %35 = vector.load %arg1[%c0_32, %c36, %c0_33] : memref<1x328x8xbf16, #tpu.memory_space<vmem>>, vector<1x288x8xbf16>
    %36 = vector.shape_cast %35 : vector<1x288x8xbf16> to vector<288x8xbf16>
    %c6 = arith.constant 6 : index
    %c0_34 = arith.constant 0 : index
    %c0_35 = arith.constant 0 : index
    %37 = vector.load %arg2[%c6, %c0_34, %c0_35] : memref<9x8x128xbf16, #tpu.memory_space<vmem>>, vector<1x8x128xbf16>
    %38 = vector.shape_cast %37 : vector<1x8x128xbf16> to vector<8x128xbf16>
    %cst_36 = arith.constant dense<0.000000e+00> : vector<288x128xf32>
    %39 = tpu.matmul %36, %38, %cst_36 {dimension_numbers = #tpu.dot_dimension_numbers<[1], [0], [0], [1], [0, 0, 1, 1], [], []>} : vector<288x8xbf16>, vector<8x128xbf16>, vector<288x128xf32> -> vector<288x128xf32>
    %40 = arith.addf %34, %39 : vector<288x128xf32>
    %c0_37 = arith.constant 0 : index
    %c37 = arith.constant 37 : index
    %c0_38 = arith.constant 0 : index
    %41 = vector.load %arg1[%c0_37, %c37, %c0_38] : memref<1x328x8xbf16, #tpu.memory_space<vmem>>, vector<1x288x8xbf16>
    %42 = vector.shape_cast %41 : vector<1x288x8xbf16> to vector<288x8xbf16>
    %c7 = arith.constant 7 : index
    %c0_39 = arith.constant 0 : index
    %c0_40 = arith.constant 0 : index
    %43 = vector.load %arg2[%c7, %c0_39, %c0_40] : memref<9x8x128xbf16, #tpu.memory_space<vmem>>, vector<1x8x128xbf16>
    %44 = vector.shape_cast %43 : vector<1x8x128xbf16> to vector<8x128xbf16>
    %cst_41 = arith.constant dense<0.000000e+00> : vector<288x128xf32>
    %45 = tpu.matmul %42, %44, %cst_41 {dimension_numbers = #tpu.dot_dimension_numbers<[1], [0], [0], [1], [0, 0, 1, 1], [], []>} : vector<288x8xbf16>, vector<8x128xbf16>, vector<288x128xf32> -> vector<288x128xf32>
    %46 = arith.addf %40, %45 : vector<288x128xf32>
    %c0_42 = arith.constant 0 : index
    %c38 = arith.constant 38 : index
    %c0_43 = arith.constant 0 : index
    %47 = vector.load %arg1[%c0_42, %c38, %c0_43] : memref<1x328x8xbf16, #tpu.memory_space<vmem>>, vector<1x288x8xbf16>
    %48 = vector.shape_cast %47 : vector<1x288x8xbf16> to vector<288x8xbf16>
    %c8 = arith.constant 8 : index
    %c0_44 = arith.constant 0 : index
    %c0_45 = arith.constant 0 : index
    %49 = vector.load %arg2[%c8, %c0_44, %c0_45] : memref<9x8x128xbf16, #tpu.memory_space<vmem>>, vector<1x8x128xbf16>
    %50 = vector.shape_cast %49 : vector<1x8x128xbf16> to vector<8x128xbf16>
    %cst_46 = arith.constant dense<0.000000e+00> : vector<288x128xf32>
    %51 = tpu.matmul %48, %50, %cst_46 {dimension_numbers = #tpu.dot_dimension_numbers<[1], [0], [0], [1], [0, 0, 1, 1], [], []>} : vector<288x8xbf16>, vector<8x128xbf16>, vector<288x128xf32> -> vector<288x128xf32>
    %52 = arith.addf %46, %51 : vector<288x128xf32>
    %c0_47 = arith.constant 0 : index
    %c0_48 = arith.constant 0 : index
    %53 = vector.load %arg3[%c0_47, %c0_48] : memref<1x128xf32, #tpu.memory_space<vmem>>, vector<1x128xf32>
    %c0_49 = arith.constant 0 : index
    %c0_50 = arith.constant 0 : index
    %54 = vector.load %arg4[%c0_49, %c0_50] : memref<1x128xf32, #tpu.memory_space<vmem>>, vector<1x128xf32>
    %c0_51 = arith.constant 0 : index
    %c0_52 = arith.constant 0 : index
    %55 = vector.load %arg5[%c0_51, %c0_52] : memref<1x128xf32, #tpu.memory_space<vmem>>, vector<1x128xf32>
    %56 = vector.broadcast %53 : vector<1x128xf32> to vector<288x128xf32>
    %57 = arith.mulf %52, %56 : vector<288x128xf32>
    %58 = vector.broadcast %54 : vector<1x128xf32> to vector<288x128xf32>
    %59 = arith.addf %57, %58 : vector<288x128xf32>
    %cst_53 = arith.constant 0.000000e+00 : f32
    %60 = vector.broadcast %cst_53 : f32 to vector<288x128xf32>
    %61 = arith.cmpf oge, %59, %60 : vector<288x128xf32>
    %62 = vector.broadcast %55 : vector<1x128xf32> to vector<288x128xf32>
    %63 = arith.mulf %62, %59 : vector<288x128xf32>
    %64 = arith.select %61, %59, %63 : vector<288x128xi1>, vector<288x128xf32>
    %c0_54 = arith.constant 0 : index
    %c0_55 = arith.constant 0 : index
    %c0_56 = arith.constant 0 : index
    %65 = vector.load %arg6[%c0_54, %c0_55, %c0_56] : memref<1x288x128xf32, #tpu.memory_space<vmem>>, vector<1x288x128xf32>
    %66 = vector.shape_cast %65 : vector<1x288x128xf32> to vector<288x128xf32>
    %67 = vector.shape_cast %64 : vector<288x128xf32> to vector<1x288x128xf32>
    tpu.vector_store %arg6[%c0_54, %c0_55, %c0_56], %67 {strides = array<i32>} : memref<1x288x128xf32, #tpu.memory_space<vmem>>, vector<1x288x128xf32>,
    return
  }
  func.func @transform_0(%arg0: i32) -> (i32, i32, i32) {
    %c0_i32 = arith.constant 0 : i32
    %c0_i32_0 = arith.constant 0 : i32
    %c0_i32_1 = arith.constant 0 : i32
    return %arg0, %c0_i32, %c0_i32_0 : i32, i32, i32
  }
  func.func @transform_1(%arg0: i32) -> (i32, i32, i32) {
    %c0_i32 = arith.constant 0 : i32
    %c0_i32_0 = arith.constant 0 : i32
    %c0_i32_1 = arith.constant 0 : i32
    %c0_i32_2 = arith.constant 0 : i32
    return %c0_i32, %c0_i32_0, %c0_i32_1 : i32, i32, i32
  }
  func.func @transform_2(%arg0: i32) -> (i32, i32) {
    %c0_i32 = arith.constant 0 : i32
    %c0_i32_0 = arith.constant 0 : i32
    %c0_i32_1 = arith.constant 0 : i32
    return %c0_i32, %c0_i32_0 : i32, i32
  }
  func.func @transform_3(%arg0: i32) -> (i32, i32) {
    %c0_i32 = arith.constant 0 : i32
    %c0_i32_0 = arith.constant 0 : i32
    %c0_i32_1 = arith.constant 0 : i32
    return %c0_i32, %c0_i32_0 : i32, i32
  }
  func.func @transform_4(%arg0: i32) -> (i32, i32) {
    %c0_i32 = arith.constant 0 : i32
    %c0_i32_0 = arith.constant 0 : i32
    %c0_i32_1 = arith.constant 0 : i32
    return %c0_i32, %c0_i32_0 : i32, i32
  }
  func.func @transform_5(%arg0: i32) -> (i32, i32, i32) {
    %c0_i32 = arith.constant 0 : i32
    %c0_i32_0 = arith.constant 0 : i32
    %c0_i32_1 = arith.constant 0 : i32
    return %arg0, %c0_i32, %c0_i32_0 : i32, i32, i32
  }
}

</mosaic_0001>

<bundles_post_ra>
// kernel: conv_block_forward.3
= control target key start
LH: loop header
LB: loop body
LE: loop exit
PB: predicated region body
PF: predicated region fallthrough
CT: control target
= control target key end

     0   :  { %10 = vsyncpa [#allocation3], 0  ;;  %s6843_s0 = inlined_call_operand.hbm [shape: bf16[2,328,8], index: 0, kind: input, shape index: {}]   ;;  %s6844_s1 = inlined_call_operand.hbm [shape: bf16[9,8,128], index: 1, kind: input, shape index: {}]   ;;  %s6845_s2 = inlined_call_operand.hbm [shape: f32[1,128], index: 2, kind: input, shape index: {}]   ;;  %s6846_s3 = inlined_call_operand.hbm [shape: f32[1,128], index: 3, kind: input, shape index: {}]   ;;  %s6847_s4 = inlined_call_operand.hbm [shape: f32[1,128], index: 4, kind: input, shape index: {}]   ;;  %s6848_s5 = inlined_call_operand.hbm [shape: f32[2,288,128], index: 5, kind: output, shape index: {}]  }
   0x1   :  { %12 = vsyncpa [#allocation3 + $0x1], 0 }
   0x2   :  { %13 = vsyncpa [#allocation6], 0 }
   0x3   :  { %14 = vsyncpa [#allocation9], 0 }
   0x4   :  { %15 = vsyncpa [#allocation4], 0 }
   0x5   :  { %17 = vsyncpa [#allocation4 + $0x1], 0  ;;  %s5588_s18 = smov 0   ;;  %s5590_s19 = smov 0  }
   0x6   :  { %s5592_s20 = smov 0   ;;  %s5594_s21 = smov 0  }
   0x7 LB: > { %s5609_s22 = sadd.s32 4294967295, %s5546_s21   ;;  %s4106_s23 = sadd.s32 4294967294, %s5546_s21   ;;  %s5546_s21 = sphi %s5594_s21, %s6873_s21   ;;  %s5542_s20 = sphi %s5592_s20, %s6872_s20   ;;  %s5538_s19 = sphi %s5590_s19, %s6871_s19   ;;  %s5534_s18 = sphi %s5588_s18, %s6870_s18  }
   0x8   : > { %p43_p0 = scmp.ne.s32.totalorder %s5538_s19, %s5534_s18  ;;  %p6849_p1 = scmp.eq.s32.totalorder %s5609_s22, 0 }
   0x9   : > { %p157_p3 = scmp.eq.s32.totalorder %s4106_s23, 1  ;;  %p4107_p5 = scmp.ge.s32.totalorder %s5546_s21, 1 }
   0xa   : > { %p5618_p4 = por %p6849_p1, %p43_p0  ;;  %p164_p7 = scmp.lt.s32.totalorder %s5546_s21, 3 }
   0xb   : > { %p5623_p6 = por %p157_p3, %p43_p0  ;;  %s5548_s27 = smov [#allocation5]  }
   0xc   : > { %s6853_s24 = scalar_select %p5618_p4, 1, 0 }
   0xd   : > { %s6854_s25 = scalar_select %p5623_p6, 1, 0 }
   0xe   : > { %p5628_p8 = pnand %p4107_p5, %p164_p7  ;;  %s176_s28 = sshll.u32 %s5548_s27, 4  ;;  %s5632_s28 = int_to_ptr.vmem [resolvable:$true] %s176_s28 }
   0xf   : > { %s5549_s30 = smov [#allocation8]   ;;  %s5550_s7 = smov [#allocation7]  }
  0x10   : > { %s6855_s26 = scalar_select %p5628_p8, 1, 0 }
  0x11   : > { %p5187_p9 = pneg %p5628_p8  ;;  %s201_s6 = sshll.u32 %s5549_s30, 4  ;;  %s5643_s6 = int_to_ptr.vmem [resolvable:$true] %s201_s6 }
  0x12   : > { %s5645_s8 = sshll.u32 %s5550_s7, 4  ;;  %s5330_s11 = scalar_lea.hbm %s6844_s1, 576  ;;  %s191_s8 = int_to_ptr.vmem [resolvable:$true] %s5645_s8 }
  0x13   : > { %p5639_p11 = pnand %p5187_p9, %p6849_p1  ;;  %p5331_p12 = scmp.ne.s32.totalorder %s6844_s1, %s5330_s11 }
  0x14   : > { %p5337_p5 = scmp.lt.u32.totalorder %s5330_s11, %s6844_s1 }
  0x15   : > { %p5655_p13 = pneg %p5639_p11 }
  0x17   : > { %p5333_p0 = pnand %p5655_p13, %p5331_p12 }
  0x19   : > { %p5334_p3 = pneg %p5333_p0 }
  0x1b   : > { %p5339_p7 = pnand %p5337_p5, %p5334_p3 }
  0x1d   : > { %5342 = shalt.err (!%p5339_p7)
}
  0x1e   : > { %s5343_s17 = scalar_lea.vmem %s5632_s28, 576  ;;  %p5351_p2 = scmp.lt.s32.totalorder %s5632_s28, %s5632_s28 }
  0x1f   : > { %p5344_p9 = scmp.ne.s32.totalorder %s5632_s28, %s5343_s17  ;;  %p5352_p6 = scmp.lt.s32.totalorder %s5343_s17, %s5343_s17 }
  0x21   : > { %p5346_p10 = pnand %p5344_p9, %p5655_p13  ;;  %p5353_p12 = por %p5352_p6, %p5351_p2 }
  0x23   : > { %p5347_p1 = pneg %p5346_p10 }
  0x25   : > { %p5354_p0 = pnand %p5353_p12, %p5347_p1 }
  0x27   : > { %5357 = shalt.err (!%p5354_p0)
}
  0x28   : > { %s6852_s23 = smov 64   ;;  %s5552_s27 = smov 4  }
  0x29   : > { %5190 = dma.hbm_to_vmem [thread:$0]  (!%p5639_p11), %s6844_s1, 576, %s5632_s28, [#allocation6], %s6852_s23, %s6852_s23, %s5552_s27  }
  0x2a   : > { %s5358_s11 = scalar_lea.hbm %s6846_s3, 16 }
  0x2b   : > { %p5359_p1 = scmp.ne.s32.totalorder %s6846_s3, %s5358_s11  ;;  %p5365_p10 = scmp.lt.u32.totalorder %s5358_s11, %s6846_s3 }
  0x2d   : > { %p5361_p2 = pnand %p5359_p1, %p5655_p13 }
  0x2f   : > { %p5362_p6 = pneg %p5361_p2 }
  0x31   : > { %p5367_p3 = pnand %p5365_p10, %p5362_p6 }
  0x33   : > { %5370 = shalt.err (!%p5367_p3)
}
  0x34   : > { %s5371_s28 = scalar_lea.vmem %s5643_s6, 16  ;;  %s5378_s17 = scalar_lea.vmem %s5643_s6, 32 }
  0x35   : > { %p5372_p5 = scmp.ne.s32.totalorder %s5643_s6, %s5371_s28  ;;  %p5379_p12 = scmp.lt.s32.totalorder %s5643_s6, %s5643_s6 }
  0x36   : > { %p5380_p0 = scmp.lt.s32.totalorder %s5378_s17, %s5371_s28 }
  0x37   : > { %p5374_p7 = pnand %p5372_p5, %p5655_p13 }
  0x38   : > { %p5381_p1 = por %p5380_p0, %p5379_p12 }
  0x39   : > { %p5375_p9 = pneg %p5374_p7 }
  0x3b   : > { %p5382_p2 = pnand %p5381_p1, %p5375_p9 }
  0x3d   : > { %5385 = shalt.err (!%p5382_p2)
}
  0x3e   : > { %5196 = dma.hbm_to_vmem [thread:$0]  (!%p5639_p11), %s6846_s3, 16, %s5643_s6, [#allocation9]  }
  0x3f   : > { %s5386_s11 = scalar_lea.hbm %s6845_s2, 16 }
  0x40   : > { %p5387_p6 = scmp.ne.s32.totalorder %s6845_s2, %s5386_s11  ;;  %p5393_p5 = scmp.lt.u32.totalorder %s5386_s11, %s6845_s2 }
  0x42   : > { %p5389_p10 = pnand %p5387_p6, %p5655_p13 }
  0x44   : > { %p5390_p3 = pneg %p5389_p10 }
  0x46   : > { %p5395_p7 = pnand %p5393_p5, %p5390_p3 }
  0x48   : > { %5398 = shalt.err (!%p5395_p7)
}
  0x49   : > { %s5399_s28 = scalar_lea.vmem %s191_s8, 16  ;;  %s5406_s6 = scalar_lea.vmem %s191_s8, 32 }
  0x4a   : > { %p5400_p9 = scmp.ne.s32.totalorder %s191_s8, %s5399_s28  ;;  %p5407_p1 = scmp.lt.s32.totalorder %s191_s8, %s191_s8 }
  0x4b   : > { %p5408_p2 = scmp.lt.s32.totalorder %s5406_s6, %s5399_s28 }
  0x4c   : > { %p5402_p12 = pnand %p5400_p9, %p5655_p13 }
  0x4d   : > { %p5409_p4 = por %p5408_p2, %p5407_p1 }
  0x4e   : > { %p5403_p0 = pneg %p5402_p12 }
  0x50   : > { %p5410_p8 = pnand %p5409_p4, %p5403_p0 }
  0x52   : > { %5413 = shalt.err (!%p5410_p8)
}
  0x53   : > { %5193 = dma.hbm_to_vmem [thread:$0]  (!%p5639_p11), %s6845_s2, 16, %s191_s8, [#allocation6]  }
  0x54   : > { %s5553_s7 = smov [#allocation10]   ;;  %s5414_s12 = scalar_lea.hbm %s6847_s4, 16 }
  0x55   : > { %s212_s9 = sshll.u32 %s5553_s7, 4  ;;  %p5415_p6 = scmp.ne.s32.totalorder %s6847_s4, %s5414_s12  ;;  %s213_s9 = int_to_ptr.vmem [resolvable:$true] %s212_s9 }
  0x56   : > { %p5421_p10 = scmp.lt.u32.totalorder %s5414_s12, %s6847_s4 }
  0x57   : > { %p5417_p4 = pnand %p5415_p6, %p5655_p13 }
  0x59   : > { %p5418_p8 = pneg %p5417_p4 }
  0x5b   : > { %p5423_p3 = pnand %p5421_p10, %p5418_p8 }
  0x5d   : > { %5426 = shalt.err (!%p5423_p3)
}
  0x5e   : > { %s5427_s8 = scalar_lea.vmem %s213_s9, 16  ;;  %s5434_s6 = scalar_lea.vmem %s213_s9, 32 }
  0x5f   : > { %p5428_p5 = scmp.ne.s32.totalorder %s213_s9, %s5427_s8  ;;  %p5435_p12 = scmp.lt.s32.totalorder %s213_s9, %s213_s9 }
  0x60   : > { %p5436_p0 = scmp.lt.s32.totalorder %s5434_s6, %s5427_s8 }
  0x61   : > { %p5430_p7 = pnand %p5428_p5, %p5655_p13 }
  0x62   : > { %p5437_p1 = por %p5436_p0, %p5435_p12 }
  0x63   : > { %p5431_p9 = pneg %p5430_p7 }
  0x65   : > { %p5438_p2 = pnand %p5437_p1, %p5431_p9 }
  0x67   : > { %5441 = shalt.err (!%p5438_p2)
}
  0x68   : > { %5199 = dma.hbm_to_vmem [thread:$0]  (!%p5639_p11), %s6847_s4, 16, %s213_s9, [#allocation9]  }
  0x69   : > { %s5741_s14 = sadd.s32 1, %s5546_s21   ;;  %s30_s7 = sadd.s32 1, %s5542_s20 }
  0x6a   : > { %s27_s29 = ssub.s32 %s5546_s21, %s5741_s14  ;;  %p37_p13 = scmp.ne.s32.totalorder %s5542_s20, %s5538_s19 }
  0x6b   : > { %p28_p6 = scmp.eq.s32.totalorder %s27_s29, 0  ;;  %p38_p4 = scmp.eq.s32.totalorder %s5546_s21, 0 }
  0x6c   : > { %p6858_p8 = scmp.eq.s32.totalorder %s5609_s22, 1  ;;  %p5212_p3 = scmp.lt.s32.totalorder %s5546_s21, 2 }
  0x6d   : > { %s5757_s11 = scalar_select %p28_p6, %s5542_s20, %s30_s7  }
  0x6e   : > { %p5751_p10 = por %p6858_p8, %p37_p13  ;;  %p39_p5 = por %p38_p4, %p37_p13 }
  0x6f   : > { %s223_s12 = sand.u32 1, %s5542_s20   ;;  %s5163_s9 = smul.u32 2624, %s5546_s21 }
  0x70   : > { %s5162_s13 = smul.u32 164, %s223_s12  ;;  %p5761_p11 = pnand %p5212_p3, %p39_p5 }
  0x71   : > { %s5768_s8 = scalar_lea.hbm %s6843_s0, %s5163_s9  ;;  %s5772_s30 = scalar_lea.sflag [#allocation3], %s223_s12 }
  0x72   : > { %s227_s6 = scalar_lea.vmem [#allocation2], %s5162_s13  ;;  %s5442_s7 = scalar_lea.hbm %s5768_s8, 2624 }
  0x73   : > { %s234_s17 = sshll.u32 %s227_s6, 4  ;;  %p5443_p7 = scmp.ne.s32.totalorder %s5768_s8, %s5442_s7  ;;  %s5770_s17 = int_to_ptr.vmem [resolvable:$true] %s234_s17 }
  0x74   : > { %p5444_p9 = pneg %p5761_p11  ;;  %s5447_s16 = scalar_lea.hbm %s6843_s0, 5248 }
  0x75   : > { %p5448_p1 = scmp.lt.u32.totalorder %s5768_s8, %s6843_s0  ;;  %p5449_p2 = scmp.lt.u32.totalorder %s5447_s16, %s5442_s7 }
  0x76   : > { %p5445_p12 = pnand %p5444_p9, %p5443_p7  ;;  %p5451_p6 = scmp.lt.u32.totalorder %s5442_s7, %s5768_s8 }
  0x77   : > { %p5450_p13 = por %p5449_p2, %p5448_p1 }
  0x78   : > { %p5446_p0 = pneg %p5445_p12 }
  0x79   : > { %p5452_p4 = por %p5451_p6, %p5450_p13 }
  0x7b   : > { %p5453_p8 = pnand %p5452_p4, %p5446_p0 }
  0x7d   : > { %5456 = shalt.err (!%p5453_p8)
}
  0x7e   : > { %s5457_s12 = scalar_lea.vmem %s5770_s17, 2624  ;;  %s5554_s13 = smov [#allocation2]  }
  0x7f   : > { %p5458_p3 = scmp.ne.s32.totalorder %s5770_s17, %s5457_s12  ;;  %s5462_s6 = sshll.u32 %s5554_s13, 4  ;;  %s5463_s6 = int_to_ptr.vmem [resolvable:$false] %s5462_s6 }
  0x80   : > { %s5464_s23 = scalar_lea.vmem %s5463_s6, 5248  ;;  %p5465_p12 = scmp.lt.s32.totalorder %s5770_s17, %s5463_s6 }
  0x81   : > { %p5460_p5 = pnand %p5458_p3, %p5444_p9  ;;  %p5466_p1 = scmp.lt.s32.totalorder %s5464_s23, %s5457_s12 }
  0x83   : > { %p5461_p7 = pneg %p5460_p5  ;;  %p5467_p2 = por %p5466_p1, %p5465_p12 }
  0x85   : > { %p5468_p13 = pnand %p5467_p2, %p5461_p7 }
  0x87   : > { %5471 = shalt.err (!%p5468_p13)
}
  0x88   : > { %s6861_s7 = smov 64   ;;  %p6862_p9 = scmp.ne.s32.totalorder %s6855_s26, 0 }
  0x89   : > { %5203 = dma.hbm_to_vmem [thread:$0]  (!%p5761_p11), %s5768_s8, 2624, %s5770_s17, %s5772_s30, %s6861_s7, %s6861_s7, %s5552_s27  }
  0x8a   : > { %246 = sbr.rel (%p6862_p9) target bundleno = 728 (0x2d8), region = 40  ;;  %s5806_s29 = sand.u32 (!%p6862_p9), 1, %s5538_s19  }
  0x8b   : > { %s5164_s9 = smul.u32 (!%p6862_p9), 164, %s5806_s29  ;;  %s249_s16 = scalar_lea.sflag (!%p6862_p9), [#allocation3], %s5806_s29 }
  0x8c   : > { %p6863_p0 = scmp.ne.s32.totalorder (!%p6862_p9), %s6853_s24, 0 }
  0x8d   : > { %s5810_s28 = scalar_lea.vmem (!%p6862_p9), [#allocation2], %s5164_s9 }
  0x91   : > { %5517 = dma.done.wait (%p6863_p0), %s249_s16, 2624  }
  0x92   : > { %5519 = vsyncadd (%p6863_p0), %s249_s16, 4294964672  ;;  %p6864_p11 = scmp.eq.s32.totalorder %s5609_s22, 0 }
  0x94   : > { %5521 = dma.done.wait (%p6864_p11), [#allocation6], 592   ;;  %p6865_p6 = pmov %p6864_p11 }
  0x96   : > { %5523 = vsyncadd (%p6865_p6), [#allocation6], 4294966704  ;;  %p6866_p4 = pmov %p6865_p6 }
  0x98   : > { %5525 = dma.done.wait (%p6866_p4), [#allocation9], 32   ;;  %p6867_p8 = pmov %p6866_p4 }
  0x99   : > { %vm633_vm0 = vcmask 1043456   ;;  %vm429_vm1 = vsmask.f32 7424  ;;  %v5824_v0 = vld [vmem:[#allocation5 + $0x10] sm:$0xf]  ;;  %v5843_v7 = vld [vmem:[%s5810_s28 + $0x8] sm:$0xff]  }
  0x9a   : > { %5527 = vsyncadd (%p6867_p8), [#allocation9], 4294967264  ;;  %v335_v1 = vld [vmem:[#allocation5 + $0x4] sm:$0xf]  ;;  %v296_v2 = vld [vmem:[%s5810_s28] sm:$0xf]  ;;  %5156 = vmatprep.subr.msk.bf16.mxu0 %vm633_vm0, %v5824_v0 }
  0x9b   : > { %5152 = vmatprep.subr.msk.bf16.mxu1 %vm633_vm0, %v335_v1  ;;  %v5832_v3 = vsel %vm633_vm0, %v5824_v0, 0  ;;  %v635_v4 = vsel %vm633_vm0, %v335_v1, 0  ;;  %v5836_v5 = vld [vmem:[%s5810_s28 + $0x4] sm:$0xf]  ;;  %vm578_vm2 = vcmask 64512   ;;  %v438_v12 = vshll.u32 %v5843_v7, 16 }
  0x9c   : > { %4673 = vmatpush3.bf16.msra.mxu0 %v5832_v3  ;;  %4521 = vmatpush3.bf16.msra.mxu1 %v635_v4  ;;  %v5840_v6 = vcombine.low %v296_v2, %v5836_v5  ;;  %v1344_v8 = vld [vmem:[%s5810_s28 + $0x8] sm:$0xe]  ;;  %vm1789_vm3 = vsmask.f32 6400  ;;  %v5847_v9 = vld [vmem:[%s5810_s28 + $0xc] sm:$0xf] }
  0x9d   : > { %v442_v13 = vshrl.u32 %v5843_v7, 16  ;;  %v5854_v14 = vld [vmem:[%s5810_s28 + $0x10] sm:$0xff]   ;;  %v5860_v16 = vcombine.low %v1344_v8, %v5847_v9  ;;  %v2232_v17 = vld [vmem:[#allocation5 + $0x14] sm:$0xf]  ;;  %v440_v19 = vrot.slane %v438_v12, 1  ;;  %v5876_v35 = vld [vmem:[%s5810_s28 + $0x20] sm:$0xff]  }
  0x9e   : > { %v431_v10 = vshrl.u32 %v5840_v6, 16  ;;  %v433_v11 = vshll.u32 %v5840_v6, 16  ;;  %v5857_v15 = vld [vmem:[%s5810_s28 + $0x10] sm:$0xff]   ;;  %v1799_v20 = vshrl.u32 %v5854_v14, 16  ;;  %v1802_v21 = vshll.u32 %v5854_v14, 16  ;;  %5158 = vmatprep.subr.msk.bf16.mxu0 %vm633_vm0, %v2232_v17  ;;  %v5869_v25 = vld [vmem:[%s5810_s28 + $0x18] sm:$0xff]  }
  0x9f   : > { %v1791_v22 = vshrl.u32 %v5860_v16, 16  ;;  %v1794_v23 = vshll.u32 %v5860_v16, 16  ;;  %v446_v24 = vshll.u32 %v5857_v15, 16  ;;  %v444_v27 = vor.u32 %v442_v13, %v440_v19  ;;  %v5873_v34 = vld [vmem:[%s5810_s28 + $0x18] sm:$0xff]   ;;  %v332_v40 = vld [vmem:[#allocation5] sm:$0xf] }
  0xa0   : > { %v435_v18 = vrot.slane %v433_v11, 1  ;;  %v1801_v28 = vrot.slane %v1799_v20, 1  ;;  %v1804_v29 = vrot.slane %v1802_v21, 2  ;;  %v1808_v33 = vshrl.u32 %v5869_v25, 16  ;;  %5153 = vmatprep.subr.msk.bf16.mxu1 %vm633_vm0, %v332_v40  ;;  %v5891_v51 = vld [vmem:[%s5810_s28 + $0x20] sm:$0xff]   ;;  %v5896_v54 = vld [vmem:[%s5810_s28 + $0x28] sm:$0xff]  }
  0xa1   : > { %v1793_v30 = vrot.slane %v1791_v22, 1  ;;  %v1796_v31 = vrot.slane %v1794_v23, 2  ;;  %v448_v32 = vrot.slane %v446_v24, 1  ;;  %v1811_v38 = vshll.u32 %v5869_v25, 16  ;;  %v5900_v59 = vld [vmem:[%s5810_s28 + $0x28] sm:$0xff]   ;;  %v5920_v21 = vld [vmem:[%s5810_s28 + $0x38] sm:$0xff]  }
  0xa2   : > { %v436_v26 = vor.u32 %v435_v18, %v431_v10  ;;  %v1805_v37 = vor.u32 %v1804_v29, %v1801_v28  ;;  %v2329_v39 = vsel %vm633_vm0, %v2232_v17, 0  ;;  %v1810_v43 = vrot.slane %v1808_v33, 1  ;;  %v5912_v17 = vld [vmem:[%s5810_s28 + $0x30] sm:$0xff]   ;;  %s5165_s24 = smul.u32 288, %s5806_s29  ;;  %s3982_s30 = scalar_lea.sflag [#allocation4], %s5806_s29 }
  0xa3   : > { %v1797_v41 = vor.u32 %v1796_v31, %v1793_v30  ;;  %v449_v42 = vsel %vm429_vm1, %v444_v27, %v448_v32  ;;  %v450_v44 = vshrl.u32 %v5857_v15, 16  ;;  %v1813_v45 = vrot.slane %v1811_v38, 2  ;;  %v5915_v18 = vld [vmem:[%s5810_s28 + $0x30] sm:$0xff]   ;;  %v5925_v27 = vld [vmem:[%s5810_s28 + $0x38] sm:$0xff]   ;;  %v5936_v38 = vld [vmem:[%s5810_s28 + $0x40] sm:$0xff]   ;;  %s5166_s27 = smul.u32 4608, %s5609_s22 }
  0xa4   : > { %v441_v36 = vsel %vm429_vm1, %v436_v26, %v440_v19  ;;  %v454_v46 = vshll.u32 %v5873_v34, 16  ;;  %v1817_v47 = vshrl.u32 %v5876_v35, 16  ;;  %v1820_v48 = vshll.u32 %v5876_v35, 16  ;;  %s6636_s26 = scalar_lea.vmem [#allocation11], %s5165_s24  ;;  %s5555_s13 = smov [#allocation11]  }
  0xa5   : > { %4522 = vmatprep.mubr.msk.bf16.mxu1 %vm578_vm2, %v441_v36  ;;  %v1806_v49 = vsel %vm1789_vm3, %v1797_v41, %v1805_v37  ;;  %v452_v50 = vor.u32 %v450_v44, %v448_v32  ;;  %v458_v52 = vshrl.u32 %v5873_v34, 16  ;;  %v851_v53 = vsel %vm633_vm0, %v332_v40, 0  ;;  %s3995_s15 = sshll.u32 %s6636_s26, 4  ;;  %s6794_s17 = scalar_lea.hbm %s6848_s5, %s5166_s27  ;;  %s6796_s15 = int_to_ptr.vmem [resolvable:$true] %s3995_s15 }
  0xa6   : > { %4523 = vmatmul.mubr.msk.bf16.vlgmr.msra.gmra.mrb[0].mxu1 %vm578_vm2, %v449_v42  ;;  %4674 = vmatprep.mubr.msk.bf16.mxu0 %vm578_vm2, %v1806_v49  ;;  %v1814_v55 = vor.u32 %v1813_v45, %v1810_v43  ;;  %v456_v56 = vrot.slane %v454_v46, 1  ;;  %v1819_v57 = vrot.slane %v1817_v47, 1  ;;  %v1822_v58 = vrot.slane %v1820_v48, 2  ;;  %s5472_s12 = scalar_lea.vmem %s6796_s15, 4608  ;;  %s5476_s6 = sshll.u32 %s5555_s13, 4  ;;  %s5477_s6 = int_to_ptr.vmem [resolvable:$false] %s5476_s6 }
  0xa7   : > { %4559 = vmatpush3.bf16.msra.mxu1 %v851_v53  ;;  %v462_v60 = vshll.u32 %v5891_v51, 16  ;;  %v1826_v61 = vshrl.u32 %v5896_v54, 16  ;;  %v1829_v62 = vshll.u32 %v5896_v54, 16  ;;  %v466_v63 = vshrl.u32 %v5891_v51, 16  ;;  %v5949_v53 = vld [vmem:[%s5810_s28 + $0x48] sm:$0xff]   ;;  %p5473_p3 = scmp.ne.s32.totalorder %s6796_s15, %s5472_s12  ;;  %s5478_s23 = scalar_lea.vmem %s5477_s6, 9216 }
  0xa8   : > { %v1815_v1 = vsel %vm1789_vm3, %v1805_v37, %v1814_v55  ;;  %v457_v2 = vsel %vm429_vm1, %v452_v50, %v456_v56  ;;  %v1823_v4 = vor.u32 %v1822_v58, %v1819_v57  ;;  %v460_v8 = vor.u32 %v458_v52, %v456_v56  ;;  %v5945_v50 = vld [vmem:[%s5810_s28 + $0x40] sm:$0xff]   ;;  %p5479_p12 = scmp.lt.s32.totalorder %s6796_s15, %s5477_s6  ;;  %p5480_p1 = scmp.lt.s32.totalorder %s5478_s23, %s5472_s12 }
  0xa9   : > { %4675 = vmatmul.mubr.msk.bf16.vlgmr.msra.gmra.mrb[0].mxu0 %vm578_vm2, %v1815_v1  ;;  %4526 = vmatprep.mubr.msk.bf16.mxu1 %vm578_vm2, %v457_v2  ;;  %v464_v10 = vrot.slane %v462_v60, 1  ;;  %v1828_v11 = vrot.slane %v1826_v61, 1  ;;  %v1831_v12 = vrot.slane %v1829_v62, 2  ;;  %v470_v13 = vshll.u32 %v5900_v59, 16  ;;  %v5956_v1 = vld [vmem:[%s5810_s28 + $0x48] sm:$0xff]   ;;  %p5474_p5 = pnand %p5473_p3, %p5751_p10 }
  0xaa   : > { %4711 = vmatpush3.bf16.msra.mxu0 %v2329_v39  ;;  %v1824_v19 = vsel %vm1789_vm3, %v1814_v55, %v1823_v4  ;;  %v474_v20 = vshrl.u32 %v5900_v59, 16  ;;  %v1835_v28 = vshrl.u32 %v5912_v17, 16  ;;  %v1838_v29 = vshll.u32 %v5912_v17, 16  ;;  %p5481_p2 = por %p5480_p1, %p5479_p12 }
  0xab   : > { %4678 = vmatprep.mubr.msk.bf16.mxu0 %vm578_vm2, %v1824_v19  ;;  %v465_v22 = vsel %vm429_vm1, %v460_v8, %v464_v10  ;;  %v1832_v23 = vor.u32 %v1831_v12, %v1828_v11  ;;  %v468_v24 = vor.u32 %v466_v63, %v464_v10  ;;  %v472_v26 = vrot.slane %v470_v13, 1  ;;  %v5962_v8 = vld [vmem:[%s5810_s28 + $0x50] sm:$0xff]   ;;  %p5475_p7 = pneg %p5474_p5 }
  0xac   : > { %v478_v30 = vshll.u32 %v5915_v18, 16  ;;  %v1844_v31 = vshrl.u32 %v5920_v21, 16  ;;  %v1847_v37 = vshll.u32 %v5920_v21, 16  ;;  %v1837_v39 = vrot.slane %v1835_v28, 1  ;;  %v5967_v19 = vld [vmem:[%s5810_s28 + $0x50] sm:$0xff]  }
  0xad   : > { %v1833_v32 = vsel %vm1789_vm3, %v1823_v4, %v1832_v23  ;;  %v473_v33 = vsel %vm429_vm1, %v468_v24, %v472_v26  ;;  %v476_v36 = vor.u32 %v474_v20, %v472_v26  ;;  %v1840_v40 = vrot.slane %v1838_v29, 2  ;;  %p5482_p13 = pnand %p5481_p2, %p5475_p7 }
  0xae   : > { %4527 = vmatmul.mubr.msk.bf16.gmra.mrb[4].mxu1 %vm578_vm2, %v465_v22  ;;  %v480_v41 = vrot.slane %v478_v30, 1  ;;  %v1846_v42 = vrot.slane %v1844_v31, 1  ;;  %v1849_v43 = vrot.slane %v1847_v37, 2  ;;  %v482_v44 = vshrl.u32 %v5915_v18, 16  ;;  %v5975_v30 = vld [vmem:[%s5810_s28 + $0x58] sm:$0xff]  }
  0xaf   : > { %4530 = vmatprep.mubr.msk.bf16.mxu1 %vm578_vm2, %v473_v33  ;;  %v486_v45 = vshll.u32 %v5925_v27, 16  ;;  %v1853_v46 = vshrl.u32 %v5936_v38, 16  ;;  %v1841_v47 = vor.u32 %v1840_v40, %v1837_v39  ;;  %v1856_v49 = vshll.u32 %v5936_v38, 16  ;;  %v5979_v37 = vld [vmem:[%s5810_s28 + $0x58] sm:$0xff]  }
  0xb0   : > { %v481_v48 = vsel %vm429_vm1, %v476_v36, %v480_v41  ;;  %v490_v52 = vshrl.u32 %v5925_v27, 16  ;;  %v1850_v55 = vor.u32 %v1849_v43, %v1846_v42  ;;  %v484_v56 = vor.u32 %v482_v44, %v480_v41  ;;  %v5987_v44 = vld [vmem:[#allocation5 + $0x18] sm:$0xf] }
  0xb1   : > { %4679 = vmatmul.mubr.msk.bf16.gmra.mrb[4].mxu0 %vm578_vm2, %v1833_v32  ;;  %v488_v57 = vrot.slane %v486_v45, 1  ;;  %v1855_v58 = vrot.slane %v1853_v46, 1  ;;  %v1842_v60 = vsel %vm1789_vm3, %v1832_v23, %v1841_v47  ;;  %v1858_v61 = vrot.slane %v1856_v49, 2  ;;  %5159 = vmatprep.subr.msk.bf16.mxu0 %vm633_vm0, %v5987_v44 }
  0xb2   : > { %v494_v62 = vshll.u32 %v5945_v50, 16  ;;  %v1862_v63 = vshrl.u32 %v5949_v53, 16  ;;  %4682 = vmatprep.mubr.msk.bf16.mxu0 %vm578_vm2, %v1842_v60  ;;  %v1865_v4 = vshll.u32 %v5949_v53, 16  ;;  %v498_v13 = vshrl.u32 %v5945_v50, 16 }
  0xb3   : > { %v489_v2 = vsel %vm429_vm1, %v484_v56, %v488_v57  ;;  %v1859_v10 = vor.u32 %v1858_v61, %v1855_v58  ;;  %v492_v11 = vor.u32 %v490_v52, %v488_v57  ;;  %v502_v22 = vshll.u32 %v5956_v1, 16  ;;  %v2230_v52 = vld [vmem:[%s5810_s28 + $0x8] sm:$0xc]  ;;  %v5998_v56 = vld [vmem:[%s5810_s28 + $0x60] sm:$0xff]  }
  0xb4   : > { %v496_v12 = vrot.slane %v494_v62, 1  ;;  %v1864_v20 = vrot.slane %v1862_v63, 1  ;;  %v1871_v23 = vshrl.u32 %v5962_v8, 16  ;;  %v1874_v24 = vshll.u32 %v5962_v8, 16 }
  0xb5   : > { %v1851_v26 = vsel %vm1789_vm3, %v1841_v47, %v1850_v55  ;;  %v1867_v28 = vrot.slane %v1865_v4, 2  ;;  %v1860_v31 = vsel %vm1789_vm3, %v1850_v55, %v1859_v10  ;;  %v504_v32 = vrot.slane %v502_v22, 1 }
  0xb6   : > { %4531 = vmatmul.mubr.msk.bf16.gmra.mrb[8].mxu1 %vm578_vm2, %v481_v48  ;;  %v500_v29 = vor.u32 %v498_v13, %v496_v12  ;;  %v1873_v33 = vrot.slane %v1871_v23, 1  ;;  %v1876_v36 = vrot.slane %v1874_v24, 2  ;;  %v506_v39 = vshrl.u32 %v5956_v1, 16 }
  0xb7   : > { %4534 = vmatprep.mubr.msk.bf16.mxu1 %vm578_vm2, %v489_v2  ;;  %v510_v40 = vshll.u32 %v5967_v19, 16  ;;  %v497_v41 = vsel %vm429_vm1, %v492_v11, %v496_v12  ;;  %v1880_v42 = vshrl.u32 %v5975_v30, 16  ;;  %v1883_v43 = vshll.u32 %v5975_v30, 16  ;;  %v6003_v2 = vld [vmem:[%s5810_s28 + $0x68] sm:$0xff]  }
  0xb8   : > { %v1868_v45 = vor.u32 %v1867_v28, %v1864_v20  ;;  %v505_v46 = vsel %vm429_vm1, %v500_v29, %v504_v32  ;;  %v514_v47 = vshrl.u32 %v5967_v19, 16  ;;  %v518_v48 = vshll.u32 %v5979_v37, 16  ;;  %v6020_v29 = vld [vmem:[%s5810_s28 + $0x70] sm:$0xff]  }
  0xb9   : > { %4683 = vmatmul.mubr.msk.bf16.gmra.mrb[8].mxu0 %vm578_vm2, %v1851_v26  ;;  %v1877_v49 = vor.u32 %v1876_v36, %v1873_v33  ;;  %v512_v55 = vrot.slane %v510_v40, 1  ;;  %v508_v57 = vor.u32 %v506_v39, %v504_v32  ;;  %v1882_v58 = vrot.slane %v1880_v42, 1  ;;  %v6030_v39 = vld [vmem:[%s5810_s28 + $0x78] sm:$0xff]  }
  0xba   : > { %4686 = vmatprep.mubr.msk.bf16.mxu0 %vm578_vm2, %v1860_v31  ;;  %v1885_v60 = vrot.slane %v1883_v43, 2  ;;  %v1869_v61 = vsel %vm1789_vm3, %v1859_v10, %v1868_v45  ;;  %v520_v63 = vrot.slane %v518_v48, 1  ;;  %v4249_v11 = vcombine.low %v2230_v52, %v5847_v9  ;;  %v6022_v31 = vld [vmem:[#allocation5 + $0x8] sm:$0xf] }
  0xbb   : > { %v516_v62 = vor.u32 %v514_v47, %v512_v55  ;;  %v1878_v4 = vsel %vm1789_vm3, %v1868_v45, %v1877_v49  ;;  %v526_v12 = vshll.u32 %v5998_v56, 16  ;;  %v513_v13 = vsel %vm429_vm1, %v508_v57, %v512_v55  ;;  %5154 = vmatprep.subr.msk.bf16.mxu1 %vm633_vm0, %v6022_v31  ;;  %v6045_v55 = vld [vmem:[%s5810_s28 + $0x80] sm:$0xff]  }
  0xbc   : > { %v522_v20 = vshrl.u32 %v5979_v37, 16  ;;  %v6012_v10 = vor.u32 %v1885_v60, %v1882_v58  ;;  %v530_v23 = vshrl.u32 %v5998_v56, 16  ;;  %v534_v24 = vshll.u32 %v6003_v2, 16 }
  0xbd   : > { %v521_v22 = vsel %vm429_vm1, %v516_v62, %v520_v63  ;;  %v2237_v9 = vrot.slane %v4249_v11, 2  ;;  %v2238_v26 = vrot.slane %v5854_v14, 2  ;;  %vm2236_vm4 = vcmask 1045504  }
  0xbe   : > { %4535 = vmatmul.mubr.msk.bf16.gmra.mrb[12].mxu1 %vm578_vm2, %v497_v41  ;;  %v528_v28 = vrot.slane %v526_v12, 1  ;;  %v524_v32 = vor.u32 %v522_v20, %v520_v63  ;;  %v1887_v33 = vsel %vm1789_vm3, %v1877_v49, %v6012_v10  ;;  %v536_v14 = vrot.slane %v534_v24, 1  ;;  %v6068_v24 = vld [vmem:[%s5810_s28 + $0x90] ss:$0 sps:$4 sm:$0x11]  }
  0xbf   : > { %4538 = vmatprep.mubr.msk.bf16.mxu1 %vm578_vm2, %v505_v46  ;;  %v2239_v40 = vsel %vm2236_vm4, %v2237_v9, %v2238_v26  ;;  %v542_v41 = vshll.u32 %v6020_v29, 16  ;;  %v2240_v43 = vrot.slane %v5869_v25, 2  ;;  %v538_v45 = vshrl.u32 %v6003_v2, 16 }
  0xc0   : > { %v532_v36 = vor.u32 %v530_v23, %v528_v28  ;;  %v529_v42 = vsel %vm429_vm1, %v524_v32, %v528_v28  ;;  %v546_v47 = vshrl.u32 %v6020_v29, 16  ;;  %v550_v48 = vshll.u32 %v6030_v39, 16 }
  0xc1   : > { %4687 = vmatmul.mubr.msk.bf16.gmra.mrb[12].mxu0 %vm578_vm2, %v1869_v61  ;;  %v2242_v49 = vrot.slane %v5876_v35, 2  ;;  %v544_v52 = vrot.slane %v542_v41, 1  ;;  %v540_v25 = vor.u32 %v538_v45, %v536_v14  ;;  %v2241_v57 = vsel %vm2236_vm4, %v2238_v26, %v2240_v43  ;;  %v6050_v61 = vld [vmem:[%s5810_s28 + $0x88] sm:$0xff]  }
  0xc2   : > { %4690 = vmatprep.mubr.msk.bf16.mxu0 %vm578_vm2, %v1878_v4  ;;  %v537_v46 = vsel %vm429_vm1, %v532_v36, %v536_v14  ;;  %v552_v60 = vrot.slane %v550_v48, 1  ;;  %v2768_v62 = vsel %vm633_vm0, %v5987_v44, 0  ;;  %v558_v63 = vshll.u32 %v6045_v55, 16  ;;  %v6056_v4 = vld [vmem:[#allocation5 + $0x1c] sm:$0xf] }
  0xc3   : > { %v548_v58 = vor.u32 %v546_v47, %v544_v52  ;;  %v2243_v35 = vsel %vm2236_vm4, %v2240_v43, %v2242_v49  ;;  %v545_v11 = vsel %vm429_vm1, %v540_v25, %v544_v52  ;;  %v2244_v12 = vrot.slane %v5896_v54, 2  ;;  %v6099_v25 = vld [vmem:[%s5810_s28 + $0x60] sm:$0xff]  }
  0xc4   : > { %v562_v44 = vshrl.u32 %v6045_v55, 16  ;;  %v2246_v23 = vrot.slane %v5912_v17, 2  ;;  %v560_v54 = vrot.slane %v558_v63, 1  ;;  %v570_v36 = vshrl.u32 %v6050_v61, 16 }
  0xc5   : > { %v553_v20 = vsel %vm429_vm1, %v548_v58, %v552_v60  ;;  %v2245_v26 = vsel %vm2236_vm4, %v2242_v49, %v2244_v12  ;;  %v574_v14 = vshll.u32 %v6068_v24, 16  ;;  %v6107_v58 = vld [vmem:[#allocation5 + $0xc] sm:$0xf]  ;;  %vm1036_vm5 = vcmask 1046528  }
  0xc6   : > { %4539 = vmatmul.mubr.msk.bf16.gmra.mrb[16].mxu1 %vm578_vm2, %v513_v13  ;;  %v554_v13 = vshrl.u32 %v6030_v39, 16  ;;  %v564_v28 = vor.u32 %v562_v44, %v560_v54  ;;  %vm2989_vm6 = vsmask.f32 5376  ;;  %vm3436_vm7 = vcmask 1044480  }
  0xc7   : > { %4542 = vmatprep.mubr.msk.bf16.mxu1 %vm578_vm2, %v521_v22  ;;  %v566_v22 = vshll.u32 %v6050_v61, 16  ;;  %v576_v45 = vrot.slane %v574_v14, 1 }
  0xc8   : > { %v556_v9 = vor.u32 %v554_v13, %v552_v60  ;;  %v6115_v60 = vld [vmem:[%s5810_s28 + $0x68] sm:$0xff]   ;;  %v6137_v13 = vld [vmem:[%s5810_s28 + $0x80] sm:$0xff]  }
  0xc9   : > { %4691 = vmatmul.mubr.msk.bf16.gmra.mrb[16].mxu0 %vm578_vm2, %v1887_v33  ;;  %v568_v32 = vrot.slane %v566_v22, 1  ;;  %v2247_v33 = vsel %vm2236_vm4, %v2244_v12, %v2246_v23  ;;  %v2266_v44 = vrot.slane %v6137_v13, 2 }
  0xca   : > { %4712 = vmatprep.mubr.msk.bf16.mxu0 %vm578_vm2, %v2239_v40  ;;  %v561_v17 = vsel %vm429_vm1, %v556_v9, %v560_v54  ;;  %v2248_v40 = vrot.slane %v5920_v21, 2  ;;  %v2252_v21 = vrot.slane %v5949_v53, 2  ;;  %v2256_v53 = vrot.slane %v5975_v30, 2  ;;  %v6153_v9 = vld [vmem:[%s5810_s28 + $0x90] sm:$0xff]  }
  0xcb   : > { %v569_v41 = vsel %vm429_vm1, %v564_v28, %v568_v32  ;;  %v572_v43 = vor.u32 %v570_v36, %v568_v32  ;;  %v2270_v28 = vrot.slane %v6153_v9, 2  ;;  %v2544_v32 = vld [vmem:[%s5810_s28 + $0x10] sm:$0xc]  ;;  %v6169_v36 = vld [vmem:[%s5810_s28 + $0x98] ss:$0 sps:$4 sm:$0x33]  }
  0xcd   : > { %v577_v48 = vsel %vm429_vm1, %v572_v43, %v576_v45 }
  0xce   : > { %4543 = vmatmul.mubr.msk.bf16.gmra.mrb[20].mxu1 %vm578_vm2, %v529_v42  ;;  %v2250_v42 = vrot.slane %v5936_v38, 2  ;;  %v2254_v38 = vrot.slane %v5962_v8, 2  ;;  %v1129_v8 = vsel %vm633_vm0, %v6022_v31, 0  ;;  %v6121_v31 = vld [vmem:[%s5810_s28 + $0x70] sm:$0xff]  }
  0xcf   : > { %4546 = vmatprep.mubr.msk.bf16.mxu1 %vm578_vm2, %v537_v46  ;;  %v2249_v46 = vsel %vm2236_vm4, %v2246_v23, %v2248_v40  ;;  %v6149_v23 = vld [vmem:[%s5810_s28 + $0x88] sm:$0xff]  }
  0xd0   : > { %v2251_v47 = vsel %vm2236_vm4, %v2248_v40, %v2250_v42  ;;  %v2253_v49 = vsel %vm2236_vm4, %v2250_v42, %v2252_v21  ;;  %v2255_v52 = vsel %vm2236_vm4, %v2252_v21, %v2254_v38  ;;  %v2272_v42 = vrot.slane %v6169_v36, 2  ;;  %v6193_v21 = vld [vmem:[%s5810_s28 + $0x28] sm:$0xff]  }
  0xd1   : > { %4713 = vmatmul.mubr.msk.bf16.vlgmr.msra.gmra.mrb[0].mxu0 %vm578_vm2, %v2241_v57  ;;  %v2258_v57 = vrot.slane %v6099_v25, 2 }
  0xd2   : > { %4749 = vmatpush3.bf16.msra.mxu0 %v2768_v62  ;;  %4716 = vmatprep.mubr.msk.bf16.mxu0 %vm578_vm2, %v2243_v35  ;;  %v2260_v62 = vrot.slane %v6115_v60, 2  ;;  %v2262_v35 = vrot.slane %v6121_v31, 2 }
  0xd3   : > { %5160 = vmatprep.subr.msk.bf16.mxu0 %vm633_vm0, %v6056_v4  ;;  %v2259_v30 = vsel %vm2236_vm4, %v2256_v53, %v2258_v57 }
  0xd4   : > { %v2261_v63 = vsel %vm2236_vm4, %v2258_v57, %v2260_v62  ;;  %v2263_v12 = vsel %vm2236_vm4, %v2260_v62, %v2262_v35 }
  0xd6   : > { %4547 = vmatmul.mubr.msk.bf16.gmra.mrb[24].mxu1 %vm578_vm2, %v545_v11  ;;  %v6133_v11 = vld [vmem:[%s5810_s28 + $0x78] sm:$0xff]  }
  0xd7   : > { %4550 = vmatprep.mubr.msk.bf16.mxu1 %vm578_vm2, %v553_v20  ;;  %v2264_v20 = vrot.slane %v6133_v11, 2 }
  0xd9   : > { %4717 = vmatmul.mubr.msk.bf16.gmra.mrb[4].mxu0 %vm578_vm2, %v2245_v26  ;;  %v2265_v22 = vsel %vm2236_vm4, %v2262_v35, %v2264_v20  ;;  %v2267_v54 = vsel %vm2236_vm4, %v2264_v20, %v2266_v44  ;;  %v2268_v26 = vrot.slane %v6149_v23, 2  ;;  %v6231_v20 = vld [vmem:[%s5810_s28 + $0x48] sm:$0xff]  }
  0xda   : > { %4720 = vmatprep.mubr.msk.bf16.mxu0 %vm578_vm2, %v2247_v33  ;;  %v6163_v33 = vld [vmem:[%s5810_s28 + $0x14] sm:$0xf] }
  0xdb   : > { %v2271_v14 = vsel %vm2236_vm4, %v2268_v26, %v2270_v28  ;;  %v6173_v40 = vcombine.low %v2544_v32, %v6163_v33  ;;  %v6245_v32 = vld [vmem:[%s5810_s28 + $0x50] sm:$0xff]  }
  0xdd   : > { %v2676_v43 = vrot.slane %v6173_v40, 2 }
  0xde   : > { %4551 = vmatmul.mubr.msk.bf16.gmra.mrb[28].mxu1 %vm578_vm2, %v561_v17  ;;  %v2269_v17 = vsel %vm2236_vm4, %v2266_v44, %v2268_v26  ;;  %v1030_v44 = vld [vmem:[%s5810_s28] sm:$0xe]  ;;  %v2689_v26 = vrot.slane %v6231_v20, 2 }
  0xdf   : > { %4554 = vmatprep.mubr.msk.bf16.mxu1 %vm578_vm2, %v569_v41  ;;  %v6176_v41 = vld [vmem:[%s5810_s28 + $0x18] sm:$0xff]  }
  0xe0   : > { %v2677_v45 = vrot.slane %v6176_v41, 2 }
  0xe1   : > { %4721 = vmatmul.mubr.msk.bf16.gmra.mrb[8].mxu0 %vm578_vm2, %v2249_v46  ;;  %v2273_v46 = vsel %vm2236_vm4, %v2270_v28, %v2272_v42 }
  0xe2   : > { %4724 = vmatprep.mubr.msk.bf16.mxu0 %vm578_vm2, %v2251_v47  ;;  %v6189_v47 = vld [vmem:[%s5810_s28 + $0x20] sm:$0xff]  }
  0xe6   : > { %4555 = vmatmul.mubr.msk.bf16.gmra.mrb[32].mxu1 %vm578_vm2, %v577_v48  ;;  %v2678_v48 = vsel %vm2236_vm4, %v2676_v43, %v2677_v45  ;;  %v2691_v43 = vrot.slane %v6245_v32, 2 }
  0xe7   : > { %4560 = vmatprep.mubr.msk.bf16.mxu1 %vm578_vm2, %v5840_v6  ;;  %v2257_v6 = vsel %vm2236_vm4, %v2254_v38, %v2256_v53  ;;  %v2679_v38 = vrot.slane %v6189_v47, 2  ;;  %v6205_v53 = vld [vmem:[%s5810_s28 + $0x30] sm:$0xff]  }
  0xe8   : > { %v2683_v62 = vrot.slane %v6205_v53, 2 }
  0xe9   : > { %4725 = vmatmul.mubr.msk.bf16.gmra.mrb[12].mxu0 %vm578_vm2, %v2253_v49  ;;  %v2681_v49 = vrot.slane %v6193_v21, 2 }
  0xea   : > { %4728 = vmatprep.mubr.msk.bf16.mxu0 %vm578_vm2, %v2255_v52  ;;  %v2680_v52 = vsel %vm2236_vm4, %v2677_v45, %v2679_v38 }
  0xeb   : > { %v2682_v57 = vsel %vm2236_vm4, %v2679_v38, %v2681_v49  ;;  %v6263_v38 = vld [vmem:[%s5810_s28 + $0x60] sm:$0xff]  }
  0xee   : > { %4561 = vmatmul.mubr.msk.bf16.vlgmr.msra.gmra.mrb[0].mxu1 %vm578_vm2, %v5843_v7 }
  0xef   : > { %4564 = vmatprep.mubr.msk.bf16.mxu1 %vm578_vm2, %v5857_v15  ;;  %4597 = vmatpush3.bf16.msra.mxu1 %v1129_v8  ;;  %v3215_v8 = vsel %vm633_vm0, %v6056_v4, 0  ;;  %v2684_v4 = vsel %vm2236_vm4, %v2681_v49, %v2683_v62  ;;  %v1042_v49 = vrot.slane %v5873_v34, 1 }
  0xf0   : > { %5155 = vmatprep.subr.msk.bf16.mxu1 %vm633_vm0, %v6107_v58 }
  0xf1   : > { %4729 = vmatmul.mubr.msk.bf16.gmra.mrb[16].mxu0 %vm578_vm2, %v2257_v6  ;;  %v6211_v6 = vld [vmem:[%s5810_s28 + $0x38] sm:$0xff]  }
  0xf2   : > { %4732 = vmatprep.mubr.msk.bf16.mxu0 %vm578_vm2, %v2259_v30  ;;  %v6213_v30 = vld [vmem:[#allocation5 + $0x20] sm:$0xf]  ;;  %v2685_v35 = vrot.slane %v6211_v6, 2 }
  0xf6   : > { %4565 = vmatmul.mubr.msk.bf16.gmra.mrb[4].mxu1 %vm578_vm2, %v5873_v34 }
  0xf7   : > { %4568 = vmatprep.mubr.msk.bf16.mxu1 %vm578_vm2, %v5891_v51 }
  0xf9   : > { %4733 = vmatmul.mubr.msk.bf16.gmra.mrb[20].mxu0 %vm578_vm2, %v2261_v63  ;;  %v6227_v63 = vld [vmem:[%s5810_s28 + $0x40] sm:$0xff]  }
  0xfa   : > { %4736 = vmatprep.mubr.msk.bf16.mxu0 %vm578_vm2, %v2263_v12  ;;  %v2686_v12 = vsel %vm2236_vm4, %v2683_v62, %v2685_v35 }
  0xfe   : > { %4569 = vmatmul.mubr.msk.bf16.gmra.mrb[8].mxu1 %vm578_vm2, %v5900_v59 }
  0xff   : > { %4572 = vmatprep.mubr.msk.bf16.mxu1 %vm578_vm2, %v5915_v18 }
 0x101   : > { %4737 = vmatmul.mubr.msk.bf16.gmra.mrb[24].mxu0 %vm578_vm2, %v2265_v22  ;;  %v2687_v22 = vrot.slane %v6227_v63, 2 }
 0x102   : > { %4740 = vmatprep.mubr.msk.bf16.mxu0 %vm578_vm2, %v2267_v54  ;;  %v4174_v54 = vcombine.low %v1030_v44, %v5836_v5  ;;  %v6250_v5 = vld [vmem:[%s5810_s28 + $0x58] sm:$0xff]   ;;  %v6283_v44 = vld [vmem:[%s5810_s28 + $0x70] sm:$0xff]  }
 0x103   : > { %v2688_v28 = vsel %vm2236_vm4, %v2685_v35, %v2687_v22  ;;  %v2690_v42 = vsel %vm2236_vm4, %v2687_v22, %v2689_v26  ;;  %v1568_v35 = vsel %vm633_vm0, %v6107_v58, 0  ;;  %v1046_v22 = vrot.slane %v5900_v59, 1 }
 0x106   : > { %4573 = vmatmul.mubr.msk.bf16.gmra.mrb[12].mxu1 %vm578_vm2, %v5925_v27 }
 0x107   : > { %4576 = vmatprep.mubr.msk.bf16.mxu1 %vm578_vm2, %v5945_v50 }
 0x109   : > { %4741 = vmatmul.mubr.msk.bf16.gmra.mrb[28].mxu0 %vm578_vm2, %v2269_v17  ;;  %v1037_v17 = vrot.slane %v4174_v54, 1  ;;  %v6290_v54 = vld [vmem:[%s5810_s28 + $0x78] sm:$0xff]  }
 0x10a   : > { %4744 = vmatprep.mubr.msk.bf16.mxu0 %vm578_vm2, %v2271_v14  ;;  %v1038_v14 = vrot.slane %v5843_v7, 1  ;;  %v1040_v7 = vrot.slane %v5857_v15, 1  ;;  %v2695_v15 = vrot.slane %v6263_v38, 2  ;;  %v2701_v59 = vrot.slane %v6290_v54, 2 }
 0x10c   : > { %v1039_v45 = vsel %vm1036_vm5, %v1037_v17, %v1038_v14  ;;  %v1043_v62 = vsel %vm1036_vm5, %v1040_v7, %v1042_v49 }
 0x10e   : > { %4577 = vmatmul.mubr.msk.bf16.gmra.mrb[16].mxu1 %vm578_vm2, %v5956_v1 }
 0x10f   : > { %4580 = vmatprep.mubr.msk.bf16.mxu1 %vm578_vm2, %v5967_v19 }
 0x111   : > { %4745 = vmatmul.mubr.msk.bf16.gmra.mrb[32].mxu0 %vm578_vm2, %v2273_v46  ;;  %v2693_v46 = vrot.slane %v6250_v5, 2 }
 0x112   : > { %4750 = vmatprep.mubr.msk.bf16.mxu0 %vm578_vm2, %v2678_v48  ;;  %v2692_v48 = vsel %vm2236_vm4, %v2689_v26, %v2691_v43  ;;  %v2699_v26 = vrot.slane %v6283_v44, 2 }
 0x116   : > { %4581 = vmatmul.mubr.msk.bf16.gmra.mrb[20].mxu1 %vm578_vm2, %v5979_v37 }
 0x117   : > { %4584 = vmatprep.mubr.msk.bf16.mxu1 %vm578_vm2, %v5998_v56 }
 0x119   : > { %4751 = vmatmul.mubr.msk.bf16.vlgmr.msra.gmra.mrb[0].mxu0 %vm578_vm2, %v2680_v52  ;;  %v2694_v52 = vsel %vm2236_vm4, %v2691_v43, %v2693_v46  ;;  %v2702_v43 = vsel %vm2236_vm4, %v2699_v26, %v2701_v59 }
 0x11a   : > { %4787 = vmatpush3.bf16.msra.mxu0 %v3215_v8  ;;  %4754 = vmatprep.mubr.msk.bf16.mxu0 %vm578_vm2, %v2682_v57  ;;  %v6268_v8 = vld [vmem:[%s5810_s28 + $0x68] sm:$0xff]   ;;  %v1041_v57 = vsel %vm1036_vm5, %v1038_v14, %v1040_v7  ;;  %v6303_v14 = vld [vmem:[%s5810_s28 + $0x80] sm:$0xff]  }
 0x11b   : > { %5161 = vmatprep.subr.msk.bf16.mxu0 %vm633_vm0, %v6213_v30  ;;  %v2697_v34 = vrot.slane %v6268_v8, 2 }
 0x11d   : > { %v2698_v58 = vsel %vm2236_vm4, %v2695_v15, %v2697_v34  ;;  %v2700_v17 = vsel %vm2236_vm4, %v2697_v34, %v2699_v26 }
 0x11e   : > { %4585 = vmatmul.mubr.msk.bf16.gmra.mrb[24].mxu1 %vm578_vm2, %v6003_v2 }
 0x11f   : > { %4588 = vmatprep.mubr.msk.bf16.mxu1 %vm578_vm2, %v6020_v29 }
 0x121   : > { %4755 = vmatmul.mubr.msk.bf16.gmra.mrb[4].mxu0 %vm578_vm2, %v2684_v4  ;;  %v1044_v4 = vrot.slane %v5891_v51, 1 }
 0x122   : > { %4758 = vmatprep.mubr.msk.bf16.mxu0 %vm578_vm2, %v2686_v12  ;;  %v2696_v12 = vsel %vm2236_vm4, %v2693_v46, %v2695_v15  ;;  %v6325_v15 = vld [vmem:[%s5810_s28 + $0x98] sm:$0xff]  }
 0x123   : > { %v1045_v51 = vsel %vm1036_vm5, %v1042_v49, %v1044_v4 }
 0x126   : > { %4589 = vmatmul.mubr.msk.bf16.gmra.mrb[28].mxu1 %vm578_vm2, %v6030_v39 }
 0x127   : > { %4592 = vmatprep.mubr.msk.bf16.mxu1 %vm578_vm2, %v6045_v55 }
 0x129   : > { %4759 = vmatmul.mubr.msk.bf16.gmra.mrb[8].mxu0 %vm578_vm2, %v2688_v28  ;;  %v1047_v28 = vsel %vm1036_vm5, %v1044_v4, %v1046_v22  ;;  %v2709_v4 = vrot.slane %v6325_v15, 2 }
 0x12a   : > { %4762 = vmatprep.mubr.msk.bf16.mxu0 %vm578_vm2, %v2690_v42  ;;  %v1050_v42 = vrot.slane %v5925_v27, 1  ;;  %v1052_v27 = vrot.slane %v5945_v50, 1 }
 0x12e   : > { %4593 = vmatmul.mubr.msk.bf16.gmra.mrb[32].mxu1 %vm578_vm2, %v6050_v61 }
 0x12f   : > { %4598 = vmatprep.mubr.msk.bf16.mxu1 %vm578_vm2, %v1039_v45  ;;  %v6308_v45 = vld [vmem:[%s5810_s28 + $0x88] sm:$0xff]  }
 0x131   : > { %4763 = vmatmul.mubr.msk.bf16.gmra.mrb[12].mxu0 %vm578_vm2, %v2692_v48  ;;  %v2705_v48 = vrot.slane %v6308_v45, 2 }
 0x132   : > { %4766 = vmatprep.mubr.msk.bf16.mxu0 %vm578_vm2, %v2694_v52  ;;  %v6321_v52 = vld [vmem:[%s5810_s28 + $0x90] sm:$0xff]  }
 0x133   : > { %v2707_v34 = vrot.slane %v6321_v52, 2 }
 0x135   : > { %v2708_v26 = vsel %vm2236_vm4, %v2705_v48, %v2707_v34 }
 0x136   : > { %4599 = vmatmul.mubr.msk.bf16.vlgmr.msra.gmra.mrb[0].mxu1 %vm578_vm2, %v1041_v57  ;;  %v1054_v57 = vrot.slane %v5956_v1, 1  ;;  %v2994_v1 = vshll.u32 %v6173_v40, 16 }
 0x137   : > { %4602 = vmatprep.mubr.msk.bf16.mxu1 %vm578_vm2, %v1043_v62  ;;  %4635 = vmatpush3.bf16.msra.mxu1 %v1568_v35  ;;  %v1053_v35 = vsel %vm1036_vm5, %v1050_v42, %v1052_v27 }
 0x138   : > { %5157 = vmatprep.subr.msk.bf16.mxu1 %vm633_vm0, %v5824_v0  ;;  %v1048_v0 = vrot.slane %v5915_v18, 1  ;;  %v2703_v18 = vrot.slane %v6303_v14, 2  ;;  %v1055_v50 = vsel %vm1036_vm5, %v1052_v27, %v1054_v57 }
 0x139   : > { %4767 = vmatmul.mubr.msk.bf16.gmra.mrb[16].mxu0 %vm578_vm2, %v2696_v12  ;;  %v2991_v12 = vshrl.u32 %v6173_v40, 16 }
 0x13a   : > { %4770 = vmatprep.mubr.msk.bf16.mxu0 %vm578_vm2, %v2698_v58  ;;  %v1049_v46 = vsel %vm1036_vm5, %v1046_v22, %v1048_v0  ;;  %v1051_v7 = vsel %vm1036_vm5, %v1048_v0, %v1050_v42  ;;  %v2704_v49 = vsel %vm2236_vm4, %v2701_v59, %v2703_v18  ;;  %v2706_v62 = vsel %vm2236_vm4, %v2703_v18, %v2705_v48  ;;  %v5316_v59 = vld [vmem:[%s5810_s28 + $0xa0] ss:$0 sps:$4 sm:$0x33]  }
 0x13b   : > { %v2999_v22 = vshrl.u32 %v6176_v41, 16  ;;  %v3002_v58 = vshll.u32 %v6176_v41, 16  ;;  %v1058_v0 = vrot.slane %v5979_v37, 1  ;;  %v2996_v42 = vrot.slane %v2994_v1, 3 }
 0x13c   : > { %v2711_v18 = vrot.slane %v5316_v59, 2  ;;  %v3011_v48 = vshll.u32 %v6189_v47, 16  ;;  %v3017_v37 = vshrl.u32 %v6193_v21, 16 }
 0x13d   : > { %v3001_v40 = vrot.slane %v2999_v22, 2 }
 0x13e   : > { %4603 = vmatmul.mubr.msk.bf16.gmra.mrb[4].mxu1 %vm578_vm2, %v1045_v51  ;;  %v1056_v51 = vrot.slane %v5967_v19, 1  ;;  %v3019_v22 = vrot.slane %v3017_v37, 2  ;;  %v3044_v37 = vshrl.u32 %v6227_v63, 16 }
 0x13f   : > { %4606 = vmatprep.mubr.msk.bf16.mxu1 %vm578_vm2, %v1047_v28  ;;  %v2710_v28 = vsel %vm2236_vm4, %v2707_v34, %v2709_v4 }
 0x140   : > { %v1059_v19 = vsel %vm1036_vm5, %v1056_v51, %v1058_v0 }
 0x141   : > { %4771 = vmatmul.mubr.msk.bf16.gmra.mrb[20].mxu0 %vm578_vm2, %v2700_v17  ;;  %v2993_v17 = vrot.slane %v2991_v12, 2  ;;  %v1062_v12 = vrot.slane %v6003_v2, 1  ;;  %v3035_v2 = vshrl.u32 %v6211_v6, 16 }
 0x142   : > { %4774 = vmatprep.mubr.msk.bf16.mxu0 %vm578_vm2, %v2702_v43  ;;  %v3004_v43 = vrot.slane %v3002_v58, 3 }
 0x143   : > { %v2997_v27 = vor.u32 %v2996_v42, %v2993_v17  ;;  %v3038_v17 = vshll.u32 %v6211_v6, 16 }
 0x146   : > { %4607 = vmatmul.mubr.msk.bf16.gmra.mrb[8].mxu1 %vm578_vm2, %v1049_v46  ;;  %v1057_v46 = vsel %vm1036_vm5, %v1054_v57, %v1056_v51  ;;  %v1060_v57 = vrot.slane %v5998_v56, 1  ;;  %v3026_v56 = vshrl.u32 %v6205_v53, 16 }
 0x147   : > { %4610 = vmatprep.mubr.msk.bf16.mxu1 %vm578_vm2, %v1051_v7  ;;  %v3008_v7 = vshrl.u32 %v6189_v47, 16 }
 0x148   : > { %v1061_v51 = vsel %vm1036_vm5, %v1058_v0, %v1060_v57  ;;  %v1064_v0 = vrot.slane %v6020_v29, 1 }
 0x149   : > { %4775 = vmatmul.mubr.msk.bf16.gmra.mrb[24].mxu0 %vm578_vm2, %v2704_v49  ;;  %v3005_v49 = vor.u32 %v3004_v43, %v3001_v40  ;;  %v3010_v34 = vrot.slane %v3008_v7, 2  ;;  %v3028_v40 = vrot.slane %v3026_v56, 2  ;;  %v3037_v7 = vrot.slane %v3035_v2, 2 }
 0x14a   : > { %4778 = vmatprep.mubr.msk.bf16.mxu0 %vm578_vm2, %v2706_v62  ;;  %v3020_v62 = vshll.u32 %v6193_v21, 16  ;;  %v3074_v2 = vshll.u32 %v6250_v5, 16 }
 0x14b   : > { %v3006_v1 = vsel %vm2989_vm6, %v2997_v27, %v3005_v49  ;;  %v1065_v27 = vsel %vm1036_vm5, %v1062_v12, %v1064_v0 }
 0x14c   : > { %v3022_v58 = vrot.slane %v3020_v62, 3 }
 0x14e   : > { %4611 = vmatmul.mubr.msk.bf16.gmra.mrb[12].mxu1 %vm578_vm2, %v1053_v35  ;;  %v2712_v35 = vsel %vm2236_vm4, %v2709_v4, %v2711_v18  ;;  %v3029_v4 = vshll.u32 %v6205_v53, 16  ;;  %v3023_v59 = vor.u32 %v3022_v58, %v3019_v22  ;;  %v3529_v18 = vsel %vm633_vm0, %v6213_v30, 0 }
 0x14f   : > { %4614 = vmatprep.mubr.msk.bf16.mxu1 %vm578_vm2, %v1055_v50  ;;  %v3013_v50 = vrot.slane %v3011_v48, 3  ;;  %v3040_v48 = vrot.slane %v3038_v17, 3  ;;  %v3053_v30 = vshrl.u32 %v6231_v20, 16  ;;  %v1072_v17 = vrot.slane %v6068_v24, 1 }
 0x150   : > { %v3031_v43 = vrot.slane %v3029_v4, 3  ;;  %v3065_v4 = vshll.u32 %v6245_v32, 16 }
 0x151   : > { %4779 = vmatmul.mubr.msk.bf16.gmra.mrb[28].mxu0 %vm578_vm2, %v2708_v26  ;;  %v3014_v26 = vor.u32 %v3013_v50, %v3010_v34  ;;  %v3041_v62 = vor.u32 %v3040_v48, %v3037_v7  ;;  %v3046_v50 = vrot.slane %v3044_v37, 2  ;;  %v3055_v58 = vrot.slane %v3053_v30, 2  ;;  %v5321_v30 = vld [vmem:[%s5810_s28 + $0x18] sm:$0xff]  }
 0x152   : > { %4782 = vmatprep.mubr.msk.bf16.mxu0 %vm578_vm2, %v2710_v28  ;;  %v1063_v28 = vsel %vm1036_vm5, %v1060_v57, %v1062_v12  ;;  %v3032_v29 = vor.u32 %v3031_v43, %v3028_v40  ;;  %v3056_v57 = vshll.u32 %v6231_v20, 16  ;;  %v3067_v40 = vrot.slane %v3065_v4, 3 }
 0x153   : > { %v3015_v42 = vsel %vm2989_vm6, %v3005_v49, %v3014_v26  ;;  %v1476_v43 = vrot.slane %v5860_v16, 1  ;;  %v3076_v48 = vrot.slane %v3074_v2, 3  ;;  %v3083_v16 = vshll.u32 %v6263_v38, 16 }
 0x154   : > { %v3033_v34 = vsel %vm2989_vm6, %v3023_v59, %v3032_v29  ;;  %v3042_v22 = vsel %vm2989_vm6, %v3032_v29, %v3041_v62  ;;  %v3101_v4 = vshll.u32 %v6283_v44, 16  ;;  %v3110_v2 = vshll.u32 %v6290_v54, 16 }
 0x156   : > { %4615 = vmatmul.mubr.msk.bf16.gmra.mrb[16].mxu1 %vm578_vm2, %v1057_v46  ;;  %v1066_v46 = vrot.slane %v6030_v39, 1  ;;  %v3047_v39 = vshll.u32 %v6227_v63, 16 }
 0x157   : > { %4618 = vmatprep.mubr.msk.bf16.mxu1 %vm578_vm2, %v1059_v19  ;;  %v3024_v19 = vsel %vm2989_vm6, %v3014_v26, %v3023_v59 }
 0x158   : > { %v1067_v49 = vsel %vm1036_vm5, %v1064_v0, %v1066_v46  ;;  %v3049_v12 = vrot.slane %v3047_v39, 3  ;;  %v3089_v39 = vshrl.u32 %v6268_v8, 16 }
 0x159   : > { %4783 = vmatmul.mubr.msk.bf16.gmra.mrb[32].mxu0 %vm578_vm2, %v2712_v35  ;;  %v1068_v35 = vrot.slane %v6045_v55, 1 }
 0x15a   : > { %4788 = vmatprep.mubr.msk.bf16.mxu0 %vm578_vm2, %v3006_v1  ;;  %v1070_v1 = vrot.slane %v6050_v61, 1  ;;  %v3050_v55 = vor.u32 %v3049_v12, %v3046_v50  ;;  %v3071_v61 = vshrl.u32 %v6250_v5, 16  ;;  %v3085_v50 = vrot.slane %v3083_v16, 3  ;;  %v5322_v12 = vld [vmem:[%s5810_s28 + $0x20] sm:$0xff]  }
 0x15b   : > { %v1069_v26 = vsel %vm1036_vm5, %v1066_v46, %v1068_v35  ;;  %v5320_v46 = vld [vmem:[%s5810_s28 + $0x10] sm:$0xff]  }
 0x15c   : > { %v1071_v56 = vsel %vm1036_vm5, %v1068_v35, %v1070_v1  ;;  %v3073_v7 = vrot.slane %v3071_v61, 2  ;;  %v3107_v61 = vshrl.u32 %v6290_v54, 16 }
 0x15e   : > { %4619 = vmatmul.mubr.msk.bf16.gmra.mrb[20].mxu1 %vm578_vm2, %v1061_v51  ;;  %v3058_v51 = vrot.slane %v3056_v57, 3  ;;  %v3077_v37 = vor.u32 %v3076_v48, %v3073_v7  ;;  %v1479_v57 = vrot.slane %v5321_v30, 1  ;;  %v3109_v7 = vrot.slane %v3107_v61, 2 }
 0x15f   : > { %4622 = vmatprep.mubr.msk.bf16.mxu1 %vm578_vm2, %v1063_v28  ;;  %v3062_v28 = vshrl.u32 %v6245_v32, 16  ;;  %v3112_v48 = vrot.slane %v3110_v2, 3  ;;  %v3146_v61 = vshll.u32 %v6325_v15, 16  ;;  %v5327_v2 = vld [vmem:[%s5810_s28 + $0x48] sm:$0xff]  }
 0x160   : > { %v3059_v59 = vor.u32 %v3058_v51, %v3055_v58  ;;  %v3091_v58 = vrot.slane %v3089_v39, 2  ;;  %v3128_v39 = vshll.u32 %v6308_v45, 16 }
 0x161   : > { %4789 = vmatmul.mubr.msk.bf16.vlgmr.msra.gmra.mrb[0].mxu0 %vm578_vm2, %v3015_v42  ;;  %v3064_v0 = vrot.slane %v3062_v28, 2  ;;  %v3051_v42 = vsel %vm2989_vm6, %v3041_v62, %v3050_v55  ;;  %v3092_v62 = vshll.u32 %v6268_v8, 16  ;;  %v3113_v16 = vor.u32 %v3112_v48, %v3109_v7 }
 0x162   : > { %4825 = vmatpush3.bf16.msra.mxu0 %v3529_v18  ;;  %4792 = vmatprep.mubr.msk.bf16.mxu0 %vm578_vm2, %v3024_v19  ;;  %v1477_v18 = vrot.slane %v5320_v46, 1  ;;  %v3060_v19 = vsel %vm2989_vm6, %v3050_v55, %v3059_v59  ;;  %v5324_v46 = vld [vmem:[%s5810_s28 + $0x30] sm:$0xff]   ;;  %v3148_v48 = vrot.slane %v3146_v61, 3  ;;  %v3442_v61 = vrot.slane %v6193_v21, 3 }
 0x163   : > { %v3068_v24 = vor.u32 %v3067_v40, %v3064_v0  ;;  %v3094_v51 = vrot.slane %v3092_v62, 3  ;;  %v5325_v62 = vld [vmem:[%s5810_s28 + $0x38] sm:$0xff]   ;;  %v3444_v21 = vrot.slane %v6205_v53, 3 }
 0x164   : > { %v1478_v29 = vsel %vm1036_vm5, %v1476_v43, %v1477_v18  ;;  %v3103_v43 = vrot.slane %v3101_v4, 3  ;;  %v1487_v30 = vrot.slane %v5325_v62, 1 }
 0x165   : > { %v3069_v35 = vsel %vm2989_vm6, %v3059_v59, %v3068_v24  ;;  %v3095_v59 = vor.u32 %v3094_v51, %v3091_v58  ;;  %v3130_v58 = vrot.slane %v3128_v39, 3  ;;  %v5329_v39 = vld [vmem:[%s5810_s28 + $0x58] sm:$0xff]  }
 0x166   : > { %4623 = vmatmul.mubr.msk.bf16.gmra.mrb[24].mxu1 %vm578_vm2, %v1065_v27  ;;  %v1073_v27 = vsel %vm1036_vm5, %v1070_v1, %v1072_v17  ;;  %v1481_v1 = vrot.slane %v5322_v12, 1  ;;  %v5323_v17 = vld [vmem:[%s5810_s28 + $0x28] sm:$0xff]   ;;  %v1495_v62 = vrot.slane %v5329_v39, 1  ;;  %v1898_v39 = vshrl.u32 %v6115_v60, 16 }
 0x167   : > { %4626 = vmatprep.mubr.msk.bf16.mxu1 %vm578_vm2, %v1067_v49  ;;  %v3080_v49 = vshrl.u32 %v6263_v38, 16  ;;  %v1483_v0 = vrot.slane %v5323_v17, 1  ;;  %v1491_v17 = vrot.slane %v5327_v2, 1  ;;  %v1503_v2 = vrot.slane %v6133_v11, 1 }
 0x168   : > { %v1482_v55 = vsel %vm1036_vm5, %v1479_v57, %v1481_v1 }
 0x169   : > { %4793 = vmatmul.mubr.msk.bf16.gmra.mrb[4].mxu0 %vm578_vm2, %v3033_v34  ;;  %v3082_v34 = vrot.slane %v3080_v49, 2  ;;  %v3119_v49 = vshll.u32 %v6303_v14, 16 }
 0x16a   : > { %4796 = vmatprep.mubr.msk.bf16.mxu0 %vm578_vm2, %v3042_v22  ;;  %v3078_v22 = vsel %vm2989_vm6, %v3068_v24, %v3077_v37 }
 0x16b   : > { %v3086_v28 = vor.u32 %v3085_v50, %v3082_v34  ;;  %v3121_v34 = vrot.slane %v3119_v49, 3  ;;  %v5326_v50 = vld [vmem:[%s5810_s28 + $0x40] sm:$0xff]  }
 0x16c   : > { %v1489_v12 = vrot.slane %v5326_v50, 1 }
 0x16e   : > { %4627 = vmatmul.mubr.msk.bf16.gmra.mrb[28].mxu1 %vm578_vm2, %v1069_v26  ;;  %v1480_v26 = vsel %vm1036_vm5, %v1477_v18, %v1479_v57  ;;  %v1485_v18 = vrot.slane %v5324_v46, 1 }
 0x16f   : > { %4630 = vmatprep.mubr.msk.bf16.mxu1 %vm578_vm2, %v1071_v56  ;;  %v3098_v56 = vshrl.u32 %v6283_v44, 16 }
 0x170   : > { %v1488_v51 = vsel %vm1036_vm5, %v1485_v18, %v1487_v30 }
 0x171   : > { %4797 = vmatmul.mubr.msk.bf16.gmra.mrb[8].mxu0 %vm578_vm2, %v3051_v42  ;;  %v3087_v42 = vsel %vm2989_vm6, %v3077_v37, %v3086_v28  ;;  %v3100_v40 = vrot.slane %v3098_v56, 2  ;;  %v3125_v37 = vshrl.u32 %v6308_v45, 16  ;;  %v3137_v56 = vshll.u32 %v6321_v52, 16 }
 0x172   : > { %4800 = vmatprep.mubr.msk.bf16.mxu0 %vm578_vm2, %v3060_v19  ;;  %v3096_v19 = vsel %vm2989_vm6, %v3086_v28, %v3095_v59  ;;  %v1490_v28 = vsel %vm1036_vm5, %v1487_v30, %v1489_v12 }
 0x173   : > { %v3104_v24 = vor.u32 %v3103_v43, %v3100_v40  ;;  %v3139_v40 = vrot.slane %v3137_v56, 3  ;;  %v5328_v43 = vld [vmem:[%s5810_s28 + $0x50] sm:$0xff]  }
 0x174   : > { %v1493_v46 = vrot.slane %v5328_v43, 1  ;;  %v3446_v43 = vrot.slane %v6211_v6, 3 }
 0x175   : > { %v3105_v57 = vsel %vm2989_vm6, %v3095_v59, %v3104_v24  ;;  %v3143_v59 = vshrl.u32 %v6325_v15, 16 }
 0x176   : > { %4631 = vmatmul.mubr.msk.bf16.gmra.mrb[32].mxu1 %vm578_vm2, %v1073_v27  ;;  %v1484_v27 = vsel %vm1036_vm5, %v1481_v1, %v1483_v0  ;;  %v3114_v1 = vsel %vm2989_vm6, %v3104_v24, %v3113_v16  ;;  %v3447_v53 = vsel %vm3436_vm7, %v3444_v21, %v3446_v43 }
 0x177   : > { %4636 = vmatprep.mubr.msk.bf16.mxu1 %vm578_vm2, %v1478_v29  ;;  %v3116_v29 = vshrl.u32 %v6303_v14, 16  ;;  %v3145_v7 = vrot.slane %v3143_v59, 2 }
 0x179   : > { %4801 = vmatmul.mubr.msk.bf16.gmra.mrb[12].mxu0 %vm578_vm2, %v3069_v35  ;;  %v3118_v35 = vrot.slane %v3116_v29, 2 }
 0x17a   : > { %4804 = vmatprep.mubr.msk.bf16.mxu0 %vm578_vm2, %v3078_v22  ;;  %v3127_v22 = vrot.slane %v3125_v37, 2  ;;  %v3430_v37 = vld [vmem:[%s5810_s28 + $0x10] sm:$0x8] }
 0x17c   : > { %v3131_v4 = vor.u32 %v3130_v58, %v3127_v22 }
 0x17e   : > { %4637 = vmatmul.mubr.msk.bf16.vlgmr.msra.gmra.mrb[0].mxu1 %vm578_vm2, %v1480_v26  ;;  %v3122_v26 = vor.u32 %v3121_v34, %v3118_v35  ;;  %v1497_v34 = vrot.slane %v6099_v25, 1 }
 0x17f   : > { %4640 = vmatprep.mubr.msk.bf16.mxu1 %vm578_vm2, %v1482_v55  ;;  %4863 = vmatpush3.bf16.msra.mxu1 %v5832_v3  ;;  %v1486_v3 = vsel %vm1036_vm5, %v1483_v0, %v1485_v18  ;;  %v3134_v55 = vshrl.u32 %v6321_v52, 16  ;;  %v6461_v18 = vld [vmem:[%s5810_s28 + $0xa0] ss:$0 sps:$4 sm:$0x77]  }
 0x180   : > { %v3123_v0 = vsel %vm2989_vm6, %v3113_v16, %v3122_v26  ;;  %v3152_v29 = vshrl.u32 %v6461_v18, 16  ;;  %v3155_v49 = vshll.u32 %v6461_v18, 16  ;;  %v3149_v16 = vor.u32 %v3148_v48, %v3145_v7 }
 0x181   : > { %4805 = vmatmul.mubr.msk.bf16.gmra.mrb[16].mxu0 %vm578_vm2, %v3087_v42  ;;  %v3136_v42 = vrot.slane %v3134_v55, 2  ;;  %v1498_v58 = vsel %vm1036_vm5, %v1495_v62, %v1497_v34  ;;  %v1501_v55 = vrot.slane %v6121_v31, 1  ;;  %v1509_v7 = vrot.slane %v6153_v9, 1 }
 0x182   : > { %4808 = vmatprep.mubr.msk.bf16.mxu0 %vm578_vm2, %v3096_v19  ;;  %v3132_v19 = vsel %vm2989_vm6, %v3122_v26, %v3131_v4  ;;  %v3157_v35 = vrot.slane %v3155_v49, 3  ;;  %v3438_v26 = vrot.slane %v6176_v41, 3  ;;  %v3440_v41 = vrot.slane %v6189_v47, 3 }
 0x183   : > { %v3140_v24 = vor.u32 %v3139_v40, %v3136_v42  ;;  %v1504_v47 = vsel %vm1036_vm5, %v1501_v55, %v1503_v2  ;;  %v1889_v48 = vshrl.u32 %v6099_v25, 16 }
 0x184   : > { %v3443_v42 = vsel %vm3436_vm7, %v3440_v41, %v3442_v61 }
 0x185   : > { %v3141_v30 = vsel %vm2989_vm6, %v3131_v4, %v3140_v24  ;;  %v3150_v50 = vsel %vm2989_vm6, %v3140_v24, %v3149_v16  ;;  %v5319_v24 = vld [vmem:[%s5810_s28 + $0x98] ss:$0 sps:$4 sm:$0x11]   ;;  %v1891_v49 = vrot.slane %v1889_v48, 1 }
 0x186   : > { %4641 = vmatmul.mubr.msk.bf16.gmra.mrb[4].mxu1 %vm578_vm2, %v1484_v27  ;;  %v1492_v27 = vsel %vm1036_vm5, %v1489_v12, %v1491_v17  ;;  %v4324_v12 = vcombine.low %v3430_v37, %v6163_v33  ;;  %v3450_v37 = vrot.slane %v6231_v20, 3 }
 0x187   : > { %4644 = vmatprep.mubr.msk.bf16.mxu1 %vm578_vm2, %v1486_v3  ;;  %v1494_v3 = vsel %vm1036_vm5, %v1491_v17, %v1493_v46  ;;  %v3441_v17 = vsel %vm3436_vm7, %v3438_v26, %v3440_v41 }
 0x189   : > { %4809 = vmatmul.mubr.msk.bf16.gmra.mrb[20].mxu0 %vm578_vm2, %v3105_v57  ;;  %v3154_v57 = vrot.slane %v3152_v29, 2 }
 0x18a   : > { %4812 = vmatprep.mubr.msk.bf16.mxu0 %vm578_vm2, %v3114_v1  ;;  %v1496_v1 = vsel %vm1036_vm5, %v1493_v46, %v1495_v62  ;;  %v1507_v46 = vrot.slane %v6149_v23, 1  ;;  %v1901_v62 = vshll.u32 %v6115_v60, 16 }
 0x18b   : > { %v3158_v22 = vor.u32 %v3157_v35, %v3154_v57  ;;  %v1910_v35 = vshll.u32 %v6121_v31, 16 }
 0x18c   : > { %v1510_v29 = vsel %vm1036_vm5, %v1507_v46, %v1509_v7 }
 0x18d   : > { %v3159_v33 = vsel %vm2989_vm6, %v3149_v16, %v3158_v22 }
 0x18e   : > { %4645 = vmatmul.mubr.msk.bf16.gmra.mrb[8].mxu1 %vm578_vm2, %v1488_v51  ;;  %v3437_v51 = vrot.slane %v4324_v12, 3  ;;  %v1903_v12 = vrot.slane %v1901_v62, 2 }
 0x18f   : > { %4648 = vmatprep.mubr.msk.bf16.mxu1 %vm578_vm2, %v1490_v28  ;;  %v1499_v28 = vrot.slane %v6115_v60, 1 }
 0x190   : > { %v3439_v56 = vsel %vm3436_vm7, %v3437_v51, %v3438_v26  ;;  %v3454_v51 = vrot.slane %v6250_v5, 3  ;;  %v1916_v26 = vshrl.u32 %v6133_v11, 16 }
 0x191   : > { %4813 = vmatmul.mubr.msk.bf16.gmra.mrb[24].mxu0 %vm578_vm2, %v3123_v0  ;;  %v1500_v4 = vsel %vm1036_vm5, %v1497_v34, %v1499_v28  ;;  %v1502_v59 = vsel %vm1036_vm5, %v1499_v28, %v1501_v55  ;;  %v1505_v0 = vrot.slane %v6137_v13, 1  ;;  %v1919_v28 = vshll.u32 %v6133_v11, 16 }
 0x192   : > { %4816 = vmatprep.mubr.msk.bf16.mxu0 %vm578_vm2, %v3132_v19  ;;  %v3445_v19 = vsel %vm3436_vm7, %v3442_v61, %v3444_v21 }
 0x193   : > { %v1506_v40 = vsel %vm1036_vm5, %v1503_v2, %v1505_v0  ;;  %v1508_v6 = vsel %vm1036_vm5, %v1505_v0, %v1507_v46  ;;  %v1921_v41 = vrot.slane %v1919_v28, 2  ;;  %v1934_v0 = vshrl.u32 %v6149_v23, 16 }
 0x195   : > { %v1936_v46 = vrot.slane %v1934_v0, 1 }
 0x196   : > { %4649 = vmatmul.mubr.msk.bf16.gmra.mrb[12].mxu1 %vm578_vm2, %v1492_v27  ;;  %v1892_v27 = vshll.u32 %v6099_v25, 16  ;;  %v1511_v25 = vrot.slane %v5319_v24, 1  ;;  %v1955_v24 = vshll.u32 %v6169_v36, 16 }
 0x197   : > { %4652 = vmatprep.mubr.msk.bf16.mxu1 %vm578_vm2, %v1494_v3  ;;  %v3448_v3 = vrot.slane %v6227_v63, 3  ;;  %v1907_v63 = vshrl.u32 %v6121_v31, 16 }
 0x198   : > { %v1894_v16 = vrot.slane %v1892_v27, 2  ;;  %v1512_v20 = vsel %vm1036_vm5, %v1509_v7, %v1511_v25  ;;  %v3460_v7 = vrot.slane %v6283_v44, 3 }
 0x199   : > { %4817 = vmatmul.mubr.msk.bf16.gmra.mrb[28].mxu0 %vm578_vm2, %v3141_v30  ;;  %v3449_v30 = vsel %vm3436_vm7, %v3446_v43, %v3448_v3  ;;  %v3451_v34 = vsel %vm3436_vm7, %v3448_v3, %v3450_v37  ;;  %v1909_v22 = vrot.slane %v1907_v63, 1  ;;  %v3470_v63 = vrot.slane %v6325_v15, 3 }
 0x19a   : > { %4820 = vmatprep.mubr.msk.bf16.mxu0 %vm578_vm2, %v3150_v50  ;;  %v1895_v57 = vor.u32 %v1894_v16, %v1891_v49  ;;  %v1900_v50 = vrot.slane %v1898_v39, 1  ;;  %v3466_v39 = vrot.slane %v6308_v45, 3 }
 0x19c   : > { %v1896_v60 = vsel %vm1789_vm3, %v6012_v10, %v1895_v57  ;;  %v1904_v31 = vor.u32 %v1903_v12, %v1900_v50  ;;  %v1928_v10 = vshll.u32 %v6137_v13, 16 }
 0x19e   : > { %4653 = vmatmul.mubr.msk.bf16.gmra.mrb[16].mxu1 %vm578_vm2, %v1496_v1  ;;  %v3452_v1 = vrot.slane %v6245_v32, 3  ;;  %v1925_v32 = vshrl.u32 %v6137_v13, 16  ;;  %v1905_v5 = vsel %vm1789_vm3, %v1895_v57, %v1904_v31  ;;  %v1930_v2 = vrot.slane %v1928_v10, 2 }
 0x19f   : > { %4656 = vmatprep.mubr.msk.bf16.mxu1 %vm578_vm2, %v1498_v58  ;;  %v1912_v58 = vrot.slane %v1910_v35, 2 }
 0x1a0   : > { %v1927_v61 = vrot.slane %v1925_v32, 1 }
 0x1a1   : > { %4821 = vmatmul.mubr.msk.bf16.gmra.mrb[32].mxu0 %vm578_vm2, %v3159_v33  ;;  %v3453_v33 = vsel %vm3436_vm7, %v3450_v37, %v3452_v1  ;;  %v1913_v55 = vor.u32 %v1912_v58, %v1909_v22  ;;  %v3464_v37 = vrot.slane %v6303_v14, 3  ;;  %v3468_v14 = vrot.slane %v6321_v52, 3 }
 0x1a2   : > { %4826 = vmatprep.mubr.msk.bf16.mxu0 %vm578_vm2, %v3439_v56  ;;  %v3455_v56 = vsel %vm3436_vm7, %v3452_v1, %v3454_v51  ;;  %v1931_v21 = vor.u32 %v1930_v2, %v1927_v61  ;;  %v6620_v2 = vld [vmem:[#allocation8] ss:$0 sm:$0xff] }
 0x1a3   : > { %v1914_v11 = vsel %vm1789_vm3, %v1904_v31, %v1913_v55  ;;  %v3469_v45 = vsel %vm3436_vm7, %v3466_v39, %v3468_v14  ;;  %v3471_v35 = vsel %vm3436_vm7, %v3468_v14, %v3470_v63 }
 0x1a6   : > { %4657 = vmatmul.mubr.msk.bf16.gmra.mrb[20].mxu1 %vm578_vm2, %v1500_v4  ;;  %v1918_v4 = vrot.slane %v1916_v26, 1 }
 0x1a7   : > { %4660 = vmatprep.mubr.msk.bf16.mxu1 %vm578_vm2, %v1502_v59  ;;  %v3456_v59 = vrot.slane %v6263_v38, 3  ;;  %v1943_v38 = vshrl.u32 %v6153_v9, 16 }
 0x1a8   : > { %v1922_v13 = vor.u32 %v1921_v41, %v1918_v4 }
 0x1a9   : > { %4827 = vmatmul.mubr.msk.bf16.vlgmr.msra.gmra.mrb[0].mxu0 %vm578_vm2, %v3441_v17  ;;  %v3458_v17 = vrot.slane %v6268_v8, 3  ;;  %v1945_v48 = vrot.slane %v1943_v38, 1 }
 0x1aa   : > { %4830 = vmatprep.mubr.msk.bf16.mxu0 %vm578_vm2, %v3443_v42  ;;  %v1937_v42 = vshll.u32 %v6149_v23, 16  ;;  %v1923_v8 = vsel %vm1789_vm3, %v1913_v55, %v1922_v13  ;;  %v1932_v23 = vsel %vm1789_vm3, %v1922_v13, %v1931_v21 }
 0x1ab   : > { %v3459_v43 = vsel %vm3436_vm7, %v3456_v59, %v3458_v17  ;;  %v3461_v3 = vsel %vm3436_vm7, %v3458_v17, %v3460_v7 }
 0x1ae   : > { %4661 = vmatmul.mubr.msk.bf16.gmra.mrb[24].mxu1 %vm578_vm2, %v1504_v47  ;;  %v3457_v47 = vsel %vm3436_vm7, %v3454_v51, %v3456_v59  ;;  %v6618_v59 = vld [vmem:[#allocation7] ss:$0 sm:$0xff] }
 0x1af   : > { %4664 = vmatprep.mubr.msk.bf16.mxu1 %vm578_vm2, %v1506_v40  ;;  %v1946_v40 = vshll.u32 %v6153_v9, 16 }
 0x1b1   : > { %4831 = vmatmul.mubr.msk.bf16.gmra.mrb[4].mxu0 %vm578_vm2, %v3445_v19  ;;  %v1939_v19 = vrot.slane %v1937_v42, 2  ;;  %v1948_v27 = vrot.slane %v1946_v40, 2 }
 0x1b2   : > { %4834 = vmatprep.mubr.msk.bf16.mxu0 %vm578_vm2, %v3447_v53  ;;  %v3462_v53 = vrot.slane %v6290_v54, 3  ;;  %v1957_v54 = vrot.slane %v1955_v24, 2 }
 0x1b3   : > { %v1940_v9 = vor.u32 %v1939_v19, %v1936_v46 }
 0x1b4   : > { %v3463_v44 = vsel %vm3436_vm7, %v3460_v7, %v3462_v53  ;;  %v3465_v62 = vsel %vm3436_vm7, %v3462_v53, %v3464_v37 }
 0x1b5   : > { %v1941_v49 = vsel %vm1789_vm3, %v1931_v21, %v1940_v9  ;;  %v6624_v21 = vld [vmem:[#allocation10] ss:$0 sm:$0xff] }
 0x1b6   : > { %4665 = vmatmul.mubr.msk.bf16.gmra.mrb[28].mxu1 %vm578_vm2, %v1508_v6  ;;  %v1952_v6 = vshrl.u32 %v6169_v36, 16 }
 0x1b7   : > { %4668 = vmatprep.mubr.msk.bf16.mxu1 %vm578_vm2, %v1510_v29  ;;  %v1949_v29 = vor.u32 %v1948_v27, %v1945_v48 }
 0x1b8   : > { %v1954_v16 = vrot.slane %v1952_v6, 1 }
 0x1b9   : > { %4835 = vmatmul.mubr.msk.bf16.gmra.mrb[8].mxu0 %vm578_vm2, %v3449_v30  ;;  %v1950_v25 = vsel %vm1789_vm3, %v1940_v9, %v1949_v29  ;;  %v3467_v30 = vsel %vm3436_vm7, %v3464_v37, %v3466_v39 }
 0x1ba   : > { %4838 = vmatprep.mubr.msk.bf16.mxu0 %vm578_vm2, %v3451_v34  ;;  %v1958_v36 = vor.u32 %v1957_v54, %v1954_v16  ;;  %v3472_v34 = vrot.slane %v6461_v18, 3 }
 0x1bc   : > { %v1959_v57 = vsel %vm1789_vm3, %v1949_v29, %v1958_v36 }
 0x1be   : > { %4669 = vmatmul.mubr.msk.bf16.gmra.mrb[32].mxu1 %vm578_vm2, %v1512_v20  ;;  %v3473_v20 = vsel %vm3436_vm7, %v3470_v63, %v3472_v34 }
 0x1bf   : > { %4694 = vmatprep.mubr.msk.bf16.mxu1 %vm578_vm2, %v1896_v60 }
 0x1c1   : > { %4839 = vmatmul.mubr.msk.bf16.gmra.mrb[12].mxu0 %vm578_vm2, %v3453_v33 }
 0x1c2   : > { %4842 = vmatprep.mubr.msk.bf16.mxu0 %vm578_vm2, %v3455_v56 }
 0x1c6   : > { %4695 = vmatmul.mubr.msk.bf16.vlgmr.msra.gmra.mrb[20].mxu1 %vm578_vm2, %v1905_v5 }
 0x1c7   : > { %4698 = vmatprep.mubr.msk.bf16.mxu1 %vm578_vm2, %v1914_v11 }
 0x1c9   : > { %4843 = vmatmul.mubr.msk.bf16.gmra.mrb[16].mxu0 %vm578_vm2, %v3457_v47 }
 0x1ca   : > { %4846 = vmatprep.mubr.msk.bf16.mxu0 %vm578_vm2, %v3459_v43 }
 0x1ce   : > { %4699 = vmatmul.mubr.msk.bf16.gmra.mrb[24].mxu1 %vm578_vm2, %v1923_v8 }
 0x1cf   : > { %4702 = vmatprep.mubr.msk.bf16.mxu1 %vm578_vm2, %v1932_v23 }
 0x1d1   : > { %4847 = vmatmul.mubr.msk.bf16.gmra.mrb[20].mxu0 %vm578_vm2, %v3461_v3 }
 0x1d2   : > { %4850 = vmatprep.mubr.msk.bf16.mxu0 %vm578_vm2, %v3463_v44 }
 0x1d6   : > { %4703 = vmatmul.mubr.msk.bf16.gmra.mrb[28].mxu1 %vm578_vm2, %v1941_v49 }
 0x1d7   : > { %4706 = vmatprep.mubr.msk.bf16.mxu1 %vm578_vm2, %v1950_v25 }
 0x1d9   : > { %4851 = vmatmul.mubr.msk.bf16.gmra.mrb[24].mxu0 %vm578_vm2, %v3465_v62 }
 0x1da   : > { %4854 = vmatprep.mubr.msk.bf16.mxu0 %vm578_vm2, %v3467_v30 }
 0x1de   : > { %4707 = vmatmul.mubr.msk.bf16.gmra.mrb[32].mxu1 %vm578_vm2, %v1959_v57 }
 0x1e1   : > { %4855 = vmatmul.mubr.msk.bf16.gmra.mrb[28].mxu0 %vm578_vm2, %v3469_v45 }
 0x1e2   : > { %4858 = vmatprep.mubr.msk.bf16.mxu0 %vm578_vm2, %v3471_v35 }
 0x1e9   : > { %4859 = vmatmul.mubr.msk.bf16.gmra.mrb[32].mxu0 %vm578_vm2, %v3473_v20 }
 0x251   : > { %v4638_v50 = vpop.f32.mrb[0].mxu1 }
 0x252   : > { %v1604_v52 = vpop.f32.mrb[1].mxu1 }
 0x253   : > { %v4639_v12 = vpop.f32.mrb[2].mxu1 }
 0x254   : > { %v1607_v15 = vpop.f32.mrb[3].mxu1 }
 0x259   : > { %v4642_v1 = vpop.f32.mrb[4].mxu1 }
 0x25a   : > { %v1620_v60 = vpop.f32.mrb[5].mxu1 }
 0x25b   : > { %v4643_v22 = vpop.f32.mrb[6].mxu1 }
 0x25c   : > { %v1623_v58 = vpop.f32.mrb[7].mxu1 }
 0x261   : > { %v6594_v51 = vpop.f32.mrb[8].mxu1 }
 0x262   : > { %v6596_v31 = vpop.f32.mrb[9].mxu1 }
 0x263   : > { %v6598_v26 = vpop.f32.mrb[10].mxu1 }
 0x264   : > { %v6600_v28 = vpop.f32.mrb[11].mxu1 }
 0x269   : > { %v6602_v18 = vpop.f32.mrb[12].mxu1 }
 0x26a   : > { %v6604_v33 = vpop.f32.mrb[13].mxu1 }
 0x26b   : > { %v6606_v55 = vpop.f32.mrb[14].mxu1 }
 0x26c   : > { %v6608_v32 = vpop.f32.mrb[15].mxu1 }
 0x271   : > { %v6610_v10 = vpop.f32.mrb[16].mxu1 }
 0x272   : > { %v6612_v56 = vpop.f32.mrb[17].mxu1 }
 0x273   : > { %v6614_v5 = vpop.f32.mrb[18].mxu1 }
 0x274   : > { %v6616_v4 = vpop.f32.mrb[19].mxu1 }
 0x27c   : > { %v4828_v41 = vpop.f32.mrb[0].mxu0 }
 0x27d   : > { %v4864_v11 = vadd.f32 %v4828_v41, %v4638_v50  ;;  %v3565_v61 = vpop.f32.mrb[1].mxu0 }
 0x27e   : > { %v4865_v17 = vadd.f32 %v3565_v61, %v1604_v52  ;;  %v4829_v13 = vpop.f32.mrb[2].mxu0 }
 0x27f   : > { %v3755_v0 = vmul.f32 %v4864_v11, %v6618_v59  ;;  %v4866_v42 = vadd.f32 %v4829_v13, %v4639_v12  ;;  %v3568_v47 = vpop.f32.mrb[3].mxu0 }
 0x280   : > { %v3753_v38 = vmul.f32 %v4865_v17, %v6618_v59  ;;  %v4867_v40 = vadd.f32 %v3568_v47, %v1607_v15 }
 0x281   : > { %v3797_v43 = vadd.f32 %v6620_v2, %v3755_v0  ;;  %v3756_v8 = vmul.f32 %v4866_v42, %v6618_v59 }
 0x282   : > { %v3795_v46 = vadd.f32 %v6620_v2, %v3753_v38  ;;  %v3754_v19 = vmul.f32 %v4867_v40, %v6618_v59 }
 0x283   : > { %vm3833_vm8 = vcmp.ge.f32.partialorder %v3797_v43, 0.0  ;;  %v3875_v7 = vmul.f32 %v6624_v21, %v3797_v43  ;;  %v3798_v23 = vadd.f32 %v6620_v2, %v3756_v8 }
 0x284   : > { %vm3831_vm9 = vcmp.ge.f32.partialorder %v3795_v46, 0.0  ;;  %v3873_v48 = vmul.f32 %v6624_v21, %v3795_v46  ;;  %v3796_v27 = vadd.f32 %v6620_v2, %v3754_v19  ;;  %v4832_v53 = vpop.f32.mrb[4].mxu0 }
 0x285   : > { %v3911_v9 = vsel %vm3833_vm8, %v3797_v43, %v3875_v7  ;;  %vm3834_vm10 = vcmp.ge.f32.partialorder %v3798_v23, 0.0  ;;  %v3876_v6 = vmul.f32 %v6624_v21, %v3798_v23  ;;  %v4868_v24 = vadd.f32 %v4832_v53, %v4642_v1  ;;  %v3581_v3 = vpop.f32.mrb[5].mxu0 }
 0x286   : > { %3947 = vst [vmem:[%s6636_s26 + $0x10] sm:$0xff] %v3911_v9  ;;  %v3909_v29 = vsel %vm3831_vm9, %v3795_v46, %v3873_v48  ;;  %vm3832_vm11 = vcmp.ge.f32.partialorder %v3796_v27, 0.0  ;;  %v3874_v44 = vmul.f32 %v6624_v21, %v3796_v27  ;;  %v4869_v49 = vadd.f32 %v3581_v3, %v1620_v60  ;;  %v4833_v16 = vpop.f32.mrb[6].mxu0 }
 0x287   : > { %3945 = vst [vmem:[%s6636_s26] sm:$0xff] %v3909_v29  ;;  %v3912_v54 = vsel %vm3834_vm10, %v3798_v23, %v3876_v6  ;;  %v3759_v37 = vmul.f32 %v4868_v24, %v6618_v59  ;;  %v4870_v25 = vadd.f32 %v4833_v16, %v4643_v22  ;;  %v3584_v39 = vpop.f32.mrb[7].mxu0 }
 0x288   : > { %3948 = vst [vmem:[%s6636_s26 + $0x18] sm:$0xff] %v3912_v54  ;;  %v3910_v36 = vsel %vm3832_vm11, %v3796_v27, %v3874_v44  ;;  %v3757_v62 = vmul.f32 %v4869_v49, %v6618_v59  ;;  %v4871_v30 = vadd.f32 %v3584_v39, %v1623_v58 }
 0x289   : > { %3946 = vst [vmem:[%s6636_s26 + $0x8] sm:$0xff] %v3910_v36  ;;  %v3801_v57 = vadd.f32 %v6620_v2, %v3759_v37  ;;  %v3760_v14 = vmul.f32 %v4870_v25, %v6618_v59 }
 0x28a   : > { %v3799_v63 = vadd.f32 %v6620_v2, %v3757_v62  ;;  %v3758_v45 = vmul.f32 %v4871_v30, %v6618_v59 }
 0x28b   : > { %vm3837_vm12 = vcmp.ge.f32.partialorder %v3801_v57, 0.0  ;;  %v3879_v35 = vmul.f32 %v6624_v21, %v3801_v57  ;;  %v3802_v34 = vadd.f32 %v6620_v2, %v3760_v14 }
 0x28c   : > { %vm3835_vm13 = vcmp.ge.f32.partialorder %v3799_v63, 0.0  ;;  %v3877_v20 = vmul.f32 %v6624_v21, %v3799_v63  ;;  %v3800_v50 = vadd.f32 %v6620_v2, %v3758_v45  ;;  %v4836_v52 = vpop.f32.mrb[8].mxu0 }
 0x28d   : > { %v3915_v12 = vsel %vm3837_vm12, %v3801_v57, %v3879_v35  ;;  %vm3838_vm14 = vcmp.ge.f32.partialorder %v3802_v34, 0.0  ;;  %v3880_v15 = vmul.f32 %v6624_v21, %v3802_v34  ;;  %v4872_v1 = vadd.f32 %v4836_v52, %v6594_v51  ;;  %v3597_v60 = vpop.f32.mrb[9].mxu0 }
 0x28e   : > { %3951 = vst [vmem:[%s6636_s26 + $0x30] sm:$0xff] %v3915_v12  ;;  %v3913_v22 = vsel %vm3835_vm13, %v3799_v63, %v3877_v20  ;;  %vm3836_vm15 = vcmp.ge.f32.partialorder %v3800_v50, 0.0  ;;  %v3878_v58 = vmul.f32 %v6624_v21, %v3800_v50  ;;  %v4873_v41 = vadd.f32 %v3597_v60, %v6596_v31  ;;  %v4837_v11 = vpop.f32.mrb[10].mxu0 }
 0x28f   : > { %3949 = vst [vmem:[%s6636_s26 + $0x20] sm:$0xff] %v3913_v22  ;;  %v3916_v61 = vsel %vm3838_vm14, %v3802_v34, %v3880_v15  ;;  %v3763_v17 = vmul.f32 %v4872_v1, %v6618_v59  ;;  %v4874_v13 = vadd.f32 %v4837_v11, %v6598_v26  ;;  %v3600_v0 = vpop.f32.mrb[11].mxu0 }
 0x290   : > { %3952 = vst [vmem:[%s6636_s26 + $0x38] sm:$0xff] %v3916_v61  ;;  %v3914_v42 = vsel %vm3836_vm15, %v3800_v50, %v3878_v58  ;;  %v3761_v51 = vmul.f32 %v4873_v41, %v6618_v59  ;;  %v4875_v47 = vadd.f32 %v3600_v0, %v6600_v28 }
 0x291   : > { %3950 = vst [vmem:[%s6636_s26 + $0x28] sm:$0xff] %v3914_v42  ;;  %v3805_v38 = vadd.f32 %v6620_v2, %v3763_v17  ;;  %v3764_v31 = vmul.f32 %v4874_v13, %v6618_v59 }
 0x292   : > { %v3803_v40 = vadd.f32 %v6620_v2, %v3761_v51  ;;  %v3762_v43 = vmul.f32 %v4875_v47, %v6618_v59 }
 0x293   : > { %vm3841_vm0 = vcmp.ge.f32.partialorder %v3805_v38, 0.0  ;;  %v3883_v26 = vmul.f32 %v6624_v21, %v3805_v38  ;;  %v3806_v8 = vadd.f32 %v6620_v2, %v3764_v31 }
 0x294   : > { %vm3839_vm1 = vcmp.ge.f32.partialorder %v3803_v40, 0.0  ;;  %v3881_v46 = vmul.f32 %v6624_v21, %v3803_v40  ;;  %v3804_v28 = vadd.f32 %v6620_v2, %v3762_v43  ;;  %v4840_v19 = vpop.f32.mrb[12].mxu0 }
 0x295   : > { %v3919_v7 = vsel %vm3841_vm0, %v3805_v38, %v3883_v26  ;;  %vm3842_vm2 = vcmp.ge.f32.partialorder %v3806_v8, 0.0  ;;  %v3884_v23 = vmul.f32 %v6624_v21, %v3806_v8  ;;  %v4876_v48 = vadd.f32 %v4840_v19, %v6602_v18  ;;  %v3613_v27 = vpop.f32.mrb[13].mxu0 }
 0x296   : > { %3955 = vst [vmem:[%s6636_s26 + $0x50] sm:$0xff] %v3919_v7  ;;  %v3917_v53 = vsel %vm3839_vm1, %v3803_v40, %v3881_v46  ;;  %vm3840_vm3 = vcmp.ge.f32.partialorder %v3804_v28, 0.0  ;;  %v3882_v9 = vmul.f32 %v6624_v21, %v3804_v28  ;;  %v4877_v6 = vadd.f32 %v3613_v27, %v6604_v33  ;;  %v4841_v24 = vpop.f32.mrb[14].mxu0 }
 0x297   : > { %3953 = vst [vmem:[%s6636_s26 + $0x40] sm:$0xff] %v3917_v53  ;;  %v3920_v3 = vsel %vm3842_vm2, %v3806_v8, %v3884_v23  ;;  %v3767_v29 = vmul.f32 %v4876_v48, %v6618_v59  ;;  %v4878_v44 = vadd.f32 %v4841_v24, %v6606_v55  ;;  %v3616_v49 = vpop.f32.mrb[15].mxu0 }
 0x298   : > { %3956 = vst [vmem:[%s6636_s26 + $0x58] sm:$0xff] %v3920_v3  ;;  %v3918_v18 = vsel %vm3840_vm3, %v3804_v28, %v3882_v9  ;;  %v3765_v54 = vmul.f32 %v4877_v6, %v6618_v59  ;;  %v4879_v37 = vadd.f32 %v3616_v49, %v6608_v32 }
 0x299   : > { %v4696_v16 = vpop.f32.mrb[20].mxu1  ;;  %3954 = vst [vmem:[%s6636_s26 + $0x48] sm:$0xff] %v3918_v18  ;;  %v3809_v39 = vadd.f32 %v6620_v2, %v3767_v29  ;;  %v3768_v33 = vmul.f32 %v4878_v44, %v6618_v59 }
 0x29a   : > { %v2131_v25 = vpop.f32.mrb[21].mxu1  ;;  %v3807_v62 = vadd.f32 %v6620_v2, %v3765_v54  ;;  %v3766_v55 = vmul.f32 %v4879_v37, %v6618_v59 }
 0x29b   : > { %v4697_v36 = vpop.f32.mrb[22].mxu1  ;;  %vm3845_vm4 = vcmp.ge.f32.partialorder %v3809_v39, 0.0  ;;  %v3887_v57 = vmul.f32 %v6624_v21, %v3809_v39  ;;  %v3810_v14 = vadd.f32 %v6620_v2, %v3768_v33 }
 0x29c   : > { %v6689_v30 = vpop.f32.mrb[23].mxu1  ;;  %vm3843_vm5 = vcmp.ge.f32.partialorder %v3807_v62, 0.0  ;;  %v3885_v32 = vmul.f32 %v6624_v21, %v3807_v62  ;;  %v3808_v63 = vadd.f32 %v6620_v2, %v3766_v55  ;;  %v4844_v45 = vpop.f32.mrb[16].mxu0 }
 0x29d   : > { %v3923_v35 = vsel %vm3845_vm4, %v3809_v39, %v3887_v57  ;;  %vm3846_vm6 = vcmp.ge.f32.partialorder %v3810_v14, 0.0  ;;  %v3888_v34 = vmul.f32 %v6624_v21, %v3810_v14  ;;  %v4880_v20 = vadd.f32 %v4844_v45, %v6610_v10  ;;  %v3629_v50 = vpop.f32.mrb[17].mxu0 }
 0x29e   : > { %3959 = vst [vmem:[%s6636_s26 + $0x70] sm:$0xff] %v3923_v35  ;;  %v3921_v52 = vsel %vm3843_vm5, %v3807_v62, %v3885_v32  ;;  %vm3844_vm7 = vcmp.ge.f32.partialorder %v3808_v63, 0.0  ;;  %v3886_v12 = vmul.f32 %v6624_v21, %v3808_v63  ;;  %v4881_v15 = vadd.f32 %v3629_v50, %v6612_v56  ;;  %v4845_v1 = vpop.f32.mrb[18].mxu0 }
 0x29f   : > { %3957 = vst [vmem:[%s6636_s26 + $0x60] sm:$0xff] %v3921_v52  ;;  %v3924_v60 = vsel %vm3846_vm6, %v3810_v14, %v3888_v34  ;;  %v3771_v22 = vmul.f32 %v4880_v20, %v6618_v59  ;;  %v4882_v58 = vadd.f32 %v4845_v1, %v6614_v5  ;;  %v3632_v41 = vpop.f32.mrb[19].mxu0 }
 0x2a0   : > { %3960 = vst [vmem:[%s6636_s26 + $0x78] sm:$0xff] %v3924_v60  ;;  %v3922_v10 = vsel %vm3844_vm7, %v3808_v63, %v3886_v12  ;;  %v3769_v61 = vmul.f32 %v4881_v15, %v6618_v59  ;;  %v4883_v17 = vadd.f32 %v3632_v41, %v6616_v4 }
 0x2a1   : > { %v4700_v11 = vpop.f32.mrb[24].mxu1  ;;  %3958 = vst [vmem:[%s6636_s26 + $0x68] sm:$0xff] %v3922_v10  ;;  %v3813_v0 = vadd.f32 %v6620_v2, %v3771_v22  ;;  %v3772_v56 = vmul.f32 %v4882_v58, %v6618_v59 }
 0x2a2   : > { %v2147_v13 = vpop.f32.mrb[25].mxu1  ;;  %v3811_v51 = vadd.f32 %v6620_v2, %v3769_v61  ;;  %v3770_v5 = vmul.f32 %v4883_v17, %v6618_v59 }
 0x2a3   : > { %v4701_v42 = vpop.f32.mrb[26].mxu1  ;;  %vm3849_vm8 = vcmp.ge.f32.partialorder %v3813_v0, 0.0  ;;  %v3891_v38 = vmul.f32 %v6624_v21, %v3813_v0  ;;  %v3814_v31 = vadd.f32 %v6620_v2, %v3772_v56 }
 0x2a4   : > { %v6711_v47 = vpop.f32.mrb[27].mxu1  ;;  %vm3847_vm9 = vcmp.ge.f32.partialorder %v3811_v51, 0.0  ;;  %v3889_v4 = vmul.f32 %v6624_v21, %v3811_v51  ;;  %v3812_v40 = vadd.f32 %v6620_v2, %v3770_v5  ;;  %v4848_v43 = vpop.f32.mrb[20].mxu0 }
 0x2a5   : > { %v3927_v26 = vsel %vm3849_vm8, %v3813_v0, %v3891_v38  ;;  %vm3850_vm10 = vcmp.ge.f32.partialorder %v3814_v31, 0.0  ;;  %v3892_v8 = vmul.f32 %v6624_v21, %v3814_v31  ;;  %v4884_v46 = vadd.f32 %v4848_v43, %v4696_v16  ;;  %v3645_v28 = vpop.f32.mrb[21].mxu0 }
 0x2a6   : > { %3963 = vst [vmem:[%s6636_s26 + $0x90] sm:$0xff] %v3927_v26  ;;  %v3925_v19 = vsel %vm3847_vm9, %v3811_v51, %v3889_v4  ;;  %vm3848_vm11 = vcmp.ge.f32.partialorder %v3812_v40, 0.0  ;;  %v3890_v7 = vmul.f32 %v6624_v21, %v3812_v40  ;;  %v4885_v23 = vadd.f32 %v3645_v28, %v2131_v25  ;;  %v4849_v48 = vpop.f32.mrb[22].mxu0 }
 0x2a7   : > { %3961 = vst [vmem:[%s6636_s26 + $0x80] sm:$0xff] %v3925_v19  ;;  %v3928_v27 = vsel %vm3850_vm10, %v3814_v31, %v3892_v8  ;;  %v3775_v53 = vmul.f32 %v4884_v46, %v6618_v59  ;;  %v4886_v9 = vadd.f32 %v4849_v48, %v4697_v36  ;;  %v3648_v6 = vpop.f32.mrb[23].mxu0 }
 0x2a8   : > { %3964 = vst [vmem:[%s6636_s26 + $0x98] sm:$0xff] %v3928_v27  ;;  %v3926_v3 = vsel %vm3848_vm11, %v3812_v40, %v3890_v7  ;;  %v3773_v29 = vmul.f32 %v4885_v23, %v6618_v59  ;;  %v4887_v44 = vadd.f32 %v3648_v6, %v6689_v30 }
 0x2a9   : > { %v4704_v24 = vpop.f32.mrb[28].mxu1  ;;  %3962 = vst [vmem:[%s6636_s26 + $0x88] sm:$0xff] %v3926_v3  ;;  %v3817_v16 = vadd.f32 %v6620_v2, %v3775_v53  ;;  %v3776_v18 = vmul.f32 %v4886_v9, %v6618_v59 }
 0x2aa   : > { %v2163_v49 = vpop.f32.mrb[29].mxu1  ;;  %v3815_v37 = vadd.f32 %v6620_v2, %v3773_v29  ;;  %v3774_v25 = vmul.f32 %v4887_v44, %v6618_v59 }
 0x2ab   : > { %v4705_v54 = vpop.f32.mrb[30].mxu1  ;;  %vm3853_vm12 = vcmp.ge.f32.partialorder %v3817_v16, 0.0  ;;  %v3895_v33 = vmul.f32 %v6624_v21, %v3817_v16  ;;  %v3818_v36 = vadd.f32 %v6620_v2, %v3776_v18 }
 0x2ac   : > { %v6730_v39 = vpop.f32.mrb[31].mxu1  ;;  %vm3851_vm13 = vcmp.ge.f32.partialorder %v3815_v37, 0.0  ;;  %v3893_v62 = vmul.f32 %v6624_v21, %v3815_v37  ;;  %v3816_v55 = vadd.f32 %v6620_v2, %v3774_v25  ;;  %v4852_v30 = vpop.f32.mrb[24].mxu0 }
 0x2ad   : > { %v3931_v57 = vsel %vm3853_vm12, %v3817_v16, %v3895_v33  ;;  %vm3854_vm14 = vcmp.ge.f32.partialorder %v3818_v36, 0.0  ;;  %v3896_v14 = vmul.f32 %v6624_v21, %v3818_v36  ;;  %v4888_v32 = vadd.f32 %v4852_v30, %v4700_v11  ;;  %v3661_v63 = vpop.f32.mrb[25].mxu0 }
 0x2ae   : > { %3967 = vst [vmem:[%s6636_s26 + $0xb0] sm:$0xff] %v3931_v57  ;;  %v3929_v45 = vsel %vm3851_vm13, %v3815_v37, %v3893_v62  ;;  %vm3852_vm15 = vcmp.ge.f32.partialorder %v3816_v55, 0.0  ;;  %v3894_v35 = vmul.f32 %v6624_v21, %v3816_v55  ;;  %v4889_v34 = vadd.f32 %v3661_v63, %v2147_v13  ;;  %v4853_v20 = vpop.f32.mrb[26].mxu0 }
 0x2af   : > { %3965 = vst [vmem:[%s6636_s26 + $0xa0] sm:$0xff] %v3929_v45  ;;  %v3932_v50 = vsel %vm3854_vm14, %v3818_v36, %v3896_v14  ;;  %v3779_v52 = vmul.f32 %v4888_v32, %v6618_v59  ;;  %v4890_v12 = vadd.f32 %v4853_v20, %v4701_v42  ;;  %v3664_v15 = vpop.f32.mrb[27].mxu0 }
 0x2b0   : > { %3968 = vst [vmem:[%s6636_s26 + $0xb8] sm:$0xff] %v3932_v50  ;;  %v3930_v60 = vsel %vm3852_vm15, %v3816_v55, %v3894_v35  ;;  %v3777_v22 = vmul.f32 %v4889_v34, %v6618_v59  ;;  %v4891_v58 = vadd.f32 %v3664_v15, %v6711_v47 }
 0x2b1   : > { %v4708_v1 = vpop.f32.mrb[32].mxu1  ;;  %3966 = vst [vmem:[%s6636_s26 + $0xa8] sm:$0xff] %v3930_v60  ;;  %v3821_v11 = vadd.f32 %v6620_v2, %v3779_v52  ;;  %v3780_v10 = vmul.f32 %v4890_v12, %v6618_v59 }
 0x2b2   : > { %v2179_v41 = vpop.f32.mrb[33].mxu1  ;;  %v3819_v17 = vadd.f32 %v6620_v2, %v3777_v22  ;;  %v3778_v13 = vmul.f32 %v4891_v58, %v6618_v59 }
 0x2b3   : > { %v4709_v61 = vpop.f32.mrb[34].mxu1  ;;  %vm3857_vm0 = vcmp.ge.f32.partialorder %v3821_v11, 0.0  ;;  %v3899_v56 = vmul.f32 %v6624_v21, %v3821_v11  ;;  %v3822_v42 = vadd.f32 %v6620_v2, %v3780_v10 }
 0x2b4   : > { %v2182_v0 = vpop.f32.mrb[35].mxu1  ;;  %vm3855_vm1 = vcmp.ge.f32.partialorder %v3819_v17, 0.0  ;;  %v3897_v51 = vmul.f32 %v6624_v21, %v3819_v17  ;;  %v3820_v5 = vadd.f32 %v6620_v2, %v3778_v13  ;;  %v4856_v47 = vpop.f32.mrb[28].mxu0 }
 0x2b5   : > { %v3935_v38 = vsel %vm3857_vm0, %v3821_v11, %v3899_v56  ;;  %vm3858_vm2 = vcmp.ge.f32.partialorder %v3822_v42, 0.0  ;;  %v3900_v31 = vmul.f32 %v6624_v21, %v3822_v42  ;;  %v4892_v4 = vadd.f32 %v4856_v47, %v4704_v24  ;;  %v3677_v40 = vpop.f32.mrb[29].mxu0 }
 0x2b6   : > { %3971 = vst [vmem:[%s6636_s26 + $0xd0] sm:$0xff] %v3935_v38  ;;  %v3933_v43 = vsel %vm3855_vm1, %v3819_v17, %v3897_v51  ;;  %vm3856_vm3 = vcmp.ge.f32.partialorder %v3820_v5, 0.0  ;;  %v3898_v26 = vmul.f32 %v6624_v21, %v3820_v5  ;;  %v4893_v8 = vadd.f32 %v3677_v40, %v2163_v49  ;;  %v4857_v46 = vpop.f32.mrb[30].mxu0 }
 0x2b7   : > { %3969 = vst [vmem:[%s6636_s26 + $0xc0] sm:$0xff] %v3933_v43  ;;  %v3936_v28 = vsel %vm3858_vm2, %v3822_v42, %v3900_v31  ;;  %v3783_v19 = vmul.f32 %v4892_v4, %v6618_v59  ;;  %v4894_v7 = vadd.f32 %v4857_v46, %v4705_v54  ;;  %v3680_v23 = vpop.f32.mrb[31].mxu0 }
 0x2b8   : > { %3972 = vst [vmem:[%s6636_s26 + $0xd8] sm:$0xff] %v3936_v28  ;;  %v3934_v48 = vsel %vm3856_vm3, %v3820_v5, %v3898_v26  ;;  %v3781_v27 = vmul.f32 %v4893_v8, %v6618_v59  ;;  %v4895_v53 = vadd.f32 %v3680_v23, %v6730_v39 }
 0x2b9   : > { %3970 = vst [vmem:[%s6636_s26 + $0xc8] sm:$0xff] %v3934_v48  ;;  %v3825_v9 = vadd.f32 %v6620_v2, %v3783_v19  ;;  %v3784_v6 = vmul.f32 %v4894_v7, %v6618_v59 }
 0x2ba   : > { %v3823_v24 = vadd.f32 %v6620_v2, %v3781_v27  ;;  %v3782_v3 = vmul.f32 %v4895_v53, %v6618_v59 }
 0x2bb   : > { %vm3861_vm4 = vcmp.ge.f32.partialorder %v3825_v9, 0.0  ;;  %v3903_v29 = vmul.f32 %v6624_v21, %v3825_v9  ;;  %v3826_v44 = vadd.f32 %v6620_v2, %v3784_v6 }
 0x2bc   : > { %vm3859_vm5 = vcmp.ge.f32.partialorder %v3823_v24, 0.0  ;;  %v3901_v49 = vmul.f32 %v6624_v21, %v3823_v24  ;;  %v3824_v16 = vadd.f32 %v6620_v2, %v3782_v3  ;;  %v4860_v18 = vpop.f32.mrb[32].mxu0 }
 0x2bd   : > { %v3939_v54 = vsel %vm3861_vm4, %v3825_v9, %v3903_v29  ;;  %vm3862_vm6 = vcmp.ge.f32.partialorder %v3826_v44, 0.0  ;;  %v3904_v37 = vmul.f32 %v6624_v21, %v3826_v44  ;;  %v4896_v25 = vadd.f32 %v4860_v18, %v4708_v1  ;;  %v3693_v39 = vpop.f32.mrb[33].mxu0 }
 0x2be   : > { %3975 = vst [vmem:[%s6636_s26 + $0xf0] sm:$0xff] %v3939_v54  ;;  %v3937_v33 = vsel %vm3859_vm5, %v3823_v24, %v3901_v49  ;;  %vm3860_vm7 = vcmp.ge.f32.partialorder %v3824_v16, 0.0  ;;  %v3902_v36 = vmul.f32 %v6624_v21, %v3824_v16  ;;  %v4897_v62 = vadd.f32 %v3693_v39, %v2179_v41  ;;  %v4861_v55 = vpop.f32.mrb[34].mxu0 }
 0x2bf   : > { %3973 = vst [vmem:[%s6636_s26 + $0xe0] sm:$0xff] %v3937_v33  ;;  %v3940_v30 = vsel %vm3862_vm6, %v3826_v44, %v3904_v37  ;;  %v3787_v57 = vmul.f32 %v4896_v25, %v6618_v59  ;;  %v4898_v14 = vadd.f32 %v4861_v55, %v4709_v61  ;;  %v3696_v32 = vpop.f32.mrb[35].mxu0 }
 0x2c0   : > { %3976 = vst [vmem:[%s6636_s26 + $0xf8] sm:$0xff] %v3940_v30  ;;  %v3938_v63 = vsel %vm3860_vm7, %v3824_v16, %v3902_v36  ;;  %v3785_v45 = vmul.f32 %v4897_v62, %v6618_v59  ;;  %v4899_v35 = vadd.f32 %v3696_v32, %v2182_v0 }
 0x2c1   : > { %3974 = vst [vmem:[%s6636_s26 + $0xe8] sm:$0xff] %v3938_v63  ;;  %v3829_v34 = vadd.f32 %v6620_v2, %v3787_v57  ;;  %v3788_v20 = vmul.f32 %v4898_v14, %v6618_v59 }
 0x2c2   : > { %v3827_v50 = vadd.f32 %v6620_v2, %v3785_v45  ;;  %v3786_v52 = vmul.f32 %v4899_v35, %v6618_v59 }
 0x2c3   : > { %vm3865_vm8 = vcmp.ge.f32.partialorder %v3829_v34, 0.0  ;;  %v3907_v12 = vmul.f32 %v6624_v21, %v3829_v34  ;;  %v3830_v15 = vadd.f32 %v6620_v2, %v3788_v20 }
 0x2c4   : > { %vm3863_vm9 = vcmp.ge.f32.partialorder %v3827_v50, 0.0  ;;  %v3905_v1 = vmul.f32 %v6624_v21, %v3827_v50  ;;  %v3828_v60 = vadd.f32 %v6620_v2, %v3786_v52 }
 0x2c5   : > { %v3943_v22 = vsel %vm3865_vm8, %v3829_v34, %v3907_v12  ;;  %vm3866_vm10 = vcmp.ge.f32.partialorder %v3830_v15, 0.0  ;;  %v3908_v59 = vmul.f32 %v6624_v21, %v3830_v15 }
 0x2c6   : > { %3979 = vst [vmem:[%s6636_s26 + $0x110] sm:$0xff] %v3943_v22  ;;  %v3941_v58 = vsel %vm3863_vm9, %v3827_v50, %v3905_v1  ;;  %vm3864_vm11 = vcmp.ge.f32.partialorder %v3828_v60, 0.0  ;;  %v3906_v41 = vmul.f32 %v6624_v21, %v3828_v60 }
 0x2c7   : > { %3977 = vst [vmem:[%s6636_s26 + $0x100] sm:$0xff] %v3941_v58  ;;  %v3944_v2 = vsel %vm3866_vm10, %v3830_v15, %v3908_v59 }
 0x2c8   : > { %3980 = vst [vmem:[%s6636_s26 + $0x118] sm:$0xff] %v3944_v2  ;;  %v3942_v11 = vsel %vm3864_vm11, %v3828_v60, %v3906_v41 }
 0x2c9   : > { %3978 = vst [vmem:[%s6636_s26 + $0x108] sm:$0xff] %v3942_v11 }
 0x2ca   : > { %5485 = shalt.err (!%p5482_p13)
}
 0x2cb   : > { %s5486_s7 = scalar_lea.hbm %s6794_s17, 4608  ;;  %s5490_s28 = scalar_lea.hbm %s6848_s5, 9216 }
 0x2cc   : > { %p5487_p9 = scmp.ne.s32.totalorder %s6794_s17, %s5486_s7  ;;  %p5491_p6 = scmp.lt.u32.totalorder %s6794_s17, %s6848_s5 }
 0x2cd   : > { %p5492_p4 = scmp.lt.u32.totalorder %s5490_s28, %s5486_s7  ;;  %p5494_p3 = scmp.lt.u32.totalorder %s5486_s7, %s6794_s17 }
 0x2ce   : > { %p5488_p0 = pnand %p5487_p9, %p5751_p10 }
 0x2cf   : > { %p5493_p8 = por %p5492_p4, %p5491_p6 }
 0x2d0   : > { %p5489_p11 = pneg %p5488_p0 }
 0x2d1   : > { %p5495_p5 = por %p5494_p3, %p5493_p8 }
 0x2d3   : > { %p5496_p7 = pnand %p5495_p5, %p5489_p11 }
 0x2d5   : > { %5499 = shalt.err (!%p5496_p7)
}
 0x2d6   : > { %s5556_s27 = smov 128   ;;  %s5557_s22 = smov 8  }
 0x2d7   : > { %5185 = dma.vmem_to_hbm [thread:$0]  (%p5751_p10), %s6796_s15, 4608, %s6794_s17, %s3982_s30, %s5556_s27, %s5556_s27, %s5557_s22  }
 0x2d8 PF: > { %s4010_s8 = sand.u32 1, %s5534_s18   ;;  %p6868_p12 = scmp.ne.s32.totalorder %s6854_s25, 0 }
 0x2d9   : > { %p6869_p1 = scmp.ge.s32.totalorder %s5546_s21, 2  ;;  %s4011_s12 = scalar_lea.sflag [#allocation4], %s4010_s8 }
 0x2db   : > { %p5205_p2 = pnand %p6869_p1, %p6868_p12 }
 0x2dd   : > { %5529 = dma.done.wait (!%p5205_p2), %s4011_s12, 4608  }
 0x2de   : > { %5531 = vsyncadd (!%p5205_p2), %s4011_s12, 4294962688  ;;  %p20_p13 = scmp.ge.s32.totalorder %s5741_s14, 4   ;;  %s6870_s18 = smov %s5538_s19 }
 0x2df   : > { %s6871_s19 = smov %s5542_s20  ;;  %s6872_s20 = smov %s5757_s11 }
 0x2e0   : > { %s6873_s21 = smov %s5741_s14  ;;  %22 = sbr.rel (!%p20_p13) target bundleno = 7 (0x7), region = 109 }
 0x2e7   :  { %4016 = vsyncpa [#allocation3], 1 }
 0x2e8   :  { %4018 = vsyncpa [#allocation3 + $0x1], 1 }
 0x2e9   :  { %4019 = vsyncpa [#allocation6], 1 }
 0x2ea   :  { %4020 = vsyncpa [#allocation9], 1 }
 0x2eb   :  { %4021 = vsyncpa [#allocation4], 1 }
 0x2ec   :  { %4023 = vsyncpa [#allocation4 + $0x1], 1 }

// kernel: conv_block_forward.2
= control target key start
LH: loop header
LB: loop body
LE: loop exit
PB: predicated region body
PF: predicated region fallthrough
CT: control target
= control target key end

     0   :  { %10 = vsyncpa [#allocation3], 0  ;;  %s6787_s0 = inlined_call_operand.hbm [shape: bf16[2,328,8], index: 0, kind: input, shape index: {}]   ;;  %s6788_s1 = inlined_call_operand.hbm [shape: bf16[9,8,128], index: 1, kind: input, shape index: {}]   ;;  %s6789_s2 = inlined_call_operand.hbm [shape: f32[288,1], index: 2, kind: input, shape index: {}]   ;;  %s6790_s3 = inlined_call_operand.hbm [shape: f32[1,128], index: 3, kind: output, shape index: {0}]   ;;  %s6791_s4 = inlined_call_operand.hbm [shape: f32[1,128], index: 4, kind: output, shape index: {1}]  }
   0x1   :  { %12 = vsyncpa [#allocation3 + $0x1], 0 }
   0x2   :  { %13 = vsyncpa [#allocation6], 0 }
   0x3   :  { %14 = vsyncpa [#allocation4], 0 }
   0x4   :  { %15 = vsyncpa [#allocation10], 0  ;;  %s5593_s15 = smov 0   ;;  %s5595_s16 = smov 0  }
   0x5   :  { %s5597_s17 = smov 0   ;;  %s5599_s18 = smov 0  }
   0x6 LB: > { %s5612_s19 = sadd.s32 4294967295, %s5555_s18   ;;  %p41_p0 = scmp.ne.s32.totalorder %s5547_s16, %s5543_s15  ;;  %s5555_s18 = sphi %s5599_s18, %s6807_s18   ;;  %s5551_s17 = sphi %s5597_s17, %s6806_s17   ;;  %s5547_s16 = sphi %s5595_s16, %s6805_s16   ;;  %s5543_s15 = sphi %s5593_s15, %s6804_s15  }
   0x7   : > { %p6792_p1 = scmp.eq.s32.totalorder %s5612_s19, 0  ;;  %p4162_p2 = scmp.ge.s32.totalorder %s5555_s18, 1 }
   0x8   : > { %p136_p3 = scmp.lt.s32.totalorder %s5555_s18, 3  ;;  %s5557_s22 = smov [#allocation5]  }
   0x9   : > { %p5621_p5 = por %p6792_p1, %p41_p0  ;;  %s148_s23 = sshll.u32 %s5557_s22, 4  ;;  %s149_s23 = int_to_ptr.vmem [resolvable:$true] %s148_s23 }
   0xa   : > { %p5625_p6 = pnand %p4162_p2, %p136_p3  ;;  %s5558_s25 = smov [#allocation7]  }
   0xb   : > { %s6795_s20 = scalar_select %p5621_p5, 1, 0 }
   0xc   : > { %s6796_s21 = scalar_select %p5625_p6, 1, 0 }
   0xd   : > { %p5235_p7 = pneg %p5625_p6  ;;  %s161_s26 = sshll.u32 %s5558_s25, 4  ;;  %s5637_s26 = int_to_ptr.vmem [resolvable:$true] %s161_s26 }
   0xe   : > { %s5371_s29 = scalar_lea.hbm %s6788_s1, 576 }
   0xf   : > { %p5633_p8 = pnand %p5235_p7, %p6792_p1  ;;  %p5372_p9 = scmp.ne.s32.totalorder %s6788_s1, %s5371_s29 }
  0x10   : > { %p5378_p13 = scmp.lt.u32.totalorder %s5371_s29, %s6788_s1 }
  0x11   : > { %p5373_p10 = pneg %p5633_p8 }
  0x13   : > { %p5374_p11 = pnand %p5373_p10, %p5372_p9 }
  0x15   : > { %p5375_p12 = pneg %p5374_p11 }
  0x17   : > { %p5380_p0 = pnand %p5378_p13, %p5375_p12 }
  0x19   : > { %5383 = shalt.err (!%p5380_p0)
}
  0x1a   : > { %s5384_s8 = scalar_lea.vmem %s149_s23, 576  ;;  %p5392_p4 = scmp.lt.s32.totalorder %s149_s23, %s149_s23 }
  0x1b   : > { %p5385_p2 = scmp.ne.s32.totalorder %s149_s23, %s5384_s8  ;;  %p5393_p1 = scmp.lt.s32.totalorder %s5384_s8, %s5384_s8 }
  0x1d   : > { %p5387_p3 = pnand %p5385_p2, %p5373_p10  ;;  %p5394_p5 = por %p5393_p1, %p5392_p4 }
  0x1f   : > { %p5388_p7 = pneg %p5387_p3 }
  0x21   : > { %p5395_p6 = pnand %p5394_p5, %p5388_p7 }
  0x23   : > { %5398 = shalt.err (!%p5395_p6)
}
  0x24   : > { %s5559_s9 = smov 64   ;;  %s5560_s10 = smov 4  }
  0x25   : > { %5238 = dma.hbm_to_vmem [thread:$0]  (!%p5633_p8), %s6788_s1, 576, %s149_s23, [#allocation6], %s5559_s9, %s5559_s9, %s5560_s10  }
  0x26   : > { %s5399_s15 = scalar_lea.hbm %s6789_s2, 4608 }
  0x27   : > { %p5400_p1 = scmp.ne.s32.totalorder %s6789_s2, %s5399_s15  ;;  %p5406_p6 = scmp.lt.u32.totalorder %s5399_s15, %s6789_s2 }
  0x29   : > { %p5402_p4 = pnand %p5400_p1, %p5373_p10 }
  0x2b   : > { %p5403_p5 = pneg %p5402_p4 }
  0x2d   : > { %p5408_p9 = pnand %p5406_p6, %p5403_p5 }
  0x2f   : > { %5411 = shalt.err (!%p5408_p9)
}
  0x30   : > { %s5412_s23 = scalar_lea.vmem %s5637_s26, 4608  ;;  %p5420_p0 = scmp.lt.s32.totalorder %s5637_s26, %s5637_s26 }
  0x31   : > { %p5413_p11 = scmp.ne.s32.totalorder %s5637_s26, %s5412_s23  ;;  %p5421_p2 = scmp.lt.s32.totalorder %s5412_s23, %s5412_s23 }
  0x33   : > { %p5415_p12 = pnand %p5413_p11, %p5373_p10  ;;  %p5422_p3 = por %p5421_p2, %p5420_p0 }
  0x35   : > { %p5416_p13 = pneg %p5415_p12 }
  0x37   : > { %p5423_p7 = pnand %p5422_p3, %p5416_p13 }
  0x39   : > { %5426 = shalt.err (!%p5423_p7)
}
  0x3a   : > { %s5561_s29 = smov 128   ;;  %s5562_s30 = smov 8  }
  0x3b   : > { %5241 = dma.hbm_to_vmem [thread:$0]  (!%p5633_p8), %s6789_s2, 4608, %s5637_s26, [#allocation6], %s5561_s29, %s5561_s29, %s5562_s30  }
  0x3c   : > { %s5690_s7 = sadd.s32 1, %s5555_s18   ;;  %s28_s11 = sadd.s32 1, %s5551_s17 }
  0x3d   : > { %s25_s8 = ssub.s32 %s5555_s18, %s5690_s7  ;;  %p35_p1 = scmp.ne.s32.totalorder %s5551_s17, %s5547_s16 }
  0x3e   : > { %p26_p10 = scmp.eq.s32.totalorder %s25_s8, 0  ;;  %p36_p4 = scmp.eq.s32.totalorder %s5555_s18, 0 }
  0x3f   : > { %p5248_p6 = scmp.lt.s32.totalorder %s5555_s18, 2  ;;  %s175_s13 = sand.u32 1, %s5551_s17  }
  0x40   : > { %s5699_s12 = scalar_select %p26_p10, %s5551_s17, %s28_s11  }
  0x41   : > { %p37_p5 = por %p36_p4, %p35_p1  ;;  %s5215_s14 = smul.u32 2624, %s5555_s18 }
  0x42   : > { %s5214_s15 = smul.u32 164, %s175_s13  ;;  %s5715_s18 = scalar_lea.sflag [#allocation3], %s175_s13 }
  0x43   : > { %p5704_p9 = pnand %p5248_p6, %p37_p5  ;;  %s5711_s25 = scalar_lea.hbm %s6787_s0, %s5215_s14 }
  0x44   : > { %s179_s27 = scalar_lea.vmem [#allocation2], %s5214_s15  ;;  %s5427_s23 = scalar_lea.hbm %s5711_s25, 2624 }
  0x45   : > { %s186_s28 = sshll.u32 %s179_s27, 4  ;;  %p5428_p8 = scmp.ne.s32.totalorder %s5711_s25, %s5427_s23  ;;  %s5713_s28 = int_to_ptr.vmem [resolvable:$true] %s186_s28 }
  0x46   : > { %p5429_p11 = pneg %p5704_p9  ;;  %s5432_s5 = scalar_lea.hbm %s6787_s0, 5248 }
  0x47   : > { %p5433_p0 = scmp.lt.u32.totalorder %s5711_s25, %s6787_s0  ;;  %p5434_p2 = scmp.lt.u32.totalorder %s5432_s5, %s5427_s23 }
  0x48   : > { %p5430_p12 = pnand %p5429_p11, %p5428_p8  ;;  %p5436_p7 = scmp.lt.u32.totalorder %s5427_s23, %s5711_s25 }
  0x49   : > { %p5435_p3 = por %p5434_p2, %p5433_p0 }
  0x4a   : > { %p5431_p13 = pneg %p5430_p12 }
  0x4b   : > { %p5437_p10 = por %p5436_p7, %p5435_p3 }
  0x4d   : > { %p5438_p1 = pnand %p5437_p10, %p5431_p13 }
  0x4f   : > { %5441 = shalt.err (!%p5438_p1)
}
  0x50   : > { %s5442_s11 = scalar_lea.vmem %s5713_s28, 2624  ;;  %s5563_s13 = smov [#allocation2]  }
  0x51   : > { %p5443_p4 = scmp.ne.s32.totalorder %s5713_s28, %s5442_s11  ;;  %s5447_s14 = sshll.u32 %s5563_s13, 4  ;;  %s5448_s14 = int_to_ptr.vmem [resolvable:$false] %s5447_s14 }
  0x52   : > { %s5449_s15 = scalar_lea.vmem %s5448_s14, 5248  ;;  %p5450_p8 = scmp.lt.s32.totalorder %s5713_s28, %s5448_s14 }
  0x53   : > { %p5445_p5 = pnand %p5443_p4, %p5429_p11  ;;  %p5451_p12 = scmp.lt.s32.totalorder %s5449_s15, %s5442_s11 }
  0x55   : > { %p5446_p6 = pneg %p5445_p5  ;;  %p5452_p0 = por %p5451_p12, %p5450_p8 }
  0x57   : > { %p5453_p2 = pnand %p5452_p0, %p5446_p6 }
  0x59   : > { %5456 = shalt.err (!%p5453_p2)
}
  0x5a   : > { %5245 = dma.hbm_to_vmem [thread:$0]  (!%p5704_p9), %s5711_s25, 2624, %s5713_s28, %s5715_s18, %s5559_s9, %s5559_s9, %s5560_s10  }
  0x5b   : > { %p6799_p11 = scmp.ne.s32.totalorder %s6796_s21, 0 }
  0x5c   : > { %s200_s26 = sand.u32 (!%p6799_p11), 1, %s5547_s16   ;;  %p6800_p13 = scmp.ne.s32.totalorder (!%p6799_p11), %s6795_s20, 0 }
  0x5d   : > { %198 = sbr.rel (%p6799_p11) target bundleno = 782 (0x30e), region = 32  ;;  %s201_s27 = scalar_lea.sflag (!%p6799_p11), [#allocation3], %s200_s26 }
  0x5e   : > { %s5216_s22 = smul.u32 (!%p6799_p11), 164, %s200_s26 }
  0x60   : > { %s5749_s23 = scalar_lea.vmem (!%p6799_p11), [#allocation2], %s5216_s22 }
  0x64   : > { %5526 = dma.done.wait (%p6800_p13), %s201_s27, 2624  }
  0x65   : > { %5528 = vsyncadd (%p6800_p13), %s201_s27, 4294964672  ;;  %p6801_p3 = scmp.eq.s32.totalorder %s5612_s19, 0 }
  0x67   : > { %5530 = dma.done.wait (%p6801_p3), [#allocation6], 5184   ;;  %p6802_p9 = pmov %p6801_p3 }
  0x68   : > { %vm570_vm0 = vcmask 1043456   ;;  %vm366_vm1 = vsmask.f32 7424  ;;  %v5759_v0 = vld [vmem:[#allocation5 + $0x10] sm:$0xf]  ;;  %v5778_v7 = vld [vmem:[%s5749_s23 + $0x8] sm:$0xff]  }
  0x69   : > { %5532 = vsyncadd (%p6802_p9), [#allocation6], 4294962112  ;;  %v272_v1 = vld [vmem:[#allocation5 + $0x4] sm:$0xf]  ;;  %v233_v2 = vld [vmem:[%s5749_s23] sm:$0xf]  ;;  %5208 = vmatprep.subr.msk.bf16.mxu0 %vm570_vm0, %v5759_v0 }
  0x6a   : > { %5204 = vmatprep.subr.msk.bf16.mxu1 %vm570_vm0, %v272_v1  ;;  %v5767_v3 = vsel %vm570_vm0, %v5759_v0, 0  ;;  %v572_v4 = vsel %vm570_vm0, %v272_v1, 0  ;;  %v5771_v5 = vld [vmem:[%s5749_s23 + $0x4] sm:$0xf]  ;;  %vm515_vm2 = vcmask 64512   ;;  %v375_v12 = vshll.u32 %v5778_v7, 16 }
  0x6b   : > { %4725 = vmatpush3.bf16.msra.mxu0 %v5767_v3  ;;  %4573 = vmatpush3.bf16.msra.mxu1 %v572_v4  ;;  %v5775_v6 = vcombine.low %v233_v2, %v5771_v5  ;;  %v1281_v8 = vld [vmem:[%s5749_s23 + $0x8] sm:$0xe]  ;;  %vm1726_vm3 = vsmask.f32 6400  ;;  %v5782_v9 = vld [vmem:[%s5749_s23 + $0xc] sm:$0xf] }
  0x6c   : > { %v379_v13 = vshrl.u32 %v5778_v7, 16  ;;  %v5789_v14 = vld [vmem:[%s5749_s23 + $0x10] sm:$0xff]   ;;  %v5795_v16 = vcombine.low %v1281_v8, %v5782_v9  ;;  %v2169_v17 = vld [vmem:[#allocation5 + $0x14] sm:$0xf]  ;;  %v377_v19 = vrot.slane %v375_v12, 1  ;;  %v5811_v35 = vld [vmem:[%s5749_s23 + $0x20] sm:$0xff]  }
  0x6d   : > { %v368_v10 = vshrl.u32 %v5775_v6, 16  ;;  %v370_v11 = vshll.u32 %v5775_v6, 16  ;;  %v5792_v15 = vld [vmem:[%s5749_s23 + $0x10] sm:$0xff]   ;;  %v1736_v20 = vshrl.u32 %v5789_v14, 16  ;;  %v1739_v21 = vshll.u32 %v5789_v14, 16  ;;  %5210 = vmatprep.subr.msk.bf16.mxu0 %vm570_vm0, %v2169_v17  ;;  %v5804_v25 = vld [vmem:[%s5749_s23 + $0x18] sm:$0xff]  }
  0x6e   : > { %v1728_v22 = vshrl.u32 %v5795_v16, 16  ;;  %v1731_v23 = vshll.u32 %v5795_v16, 16  ;;  %v383_v24 = vshll.u32 %v5792_v15, 16  ;;  %v381_v27 = vor.u32 %v379_v13, %v377_v19  ;;  %v5808_v34 = vld [vmem:[%s5749_s23 + $0x18] sm:$0xff]   ;;  %v269_v40 = vld [vmem:[#allocation5] sm:$0xf] }
  0x6f   : > { %v372_v18 = vrot.slane %v370_v11, 1  ;;  %v1738_v28 = vrot.slane %v1736_v20, 1  ;;  %v1741_v29 = vrot.slane %v1739_v21, 2  ;;  %v1745_v33 = vshrl.u32 %v5804_v25, 16  ;;  %5205 = vmatprep.subr.msk.bf16.mxu1 %vm570_vm0, %v269_v40  ;;  %v5826_v51 = vld [vmem:[%s5749_s23 + $0x20] sm:$0xff]   ;;  %v5831_v54 = vld [vmem:[%s5749_s23 + $0x28] sm:$0xff]  }
  0x70   : > { %v1730_v30 = vrot.slane %v1728_v22, 1  ;;  %v1733_v31 = vrot.slane %v1731_v23, 2  ;;  %v385_v32 = vrot.slane %v383_v24, 1  ;;  %v1748_v38 = vshll.u32 %v5804_v25, 16  ;;  %v5835_v59 = vld [vmem:[%s5749_s23 + $0x28] sm:$0xff]   ;;  %v5855_v21 = vld [vmem:[%s5749_s23 + $0x38] sm:$0xff]  }
  0x71   : > { %v373_v26 = vor.u32 %v372_v18, %v368_v10  ;;  %v1742_v37 = vor.u32 %v1741_v29, %v1738_v28  ;;  %v2266_v39 = vsel %vm570_vm0, %v2169_v17, 0  ;;  %v1747_v43 = vrot.slane %v1745_v33, 1  ;;  %v5847_v17 = vld [vmem:[%s5749_s23 + $0x30] sm:$0xff]   ;;  %p6803_p7 = scmp.ne.s32.totalorder %s5612_s19, 0 }
  0x72   : > { %v1734_v41 = vor.u32 %v1733_v31, %v1730_v30  ;;  %v386_v42 = vsel %vm366_vm1, %v381_v27, %v385_v32  ;;  %v387_v44 = vshrl.u32 %v5792_v15, 16  ;;  %v1750_v45 = vrot.slane %v1748_v38, 2  ;;  %v5850_v18 = vld [vmem:[%s5749_s23 + $0x30] sm:$0xff]   ;;  %v5860_v27 = vld [vmem:[%s5749_s23 + $0x38] sm:$0xff]   ;;  %v5871_v38 = vld [vmem:[%s5749_s23 + $0x40] sm:$0xff]  }
  0x73   : > { %v378_v36 = vsel %vm366_vm1, %v373_v26, %v377_v19  ;;  %v391_v46 = vshll.u32 %v5808_v34, 16  ;;  %v1754_v47 = vshrl.u32 %v5811_v35, 16  ;;  %v1757_v48 = vshll.u32 %v5811_v35, 16 }
  0x74   : > { %4574 = vmatprep.mubr.msk.bf16.mxu1 %vm515_vm2, %v378_v36  ;;  %v1743_v49 = vsel %vm1726_vm3, %v1734_v41, %v1742_v37  ;;  %v389_v50 = vor.u32 %v387_v44, %v385_v32  ;;  %v395_v52 = vshrl.u32 %v5808_v34, 16  ;;  %v788_v53 = vsel %vm570_vm0, %v269_v40, 0 }
  0x75   : > { %4575 = vmatmul.mubr.msk.bf16.vlgmr.msra.gmra.mrb[0].mxu1 %vm515_vm2, %v386_v42  ;;  %4726 = vmatprep.mubr.msk.bf16.mxu0 %vm515_vm2, %v1743_v49  ;;  %v1751_v55 = vor.u32 %v1750_v45, %v1747_v43  ;;  %v393_v56 = vrot.slane %v391_v46, 1  ;;  %v1756_v57 = vrot.slane %v1754_v47, 1  ;;  %v1759_v58 = vrot.slane %v1757_v48, 2 }
  0x76   : > { %4611 = vmatpush3.bf16.msra.mxu1 %v788_v53  ;;  %v399_v60 = vshll.u32 %v5826_v51, 16  ;;  %v1763_v61 = vshrl.u32 %v5831_v54, 16  ;;  %v1766_v62 = vshll.u32 %v5831_v54, 16  ;;  %v403_v63 = vshrl.u32 %v5826_v51, 16  ;;  %v5884_v53 = vld [vmem:[%s5749_s23 + $0x48] sm:$0xff]  }
  0x77   : > { %v1752_v1 = vsel %vm1726_vm3, %v1742_v37, %v1751_v55  ;;  %v394_v2 = vsel %vm366_vm1, %v389_v50, %v393_v56  ;;  %v1760_v4 = vor.u32 %v1759_v58, %v1756_v57  ;;  %v397_v8 = vor.u32 %v395_v52, %v393_v56  ;;  %v5880_v50 = vld [vmem:[%s5749_s23 + $0x40] sm:$0xff]  }
  0x78   : > { %4727 = vmatmul.mubr.msk.bf16.vlgmr.msra.gmra.mrb[0].mxu0 %vm515_vm2, %v1752_v1  ;;  %4578 = vmatprep.mubr.msk.bf16.mxu1 %vm515_vm2, %v394_v2  ;;  %v401_v10 = vrot.slane %v399_v60, 1  ;;  %v1765_v11 = vrot.slane %v1763_v61, 1  ;;  %v1768_v12 = vrot.slane %v1766_v62, 2  ;;  %v407_v13 = vshll.u32 %v5835_v59, 16  ;;  %v5891_v1 = vld [vmem:[%s5749_s23 + $0x48] sm:$0xff]  }
  0x79   : > { %4763 = vmatpush3.bf16.msra.mxu0 %v2266_v39  ;;  %v1761_v19 = vsel %vm1726_vm3, %v1751_v55, %v1760_v4  ;;  %v411_v20 = vshrl.u32 %v5835_v59, 16  ;;  %v1772_v28 = vshrl.u32 %v5847_v17, 16  ;;  %v1775_v29 = vshll.u32 %v5847_v17, 16 }
  0x7a   : > { %4730 = vmatprep.mubr.msk.bf16.mxu0 %vm515_vm2, %v1761_v19  ;;  %v402_v22 = vsel %vm366_vm1, %v397_v8, %v401_v10  ;;  %v1769_v23 = vor.u32 %v1768_v12, %v1765_v11  ;;  %v405_v24 = vor.u32 %v403_v63, %v401_v10  ;;  %v409_v26 = vrot.slane %v407_v13, 1  ;;  %v5897_v8 = vld [vmem:[%s5749_s23 + $0x50] sm:$0xff]  }
  0x7b   : > { %v415_v30 = vshll.u32 %v5850_v18, 16  ;;  %v1781_v31 = vshrl.u32 %v5855_v21, 16  ;;  %v1784_v37 = vshll.u32 %v5855_v21, 16  ;;  %v1774_v39 = vrot.slane %v1772_v28, 1  ;;  %v5902_v19 = vld [vmem:[%s5749_s23 + $0x50] sm:$0xff]  }
  0x7c   : > { %v1770_v32 = vsel %vm1726_vm3, %v1760_v4, %v1769_v23  ;;  %v410_v33 = vsel %vm366_vm1, %v405_v24, %v409_v26  ;;  %v413_v36 = vor.u32 %v411_v20, %v409_v26  ;;  %v1777_v40 = vrot.slane %v1775_v29, 2 }
  0x7d   : > { %4579 = vmatmul.mubr.msk.bf16.gmra.mrb[4].mxu1 %vm515_vm2, %v402_v22  ;;  %v417_v41 = vrot.slane %v415_v30, 1  ;;  %v1783_v42 = vrot.slane %v1781_v31, 1  ;;  %v1786_v43 = vrot.slane %v1784_v37, 2  ;;  %v419_v44 = vshrl.u32 %v5850_v18, 16  ;;  %v5910_v30 = vld [vmem:[%s5749_s23 + $0x58] sm:$0xff]  }
  0x7e   : > { %4582 = vmatprep.mubr.msk.bf16.mxu1 %vm515_vm2, %v410_v33  ;;  %v423_v45 = vshll.u32 %v5860_v27, 16  ;;  %v1790_v46 = vshrl.u32 %v5871_v38, 16  ;;  %v1778_v47 = vor.u32 %v1777_v40, %v1774_v39  ;;  %v1793_v49 = vshll.u32 %v5871_v38, 16  ;;  %v5914_v37 = vld [vmem:[%s5749_s23 + $0x58] sm:$0xff]  }
  0x7f   : > { %v418_v48 = vsel %vm366_vm1, %v413_v36, %v417_v41  ;;  %v427_v52 = vshrl.u32 %v5860_v27, 16  ;;  %v1787_v55 = vor.u32 %v1786_v43, %v1783_v42  ;;  %v421_v56 = vor.u32 %v419_v44, %v417_v41  ;;  %v5922_v44 = vld [vmem:[#allocation5 + $0x18] sm:$0xf] }
  0x80   : > { %4731 = vmatmul.mubr.msk.bf16.gmra.mrb[4].mxu0 %vm515_vm2, %v1770_v32  ;;  %v425_v57 = vrot.slane %v423_v45, 1  ;;  %v1792_v58 = vrot.slane %v1790_v46, 1  ;;  %v1779_v60 = vsel %vm1726_vm3, %v1769_v23, %v1778_v47  ;;  %v1795_v61 = vrot.slane %v1793_v49, 2  ;;  %5211 = vmatprep.subr.msk.bf16.mxu0 %vm570_vm0, %v5922_v44 }
  0x81   : > { %v431_v62 = vshll.u32 %v5880_v50, 16  ;;  %v1799_v63 = vshrl.u32 %v5884_v53, 16  ;;  %4734 = vmatprep.mubr.msk.bf16.mxu0 %vm515_vm2, %v1779_v60  ;;  %v1802_v4 = vshll.u32 %v5884_v53, 16  ;;  %v435_v13 = vshrl.u32 %v5880_v50, 16 }
  0x82   : > { %v426_v2 = vsel %vm366_vm1, %v421_v56, %v425_v57  ;;  %v1796_v10 = vor.u32 %v1795_v61, %v1792_v58  ;;  %v429_v11 = vor.u32 %v427_v52, %v425_v57  ;;  %v439_v22 = vshll.u32 %v5891_v1, 16  ;;  %v2167_v52 = vld [vmem:[%s5749_s23 + $0x8] sm:$0xc]  ;;  %v5933_v56 = vld [vmem:[%s5749_s23 + $0x60] sm:$0xff]  }
  0x83   : > { %v433_v12 = vrot.slane %v431_v62, 1  ;;  %v1801_v20 = vrot.slane %v1799_v63, 1  ;;  %v1808_v23 = vshrl.u32 %v5897_v8, 16  ;;  %v1811_v24 = vshll.u32 %v5897_v8, 16 }
  0x84   : > { %v1788_v26 = vsel %vm1726_vm3, %v1778_v47, %v1787_v55  ;;  %v1804_v28 = vrot.slane %v1802_v4, 2  ;;  %v1797_v31 = vsel %vm1726_vm3, %v1787_v55, %v1796_v10  ;;  %v441_v32 = vrot.slane %v439_v22, 1 }
  0x85   : > { %4583 = vmatmul.mubr.msk.bf16.gmra.mrb[8].mxu1 %vm515_vm2, %v418_v48  ;;  %v437_v29 = vor.u32 %v435_v13, %v433_v12  ;;  %v1810_v33 = vrot.slane %v1808_v23, 1  ;;  %v1813_v36 = vrot.slane %v1811_v24, 2  ;;  %v443_v39 = vshrl.u32 %v5891_v1, 16 }
  0x86   : > { %4586 = vmatprep.mubr.msk.bf16.mxu1 %vm515_vm2, %v426_v2  ;;  %v447_v40 = vshll.u32 %v5902_v19, 16  ;;  %v434_v41 = vsel %vm366_vm1, %v429_v11, %v433_v12  ;;  %v1817_v42 = vshrl.u32 %v5910_v30, 16  ;;  %v1820_v43 = vshll.u32 %v5910_v30, 16  ;;  %v5938_v2 = vld [vmem:[%s5749_s23 + $0x68] sm:$0xff]  }
  0x87   : > { %v1805_v45 = vor.u32 %v1804_v28, %v1801_v20  ;;  %v442_v46 = vsel %vm366_vm1, %v437_v29, %v441_v32  ;;  %v451_v47 = vshrl.u32 %v5902_v19, 16  ;;  %v455_v48 = vshll.u32 %v5914_v37, 16  ;;  %v5955_v29 = vld [vmem:[%s5749_s23 + $0x70] sm:$0xff]  }
  0x88   : > { %4735 = vmatmul.mubr.msk.bf16.gmra.mrb[8].mxu0 %vm515_vm2, %v1788_v26  ;;  %v1814_v49 = vor.u32 %v1813_v36, %v1810_v33  ;;  %v449_v55 = vrot.slane %v447_v40, 1  ;;  %v445_v57 = vor.u32 %v443_v39, %v441_v32  ;;  %v1819_v58 = vrot.slane %v1817_v42, 1  ;;  %v5965_v39 = vld [vmem:[%s5749_s23 + $0x78] sm:$0xff]  }
  0x89   : > { %4738 = vmatprep.mubr.msk.bf16.mxu0 %vm515_vm2, %v1797_v31  ;;  %v1822_v60 = vrot.slane %v1820_v43, 2  ;;  %v1806_v61 = vsel %vm1726_vm3, %v1796_v10, %v1805_v45  ;;  %v457_v63 = vrot.slane %v455_v48, 1  ;;  %v4300_v11 = vcombine.low %v2167_v52, %v5782_v9  ;;  %v5957_v31 = vld [vmem:[#allocation5 + $0x8] sm:$0xf] }
  0x8a   : > { %v453_v62 = vor.u32 %v451_v47, %v449_v55  ;;  %v1815_v4 = vsel %vm1726_vm3, %v1805_v45, %v1814_v49  ;;  %v463_v12 = vshll.u32 %v5933_v56, 16  ;;  %v450_v13 = vsel %vm366_vm1, %v445_v57, %v449_v55  ;;  %5206 = vmatprep.subr.msk.bf16.mxu1 %vm570_vm0, %v5957_v31  ;;  %v5980_v55 = vld [vmem:[%s5749_s23 + $0x80] sm:$0xff]  }
  0x8b   : > { %v459_v20 = vshrl.u32 %v5914_v37, 16  ;;  %v5947_v10 = vor.u32 %v1822_v60, %v1819_v58  ;;  %v467_v23 = vshrl.u32 %v5933_v56, 16  ;;  %v471_v24 = vshll.u32 %v5938_v2, 16 }
  0x8c   : > { %v458_v22 = vsel %vm366_vm1, %v453_v62, %v457_v63  ;;  %v2174_v9 = vrot.slane %v4300_v11, 2  ;;  %v2175_v26 = vrot.slane %v5789_v14, 2  ;;  %vm2173_vm4 = vcmask 1045504  }
  0x8d   : > { %4587 = vmatmul.mubr.msk.bf16.gmra.mrb[12].mxu1 %vm515_vm2, %v434_v41  ;;  %v465_v28 = vrot.slane %v463_v12, 1  ;;  %v461_v32 = vor.u32 %v459_v20, %v457_v63  ;;  %v1824_v33 = vsel %vm1726_vm3, %v1814_v49, %v5947_v10  ;;  %v473_v14 = vrot.slane %v471_v24, 1  ;;  %v6003_v24 = vld [vmem:[%s5749_s23 + $0x90] ss:$0 sps:$4 sm:$0x11]  }
  0x8e   : > { %4590 = vmatprep.mubr.msk.bf16.mxu1 %vm515_vm2, %v442_v46  ;;  %v2176_v40 = vsel %vm2173_vm4, %v2174_v9, %v2175_v26  ;;  %v479_v41 = vshll.u32 %v5955_v29, 16  ;;  %v2177_v43 = vrot.slane %v5804_v25, 2  ;;  %v475_v45 = vshrl.u32 %v5938_v2, 16 }
  0x8f   : > { %v469_v36 = vor.u32 %v467_v23, %v465_v28  ;;  %v466_v42 = vsel %vm366_vm1, %v461_v32, %v465_v28  ;;  %v483_v47 = vshrl.u32 %v5955_v29, 16  ;;  %v487_v48 = vshll.u32 %v5965_v39, 16 }
  0x90   : > { %4739 = vmatmul.mubr.msk.bf16.gmra.mrb[12].mxu0 %vm515_vm2, %v1806_v61  ;;  %v2179_v49 = vrot.slane %v5811_v35, 2  ;;  %v481_v52 = vrot.slane %v479_v41, 1  ;;  %v477_v25 = vor.u32 %v475_v45, %v473_v14  ;;  %v2178_v57 = vsel %vm2173_vm4, %v2175_v26, %v2177_v43  ;;  %v5985_v61 = vld [vmem:[%s5749_s23 + $0x88] sm:$0xff]  }
  0x91   : > { %4742 = vmatprep.mubr.msk.bf16.mxu0 %vm515_vm2, %v1815_v4  ;;  %v474_v46 = vsel %vm366_vm1, %v469_v36, %v473_v14  ;;  %v489_v60 = vrot.slane %v487_v48, 1  ;;  %v2705_v62 = vsel %vm570_vm0, %v5922_v44, 0  ;;  %v495_v63 = vshll.u32 %v5980_v55, 16  ;;  %v5991_v4 = vld [vmem:[#allocation5 + $0x1c] sm:$0xf] }
  0x92   : > { %v485_v58 = vor.u32 %v483_v47, %v481_v52  ;;  %v2180_v35 = vsel %vm2173_vm4, %v2177_v43, %v2179_v49  ;;  %v482_v11 = vsel %vm366_vm1, %v477_v25, %v481_v52  ;;  %v2181_v12 = vrot.slane %v5831_v54, 2  ;;  %v6034_v25 = vld [vmem:[%s5749_s23 + $0x60] sm:$0xff]  }
  0x93   : > { %v499_v44 = vshrl.u32 %v5980_v55, 16  ;;  %v2183_v23 = vrot.slane %v5847_v17, 2  ;;  %v497_v54 = vrot.slane %v495_v63, 1  ;;  %v507_v36 = vshrl.u32 %v5985_v61, 16 }
  0x94   : > { %v490_v20 = vsel %vm366_vm1, %v485_v58, %v489_v60  ;;  %v2182_v26 = vsel %vm2173_vm4, %v2179_v49, %v2181_v12  ;;  %v511_v14 = vshll.u32 %v6003_v24, 16  ;;  %v6042_v58 = vld [vmem:[#allocation5 + $0xc] sm:$0xf]  ;;  %vm973_vm5 = vcmask 1046528  }
  0x95   : > { %4591 = vmatmul.mubr.msk.bf16.gmra.mrb[16].mxu1 %vm515_vm2, %v450_v13  ;;  %v491_v13 = vshrl.u32 %v5965_v39, 16  ;;  %v501_v28 = vor.u32 %v499_v44, %v497_v54  ;;  %vm2926_vm6 = vsmask.f32 5376  ;;  %vm3373_vm7 = vcmask 1044480  }
  0x96   : > { %4594 = vmatprep.mubr.msk.bf16.mxu1 %vm515_vm2, %v458_v22  ;;  %v503_v22 = vshll.u32 %v5985_v61, 16  ;;  %v513_v45 = vrot.slane %v511_v14, 1 }
  0x97   : > { %v493_v9 = vor.u32 %v491_v13, %v489_v60  ;;  %v6050_v60 = vld [vmem:[%s5749_s23 + $0x68] sm:$0xff]   ;;  %v6072_v13 = vld [vmem:[%s5749_s23 + $0x80] sm:$0xff]  }
  0x98   : > { %4743 = vmatmul.mubr.msk.bf16.gmra.mrb[16].mxu0 %vm515_vm2, %v1824_v33  ;;  %v505_v32 = vrot.slane %v503_v22, 1  ;;  %v2184_v33 = vsel %vm2173_vm4, %v2181_v12, %v2183_v23  ;;  %v2203_v44 = vrot.slane %v6072_v13, 2 }
  0x99   : > { %4764 = vmatprep.mubr.msk.bf16.mxu0 %vm515_vm2, %v2176_v40  ;;  %v498_v17 = vsel %vm366_vm1, %v493_v9, %v497_v54  ;;  %v2185_v40 = vrot.slane %v5855_v21, 2  ;;  %v2189_v21 = vrot.slane %v5884_v53, 2  ;;  %v2193_v53 = vrot.slane %v5910_v30, 2  ;;  %v6088_v9 = vld [vmem:[%s5749_s23 + $0x90] sm:$0xff]  }
  0x9a   : > { %v506_v41 = vsel %vm366_vm1, %v501_v28, %v505_v32  ;;  %v509_v43 = vor.u32 %v507_v36, %v505_v32  ;;  %v2207_v28 = vrot.slane %v6088_v9, 2  ;;  %v2481_v32 = vld [vmem:[%s5749_s23 + $0x10] sm:$0xc]  ;;  %v6104_v36 = vld [vmem:[%s5749_s23 + $0x98] ss:$0 sps:$4 sm:$0x33]  }
  0x9c   : > { %v514_v48 = vsel %vm366_vm1, %v509_v43, %v513_v45 }
  0x9d   : > { %4595 = vmatmul.mubr.msk.bf16.gmra.mrb[20].mxu1 %vm515_vm2, %v466_v42  ;;  %v2187_v42 = vrot.slane %v5871_v38, 2  ;;  %v2191_v38 = vrot.slane %v5897_v8, 2  ;;  %v1066_v8 = vsel %vm570_vm0, %v5957_v31, 0  ;;  %v6056_v31 = vld [vmem:[%s5749_s23 + $0x70] sm:$0xff]  }
  0x9e   : > { %4598 = vmatprep.mubr.msk.bf16.mxu1 %vm515_vm2, %v474_v46  ;;  %v2186_v46 = vsel %vm2173_vm4, %v2183_v23, %v2185_v40  ;;  %v6084_v23 = vld [vmem:[%s5749_s23 + $0x88] sm:$0xff]  }
  0x9f   : > { %v2188_v47 = vsel %vm2173_vm4, %v2185_v40, %v2187_v42  ;;  %v2190_v49 = vsel %vm2173_vm4, %v2187_v42, %v2189_v21  ;;  %v2192_v52 = vsel %vm2173_vm4, %v2189_v21, %v2191_v38  ;;  %v2209_v42 = vrot.slane %v6104_v36, 2  ;;  %v6128_v21 = vld [vmem:[%s5749_s23 + $0x28] sm:$0xff]  }
  0xa0   : > { %4765 = vmatmul.mubr.msk.bf16.vlgmr.msra.gmra.mrb[0].mxu0 %vm515_vm2, %v2178_v57  ;;  %v2195_v57 = vrot.slane %v6034_v25, 2 }
  0xa1   : > { %4801 = vmatpush3.bf16.msra.mxu0 %v2705_v62  ;;  %4768 = vmatprep.mubr.msk.bf16.mxu0 %vm515_vm2, %v2180_v35  ;;  %v2197_v62 = vrot.slane %v6050_v60, 2  ;;  %v2199_v35 = vrot.slane %v6056_v31, 2 }
  0xa2   : > { %5212 = vmatprep.subr.msk.bf16.mxu0 %vm570_vm0, %v5991_v4  ;;  %v2196_v30 = vsel %vm2173_vm4, %v2193_v53, %v2195_v57 }
  0xa3   : > { %v2198_v63 = vsel %vm2173_vm4, %v2195_v57, %v2197_v62  ;;  %v2200_v12 = vsel %vm2173_vm4, %v2197_v62, %v2199_v35 }
  0xa5   : > { %4599 = vmatmul.mubr.msk.bf16.gmra.mrb[24].mxu1 %vm515_vm2, %v482_v11  ;;  %v6068_v11 = vld [vmem:[%s5749_s23 + $0x78] sm:$0xff]  }
  0xa6   : > { %4602 = vmatprep.mubr.msk.bf16.mxu1 %vm515_vm2, %v490_v20  ;;  %v2201_v20 = vrot.slane %v6068_v11, 2 }
  0xa8   : > { %4769 = vmatmul.mubr.msk.bf16.gmra.mrb[4].mxu0 %vm515_vm2, %v2182_v26  ;;  %v2202_v22 = vsel %vm2173_vm4, %v2199_v35, %v2201_v20  ;;  %v2204_v54 = vsel %vm2173_vm4, %v2201_v20, %v2203_v44  ;;  %v2205_v26 = vrot.slane %v6084_v23, 2  ;;  %v6166_v20 = vld [vmem:[%s5749_s23 + $0x48] sm:$0xff]  }
  0xa9   : > { %4772 = vmatprep.mubr.msk.bf16.mxu0 %vm515_vm2, %v2184_v33  ;;  %v6098_v33 = vld [vmem:[%s5749_s23 + $0x14] sm:$0xf] }
  0xaa   : > { %v2208_v14 = vsel %vm2173_vm4, %v2205_v26, %v2207_v28  ;;  %v6108_v40 = vcombine.low %v2481_v32, %v6098_v33  ;;  %v6180_v32 = vld [vmem:[%s5749_s23 + $0x50] sm:$0xff]  }
  0xac   : > { %v2613_v43 = vrot.slane %v6108_v40, 2 }
  0xad   : > { %4603 = vmatmul.mubr.msk.bf16.gmra.mrb[28].mxu1 %vm515_vm2, %v498_v17  ;;  %v2206_v17 = vsel %vm2173_vm4, %v2203_v44, %v2205_v26  ;;  %v967_v44 = vld [vmem:[%s5749_s23] sm:$0xe]  ;;  %v2626_v26 = vrot.slane %v6166_v20, 2 }
  0xae   : > { %4606 = vmatprep.mubr.msk.bf16.mxu1 %vm515_vm2, %v506_v41  ;;  %v6111_v41 = vld [vmem:[%s5749_s23 + $0x18] sm:$0xff]  }
  0xaf   : > { %v2614_v45 = vrot.slane %v6111_v41, 2 }
  0xb0   : > { %4773 = vmatmul.mubr.msk.bf16.gmra.mrb[8].mxu0 %vm515_vm2, %v2186_v46  ;;  %v2210_v46 = vsel %vm2173_vm4, %v2207_v28, %v2209_v42 }
  0xb1   : > { %4776 = vmatprep.mubr.msk.bf16.mxu0 %vm515_vm2, %v2188_v47  ;;  %v6124_v47 = vld [vmem:[%s5749_s23 + $0x20] sm:$0xff]  }
  0xb5   : > { %4607 = vmatmul.mubr.msk.bf16.gmra.mrb[32].mxu1 %vm515_vm2, %v514_v48  ;;  %v2615_v48 = vsel %vm2173_vm4, %v2613_v43, %v2614_v45  ;;  %v2628_v43 = vrot.slane %v6180_v32, 2 }
  0xb6   : > { %4612 = vmatprep.mubr.msk.bf16.mxu1 %vm515_vm2, %v5775_v6  ;;  %v2194_v6 = vsel %vm2173_vm4, %v2191_v38, %v2193_v53  ;;  %v2616_v38 = vrot.slane %v6124_v47, 2  ;;  %v6140_v53 = vld [vmem:[%s5749_s23 + $0x30] sm:$0xff]  }
  0xb7   : > { %v2620_v62 = vrot.slane %v6140_v53, 2 }
  0xb8   : > { %4777 = vmatmul.mubr.msk.bf16.gmra.mrb[12].mxu0 %vm515_vm2, %v2190_v49  ;;  %v2618_v49 = vrot.slane %v6128_v21, 2 }
  0xb9   : > { %4780 = vmatprep.mubr.msk.bf16.mxu0 %vm515_vm2, %v2192_v52  ;;  %v2617_v52 = vsel %vm2173_vm4, %v2614_v45, %v2616_v38 }
  0xba   : > { %v2619_v57 = vsel %vm2173_vm4, %v2616_v38, %v2618_v49  ;;  %v6198_v38 = vld [vmem:[%s5749_s23 + $0x60] sm:$0xff]  }
  0xbd   : > { %4613 = vmatmul.mubr.msk.bf16.vlgmr.msra.gmra.mrb[0].mxu1 %vm515_vm2, %v5778_v7 }
  0xbe   : > { %4616 = vmatprep.mubr.msk.bf16.mxu1 %vm515_vm2, %v5792_v15  ;;  %4649 = vmatpush3.bf16.msra.mxu1 %v1066_v8  ;;  %v3152_v8 = vsel %vm570_vm0, %v5991_v4, 0  ;;  %v2621_v4 = vsel %vm2173_vm4, %v2618_v49, %v2620_v62  ;;  %v979_v49 = vrot.slane %v5808_v34, 1 }
  0xbf   : > { %5207 = vmatprep.subr.msk.bf16.mxu1 %vm570_vm0, %v6042_v58 }
  0xc0   : > { %4781 = vmatmul.mubr.msk.bf16.gmra.mrb[16].mxu0 %vm515_vm2, %v2194_v6  ;;  %v6146_v6 = vld [vmem:[%s5749_s23 + $0x38] sm:$0xff]  }
  0xc1   : > { %4784 = vmatprep.mubr.msk.bf16.mxu0 %vm515_vm2, %v2196_v30  ;;  %v6148_v30 = vld [vmem:[#allocation5 + $0x20] sm:$0xf]  ;;  %v2622_v35 = vrot.slane %v6146_v6, 2 }
  0xc5   : > { %4617 = vmatmul.mubr.msk.bf16.gmra.mrb[4].mxu1 %vm515_vm2, %v5808_v34 }
  0xc6   : > { %4620 = vmatprep.mubr.msk.bf16.mxu1 %vm515_vm2, %v5826_v51 }
  0xc8   : > { %4785 = vmatmul.mubr.msk.bf16.gmra.mrb[20].mxu0 %vm515_vm2, %v2198_v63  ;;  %v6162_v63 = vld [vmem:[%s5749_s23 + $0x40] sm:$0xff]  }
  0xc9   : > { %4788 = vmatprep.mubr.msk.bf16.mxu0 %vm515_vm2, %v2200_v12  ;;  %v2623_v12 = vsel %vm2173_vm4, %v2620_v62, %v2622_v35  ;;  %v2632_v62 = vrot.slane %v6198_v38, 2 }
  0xcd   : > { %4621 = vmatmul.mubr.msk.bf16.gmra.mrb[8].mxu1 %vm515_vm2, %v5835_v59 }
  0xce   : > { %4624 = vmatprep.mubr.msk.bf16.mxu1 %vm515_vm2, %v5850_v18 }
  0xd0   : > { %4789 = vmatmul.mubr.msk.bf16.gmra.mrb[24].mxu0 %vm515_vm2, %v2202_v22  ;;  %v2624_v22 = vrot.slane %v6162_v63, 2 }
  0xd1   : > { %4792 = vmatprep.mubr.msk.bf16.mxu0 %vm515_vm2, %v2204_v54  ;;  %v4225_v54 = vcombine.low %v967_v44, %v5771_v5  ;;  %v6185_v5 = vld [vmem:[%s5749_s23 + $0x58] sm:$0xff]  }
  0xd2   : > { %v2625_v28 = vsel %vm2173_vm4, %v2622_v35, %v2624_v22  ;;  %v2627_v42 = vsel %vm2173_vm4, %v2624_v22, %v2626_v26  ;;  %v1505_v35 = vsel %vm570_vm0, %v6042_v58, 0  ;;  %v6218_v22 = vld [vmem:[%s5749_s23 + $0x70] sm:$0xff]  }
  0xd5   : > { %4625 = vmatmul.mubr.msk.bf16.gmra.mrb[12].mxu1 %vm515_vm2, %v5860_v27 }
  0xd6   : > { %4628 = vmatprep.mubr.msk.bf16.mxu1 %vm515_vm2, %v5880_v50 }
  0xd8   : > { %4793 = vmatmul.mubr.msk.bf16.gmra.mrb[28].mxu0 %vm515_vm2, %v2206_v17  ;;  %v974_v17 = vrot.slane %v4225_v54, 1  ;;  %v983_v54 = vrot.slane %v5835_v59, 1 }
  0xd9   : > { %4796 = vmatprep.mubr.msk.bf16.mxu0 %vm515_vm2, %v2208_v14  ;;  %v975_v14 = vrot.slane %v5778_v7, 1  ;;  %v977_v7 = vrot.slane %v5792_v15, 1 }
  0xdb   : > { %v976_v45 = vsel %vm973_vm5, %v974_v17, %v975_v14  ;;  %v980_v15 = vsel %vm973_vm5, %v977_v7, %v979_v49  ;;  %v3681_v17 = vld [vmem:[#allocation7] sm:$0xff] }
  0xdd   : > { %4629 = vmatmul.mubr.msk.bf16.gmra.mrb[16].mxu1 %vm515_vm2, %v5891_v1 }
  0xde   : > { %4632 = vmatprep.mubr.msk.bf16.mxu1 %vm515_vm2, %v5902_v19 }
  0xe0   : > { %4797 = vmatmul.mubr.msk.bf16.gmra.mrb[32].mxu0 %vm515_vm2, %v2210_v46  ;;  %v2630_v46 = vrot.slane %v6185_v5, 2 }
  0xe1   : > { %4802 = vmatprep.mubr.msk.bf16.mxu0 %vm515_vm2, %v2615_v48  ;;  %v2629_v48 = vsel %vm2173_vm4, %v2626_v26, %v2628_v43  ;;  %v6225_v26 = vld [vmem:[%s5749_s23 + $0x78] sm:$0xff]  }
  0xe2   : > { %v2633_v44 = vsel %vm2173_vm4, %v2630_v46, %v2632_v62 }
  0xe5   : > { %4633 = vmatmul.mubr.msk.bf16.gmra.mrb[20].mxu1 %vm515_vm2, %v5914_v37 }
  0xe6   : > { %4636 = vmatprep.mubr.msk.bf16.mxu1 %vm515_vm2, %v5933_v56 }
  0xe8   : > { %4803 = vmatmul.mubr.msk.bf16.vlgmr.msra.gmra.mrb[0].mxu0 %vm515_vm2, %v2617_v52  ;;  %v2631_v52 = vsel %vm2173_vm4, %v2628_v43, %v2630_v46  ;;  %v3682_v43 = vld [vmem:[#allocation7 + $0x8] sm:$0xff] }
  0xe9   : > { %4839 = vmatpush3.bf16.msra.mxu0 %v3152_v8  ;;  %4806 = vmatprep.mubr.msk.bf16.mxu0 %vm515_vm2, %v2619_v57  ;;  %v6203_v8 = vld [vmem:[%s5749_s23 + $0x68] sm:$0xff]   ;;  %v978_v57 = vsel %vm973_vm5, %v975_v14, %v977_v7  ;;  %v2636_v14 = vrot.slane %v6218_v22, 2  ;;  %v6238_v7 = vld [vmem:[%s5749_s23 + $0x80] sm:$0xff]  }
  0xea   : > { %5213 = vmatprep.subr.msk.bf16.mxu0 %vm570_vm0, %v6148_v30  ;;  %v2634_v34 = vrot.slane %v6203_v8, 2 }
  0xec   : > { %v2635_v58 = vsel %vm2173_vm4, %v2632_v62, %v2634_v34  ;;  %v2637_v46 = vsel %vm2173_vm4, %v2634_v34, %v2636_v14  ;;  %v3686_v62 = vld [vmem:[#allocation7 + $0x28] sm:$0xff]  ;;  %v3688_v34 = vld [vmem:[#allocation7 + $0x38] sm:$0xff] }
  0xed   : > { %4637 = vmatmul.mubr.msk.bf16.gmra.mrb[24].mxu1 %vm515_vm2, %v5938_v2 }
  0xee   : > { %4640 = vmatprep.mubr.msk.bf16.mxu1 %vm515_vm2, %v5955_v29 }
  0xf0   : > { %4807 = vmatmul.mubr.msk.bf16.gmra.mrb[4].mxu0 %vm515_vm2, %v2621_v4  ;;  %v5564_v4 = vmov 0  }
  0xf1   : > { %4810 = vmatprep.mubr.msk.bf16.mxu0 %vm515_vm2, %v2623_v12  ;;  %5298 = vset.pattern.permute.xlu1 %v5564_v4  ;;  %v981_v12 = vrot.slane %v5826_v51, 1  ;;  %v3683_v51 = vld [vmem:[#allocation7 + $0x10] sm:$0xff] }
  0xf2   : > { %5297 = vset.pattern.permute.xlu0 %v5564_v4  ;;  %3729 = vperm.xlu1 %5298, %v3683_v51   ;;  %v3687_v4 = vld [vmem:[#allocation7 + $0x30] sm:$0xff] }
  0xf3   : > { %v984_v59 = vsel %vm973_vm5, %v981_v12, %v983_v54  ;;  %3719 = vperm.xlu0 %5297, %v3681_v17  }
  0xf5   : > { %4641 = vmatmul.mubr.msk.bf16.gmra.mrb[28].mxu1 %vm515_vm2, %v5965_v39 }
  0xf6   : > { %4644 = vmatprep.mubr.msk.bf16.mxu1 %vm515_vm2, %v5980_v55 }
  0xf7   : > { %3724 = vperm.xlu0 %5297, %v3682_v43   ;;  %v2931_v43 = vshll.u32 %v6108_v40, 16 }
  0xf8   : > { %4811 = vmatmul.mubr.msk.bf16.gmra.mrb[8].mxu0 %vm515_vm2, %v2625_v28  ;;  %v982_v28 = vsel %vm973_vm5, %v979_v49, %v981_v12  ;;  %v989_v12 = vrot.slane %v5880_v50, 1 }
  0xf9   : > { %4814 = vmatprep.mubr.msk.bf16.mxu0 %vm515_vm2, %v2627_v42  ;;  %v3684_v42 = vld [vmem:[#allocation7 + $0x18] sm:$0xff] }
  0xfa   : > { %3734 = vperm.xlu1 %5298, %v3684_v42   ;;  %v2928_v42 = vshrl.u32 %v6108_v40, 16  ;;  %v995_v40 = vrot.slane %v5914_v37, 1  ;;  %v2948_v37 = vshll.u32 %v6124_v47, 16 }
  0xfd   : > { %4645 = vmatmul.mubr.msk.bf16.gmra.mrb[32].mxu1 %vm515_vm2, %v5985_v61 }
  0xfe   : > { %4650 = vmatprep.mubr.msk.bf16.mxu1 %vm515_vm2, %v976_v45  ;;  %v985_v45 = vrot.slane %v5850_v18, 1  ;;  %v3685_v18 = vld [vmem:[#allocation7 + $0x20] sm:$0xff]  ;;  %3744 = vperm.xlu1 %5298, %v3686_v62  }
  0xff   : > { %3739 = vperm.xlu0 %5297, %v3685_v18  }
 0x100   : > { %4815 = vmatmul.mubr.msk.bf16.gmra.mrb[12].mxu0 %vm515_vm2, %v2629_v48  ;;  %v987_v48 = vrot.slane %v5860_v27, 1 }
 0x101   : > { %4818 = vmatprep.mubr.msk.bf16.mxu0 %vm515_vm2, %v2631_v52  ;;  %v6243_v52 = vld [vmem:[%s5749_s23 + $0x88] sm:$0xff]  }
 0x102   : > { %v988_v27 = vsel %vm973_vm5, %v985_v45, %v987_v48  ;;  %3754 = vperm.xlu1 %5298, %v3688_v34   ;;  %v990_v17 = vsel %vm973_vm5, %v987_v48, %v989_v12  ;;  %v3692_v48 = vld [vmem:[#allocation7 + $0x58] sm:$0xff]  ;;  %v2933_v34 = vrot.slane %v2931_v43, 3  ;;  %v3695_v43 = vld [vmem:[#allocation7 + $0x70] sm:$0xff] }
 0x103   : > { %3749 = vperm.xlu0 %5297, %v3687_v4  }
 0x105   : > { %4651 = vmatmul.mubr.msk.bf16.vlgmr.msra.gmra.mrb[0].mxu1 %vm515_vm2, %v978_v57  ;;  %v986_v57 = vsel %vm973_vm5, %v983_v54, %v985_v45  ;;  %v6256_v54 = vld [vmem:[%s5749_s23 + $0x90] sm:$0xff]   ;;  %v2936_v45 = vshrl.u32 %v6111_v41, 16 }
 0x106   : > { %4654 = vmatprep.mubr.msk.bf16.mxu1 %vm515_vm2, %v980_v15  ;;  %4687 = vmatpush3.bf16.msra.mxu1 %v1505_v35  ;;  %v2640_v15 = vrot.slane %v6238_v7, 2  ;;  %v2642_v35 = vrot.slane %v6243_v52, 2  ;;  %v2644_v50 = vrot.slane %v6256_v54, 2 }
 0x107   : > { %5209 = vmatprep.subr.msk.bf16.mxu1 %vm570_vm0, %v5759_v0  ;;  %v2638_v0 = vrot.slane %v6225_v26, 2  ;;  %v2938_v4 = vrot.slane %v2936_v45, 2  ;;  %v997_v45 = vrot.slane %v5933_v56, 1 }
 0x108   : > { %4819 = vmatmul.mubr.msk.bf16.gmra.mrb[16].mxu0 %vm515_vm2, %v2633_v44  ;;  %v2643_v51 = vsel %vm2173_vm4, %v2640_v15, %v2642_v35  ;;  %v2645_v62 = vsel %vm2173_vm4, %v2642_v35, %v2644_v50 }
 0x109   : > { %4822 = vmatprep.mubr.msk.bf16.mxu0 %vm515_vm2, %v2635_v58  ;;  %v2639_v49 = vsel %vm2173_vm4, %v2636_v14, %v2638_v0  ;;  %v2641_v44 = vsel %vm2173_vm4, %v2638_v0, %v2640_v15  ;;  %v991_v58 = vrot.slane %v5891_v1, 1  ;;  %v3690_v14 = vld [vmem:[#allocation7 + $0x48] sm:$0xff]  ;;  %v5357_v15 = vld [vmem:[%s5749_s23 + $0xa0] ss:$0 sps:$4 sm:$0x33]  }
 0x10a   : > { %3764 = vperm.xlu1 %5298, %v3690_v14   ;;  %v2945_v14 = vshrl.u32 %v6124_v47, 16 }
 0x10b   : > { %v992_v0 = vsel %vm973_vm5, %v989_v12, %v991_v58 }
 0x10d   : > { %4655 = vmatmul.mubr.msk.bf16.gmra.mrb[4].mxu1 %vm515_vm2, %v982_v28  ;;  %v6260_v28 = vld [vmem:[%s5749_s23 + $0x98] sm:$0xff]  }
 0x10e   : > { %4658 = vmatprep.mubr.msk.bf16.mxu1 %vm515_vm2, %v984_v59  ;;  %v3689_v59 = vld [vmem:[#allocation7 + $0x40] sm:$0xff]  ;;  %v2646_v1 = vrot.slane %v6260_v28, 2  ;;  %3774 = vperm.xlu1 %5298, %v3692_v48   ;;  %v2947_v48 = vrot.slane %v2945_v14, 2 }
 0x10f   : > { %3759 = vperm.xlu0 %5297, %v3689_v59  }
 0x110   : > { %4823 = vmatmul.mubr.msk.bf16.gmra.mrb[20].mxu0 %vm515_vm2, %v2637_v46  ;;  %v2939_v46 = vshll.u32 %v6111_v41, 16  ;;  %v2647_v18 = vsel %vm2173_vm4, %v2644_v50, %v2646_v1 }
 0x111   : > { %4826 = vmatprep.mubr.msk.bf16.mxu0 %vm515_vm2, %v2639_v49  ;;  %v3691_v49 = vld [vmem:[#allocation7 + $0x50] sm:$0xff] }
 0x112   : > { %v2941_v12 = vrot.slane %v2939_v46, 3 }
 0x113   : > { %3769 = vperm.xlu0 %5297, %v3691_v49   ;;  %v2950_v49 = vrot.slane %v2948_v37, 3 }
 0x114   : > { %v2942_v50 = vor.u32 %v2941_v12, %v2938_v4  ;;  %v3697_v4 = vld [vmem:[#allocation7 + $0x80] sm:$0xff]  ;;  %v2963_v12 = vshrl.u32 %v6140_v53, 16 }
 0x115   : > { %4659 = vmatmul.mubr.msk.bf16.gmra.mrb[8].mxu1 %vm515_vm2, %v986_v57  ;;  %v993_v57 = vrot.slane %v5902_v19, 1  ;;  %v2648_v19 = vrot.slane %v5357_v15, 2  ;;  %v2951_v56 = vor.u32 %v2950_v49, %v2947_v48  ;;  %v3701_v48 = vld [vmem:[#allocation7 + $0xa0] sm:$0xff]  ;;  %v2981_v49 = vshrl.u32 %v6162_v63, 16 }
 0x116   : > { %4662 = vmatprep.mubr.msk.bf16.mxu1 %vm515_vm2, %v988_v27  ;;  %v2930_v27 = vrot.slane %v2928_v42, 2  ;;  %v2957_v42 = vshll.u32 %v6128_v21, 16  ;;  %v2965_v37 = vrot.slane %v2963_v12, 2  ;;  %v1007_v12 = vrot.slane %v5985_v61, 1 }
 0x117   : > { %v996_v35 = vsel %vm973_vm5, %v993_v57, %v995_v40  ;;  %v2649_v46 = vsel %vm2173_vm4, %v2646_v1, %v2648_v19  ;;  %v3700_v19 = vld [vmem:[#allocation7 + $0x98] sm:$0xff]  ;;  %v2952_v14 = vsel %vm2926_vm6, %v2942_v50, %v2951_v56  ;;  %v3002_v61 = vshll.u32 %v6180_v32, 16 }
 0x118   : > { %4827 = vmatmul.mubr.msk.bf16.gmra.mrb[24].mxu0 %vm515_vm2, %v2641_v44  ;;  %v994_v44 = vsel %vm973_vm5, %v991_v58, %v993_v57  ;;  %v2934_v59 = vor.u32 %v2933_v34, %v2930_v27  ;;  %v3696_v58 = vld [vmem:[#allocation7 + $0x78] sm:$0xff]  ;;  %v999_v57 = vrot.slane %v5938_v2, 1  ;;  %v2959_v15 = vrot.slane %v2957_v42, 3  ;;  %v3698_v34 = vld [vmem:[#allocation7 + $0x88] sm:$0xff] }
 0x119   : > { %4830 = vmatprep.mubr.msk.bf16.mxu0 %vm515_vm2, %v2643_v51  ;;  %v3694_v51 = vld [vmem:[#allocation7 + $0x68] sm:$0xff]  ;;  %v998_v27 = vsel %vm973_vm5, %v995_v40, %v997_v45  ;;  %v2966_v2 = vshll.u32 %v6140_v53, 16  ;;  %v3699_v40 = vld [vmem:[#allocation7 + $0x90] sm:$0xff]  ;;  %v3466_v42 = vsel %vm570_vm0, %v6148_v30, 0  ;;  %v2984_v30 = vshll.u32 %v6162_v63, 16 }
 0x11a   : > { %3784 = vperm.xlu1 %5298, %v3694_v51   ;;  %v1000_v1 = vsel %vm973_vm5, %v997_v45, %v999_v57  ;;  %v2972_v51 = vshrl.u32 %v6146_v6, 16 }
 0x11d   : > { %4663 = vmatmul.mubr.msk.bf16.gmra.mrb[12].mxu1 %vm515_vm2, %v990_v17  ;;  %v3693_v17 = vld [vmem:[#allocation7 + $0x60] sm:$0xff] }
 0x11e   : > { %4666 = vmatprep.mubr.msk.bf16.mxu1 %vm515_vm2, %v992_v0  ;;  %v2954_v0 = vshrl.u32 %v6128_v21, 16  ;;  %3779 = vperm.xlu0 %5297, %v3693_v17   ;;  %v2975_v17 = vshll.u32 %v6146_v6, 16 }
 0x11f   : > { %3794 = vperm.xlu1 %5298, %v3696_v58  }
 0x120   : > { %4831 = vmatmul.mubr.msk.bf16.gmra.mrb[28].mxu0 %vm515_vm2, %v2645_v62  ;;  %v2943_v62 = vsel %vm2926_vm6, %v2934_v59, %v2942_v50  ;;  %v2968_v59 = vrot.slane %v2966_v2, 3  ;;  %v2977_v45 = vrot.slane %v2975_v17, 3 }
 0x121   : > { %4834 = vmatprep.mubr.msk.bf16.mxu0 %vm515_vm2, %v2647_v18  ;;  %v2956_v18 = vrot.slane %v2954_v0, 2  ;;  %v1003_v0 = vrot.slane %v5965_v39, 1 }
 0x122   : > { %3789 = vperm.xlu0 %5297, %v3695_v43   ;;  %v2974_v43 = vrot.slane %v2972_v51, 2  ;;  %v2969_v50 = vor.u32 %v2968_v59, %v2965_v37  ;;  %v3008_v59 = vshrl.u32 %v6185_v5, 16 }
 0x123   : > { %3804 = vperm.xlu1 %5298, %v3698_v34   ;;  %v1005_v34 = vrot.slane %v5980_v55, 1  ;;  %v3705_v55 = vld [vmem:[#allocation7 + $0xc0] sm:$0xff] }
 0x125   : > { %4667 = vmatmul.mubr.msk.bf16.gmra.mrb[16].mxu1 %vm515_vm2, %v994_v44  ;;  %v2960_v44 = vor.u32 %v2959_v15, %v2956_v18  ;;  %v2990_v18 = vshrl.u32 %v6166_v20, 16  ;;  %v2993_v15 = vshll.u32 %v6166_v20, 16 }
 0x126   : > { %4670 = vmatprep.mubr.msk.bf16.mxu1 %vm515_vm2, %v996_v35  ;;  %3799 = vperm.xlu0 %5297, %v3697_v4   ;;  %v1001_v35 = vrot.slane %v5955_v29, 1  ;;  %v3702_v29 = vld [vmem:[#allocation7 + $0xa8] sm:$0xff] }
 0x127   : > { %3814 = vperm.xlu1 %5298, %v3700_v19   ;;  %v2961_v58 = vsel %vm2926_vm6, %v2951_v56, %v2960_v44  ;;  %v2970_v4 = vsel %vm2926_vm6, %v2960_v44, %v2969_v50  ;;  %v2983_v56 = vrot.slane %v2981_v49, 2  ;;  %v2992_v51 = vrot.slane %v2990_v18, 2 }
 0x128   : > { %4835 = vmatmul.mubr.msk.bf16.gmra.mrb[32].mxu0 %vm515_vm2, %v2649_v46  ;;  %v1002_v46 = vsel %vm973_vm5, %v999_v57, %v1001_v35  ;;  %v1004_v39 = vsel %vm973_vm5, %v1001_v35, %v1003_v0  ;;  %v3704_v57 = vld [vmem:[#allocation7 + $0xb8] sm:$0xff]  ;;  %v2995_v17 = vrot.slane %v2993_v15, 3  ;;  %v1006_v19 = vsel %vm973_vm5, %v1003_v0, %v1005_v34  ;;  %v3706_v35 = vld [vmem:[#allocation7 + $0xc8] sm:$0xff] }
 0x129   : > { %4840 = vmatprep.mubr.msk.bf16.mxu0 %vm515_vm2, %v2943_v62  ;;  %v2978_v62 = vor.u32 %v2977_v45, %v2974_v43  ;;  %v3708_v0 = vld [vmem:[#allocation7 + $0xd8] sm:$0xff]  ;;  %v1009_v43 = vrot.slane %v6003_v24, 1  ;;  %v3710_v15 = vld [vmem:[#allocation7 + $0xe8] sm:$0xff] }
 0x12a   : > { %3809 = vperm.xlu0 %5297, %v3699_v40   ;;  %v2999_v40 = vshrl.u32 %v6180_v32, 16  ;;  %v2996_v37 = vor.u32 %v2995_v17, %v2992_v51  ;;  %v5362_v51 = vld [vmem:[%s5749_s23 + $0x18] sm:$0xff]  }
 0x12b   : > { %3824 = vperm.xlu1 %5298, %v3702_v29   ;;  %v2979_v2 = vsel %vm2926_vm6, %v2969_v50, %v2978_v62  ;;  %v3004_v29 = vrot.slane %v3002_v61, 3  ;;  %v5361_v50 = vld [vmem:[%s5749_s23 + $0x10] sm:$0xff]   ;;  %v1010_v24 = vsel %vm973_vm5, %v1007_v12, %v1009_v43  ;;  %v1416_v17 = vrot.slane %v5362_v51, 1 }
 0x12c   : > { %v3001_v45 = vrot.slane %v2999_v40, 2 }
 0x12d   : > { %4671 = vmatmul.mubr.msk.bf16.gmra.mrb[20].mxu1 %vm515_vm2, %v998_v27  ;;  %v3703_v27 = vld [vmem:[#allocation7 + $0xb0] sm:$0xff] }
 0x12e   : > { %4674 = vmatprep.mubr.msk.bf16.mxu1 %vm515_vm2, %v1000_v1  ;;  %3819 = vperm.xlu0 %5297, %v3701_v48   ;;  %v2986_v1 = vrot.slane %v2984_v30, 3  ;;  %v1413_v48 = vrot.slane %v5795_v16, 1  ;;  %v3010_v30 = vrot.slane %v3008_v59, 2 }
 0x12f   : > { %3834 = vperm.xlu1 %5298, %v3704_v57   ;;  %v3709_v57 = vld [vmem:[#allocation7 + $0xe0] sm:$0xff] }
 0x130   : > { %4841 = vmatmul.mubr.msk.bf16.vlgmr.msra.gmra.mrb[0].mxu0 %vm515_vm2, %v2952_v14  ;;  %v2987_v44 = vor.u32 %v2986_v1, %v2983_v56  ;;  %v1008_v14 = vsel %vm973_vm5, %v1005_v34, %v1007_v12  ;;  %v3020_v34 = vshll.u32 %v6198_v38, 16  ;;  %v3026_v56 = vshrl.u32 %v6203_v8, 16  ;;  %v3712_v12 = vld [vmem:[#allocation7 + $0xf8] sm:$0xff] }
 0x131   : > { %4877 = vmatpush3.bf16.msra.mxu0 %v3466_v42  ;;  %4844 = vmatprep.mubr.msk.bf16.mxu0 %vm515_vm2, %v2961_v58  ;;  %v3011_v42 = vshll.u32 %v6185_v5, 16  ;;  %v3707_v58 = vld [vmem:[#allocation7 + $0xd0] sm:$0xff]  ;;  %v3029_v1 = vshll.u32 %v6203_v8, 16 }
 0x132   : > { %3829 = vperm.xlu0 %5297, %v3703_v27   ;;  %v2997_v49 = vsel %vm2926_vm6, %v2987_v44, %v2996_v37  ;;  %v3017_v27 = vshrl.u32 %v6198_v38, 16  ;;  %v3028_v61 = vrot.slane %v3026_v56, 2 }
 0x133   : > { %3844 = vperm.xlu1 %5298, %v3706_v35   ;;  %v3013_v18 = vrot.slane %v3011_v42, 3  ;;  %v3022_v35 = vrot.slane %v3020_v34, 3  ;;  %v3031_v59 = vrot.slane %v3029_v1, 3  ;;  %v3714_v42 = vld [vmem:[#allocation7 + $0x108] sm:$0xff] }
 0x134   : > { %v3019_v40 = vrot.slane %v3017_v27, 2 }
 0x135   : > { %4675 = vmatmul.mubr.msk.bf16.gmra.mrb[24].mxu1 %vm515_vm2, %v1002_v46  ;;  %v2988_v46 = vsel %vm2926_vm6, %v2978_v62, %v2987_v44  ;;  %v3005_v62 = vor.u32 %v3004_v29, %v3001_v45  ;;  %v3035_v45 = vshrl.u32 %v6218_v22, 16  ;;  %v3032_v29 = vor.u32 %v3031_v59, %v3028_v61  ;;  %v5367_v61 = vld [vmem:[%s5749_s23 + $0x40] sm:$0xff]  }
 0x136   : > { %4678 = vmatprep.mubr.msk.bf16.mxu1 %vm515_vm2, %v1004_v39  ;;  %3839 = vperm.xlu0 %5297, %v3705_v55   ;;  %v1414_v39 = vrot.slane %v5361_v50, 1  ;;  %v5363_v55 = vld [vmem:[%s5749_s23 + $0x20] sm:$0xff]   ;;  %v3047_v50 = vshll.u32 %v6225_v26, 16  ;;  %v1426_v59 = vrot.slane %v5367_v61, 1 }
 0x137   : > { %3854 = vperm.xlu1 %5298, %v3708_v0   ;;  %v1418_v44 = vrot.slane %v5363_v55, 1  ;;  %v3713_v0 = vld [vmem:[#allocation7 + $0x100] sm:$0xff] }
 0x138   : > { %4845 = vmatmul.mubr.msk.bf16.gmra.mrb[4].mxu0 %vm515_vm2, %v2970_v4  ;;  %v1415_v16 = vsel %vm973_vm5, %v1413_v48, %v1414_v39  ;;  %v3014_v4 = vor.u32 %v3013_v18, %v3010_v30  ;;  %v3044_v48 = vshrl.u32 %v6225_v26, 16  ;;  %v5364_v30 = vld [vmem:[%s5749_s23 + $0x28] sm:$0xff]   ;;  %v3049_v56 = vrot.slane %v3047_v50, 3 }
 0x139   : > { %4848 = vmatprep.mubr.msk.bf16.mxu0 %vm515_vm2, %v2979_v2  ;;  %v3711_v2 = vld [vmem:[#allocation7 + $0xf0] sm:$0xff]  ;;  %v1419_v43 = vsel %vm973_vm5, %v1416_v17, %v1418_v44  ;;  %v1420_v18 = vrot.slane %v5364_v30, 1  ;;  %v3080_v50 = vshrl.u32 %v6260_v28, 16 }
 0x13a   : > { %3849 = vperm.xlu0 %5297, %v3707_v58   ;;  %v1417_v58 = vsel %vm973_vm5, %v1414_v39, %v1416_v17  ;;  %v3716_v39 = vld [vmem:[#allocation7 + $0x118] sm:$0xff]  ;;  %v3046_v34 = vrot.slane %v3044_v48, 2  ;;  %v3062_v17 = vshrl.u32 %v6243_v52, 16 }
 0x13b   : > { %3864 = vperm.xlu1 %5298, %v3710_v15   ;;  %v1421_v1 = vsel %vm973_vm5, %v1418_v44, %v1420_v18 }
 0x13c   : > { %v3050_v51 = vor.u32 %v3049_v56, %v3046_v34  ;;  %v3082_v34 = vrot.slane %v3080_v50, 2 }
 0x13d   : > { %4679 = vmatmul.mubr.msk.bf16.gmra.mrb[28].mxu1 %vm515_vm2, %v1006_v19  ;;  %v3006_v19 = vsel %vm2926_vm6, %v2996_v37, %v3005_v62  ;;  %v3023_v37 = vor.u32 %v3022_v35, %v3019_v40  ;;  %v5366_v40 = vld [vmem:[%s5749_s23 + $0x38] sm:$0xff]  }
 0x13e   : > { %4682 = vmatprep.mubr.msk.bf16.mxu1 %vm515_vm2, %v1008_v14  ;;  %3859 = vperm.xlu0 %5297, %v3709_v57   ;;  %v3015_v14 = vsel %vm2926_vm6, %v3005_v62, %v3014_v4  ;;  %v3037_v57 = vrot.slane %v3035_v45, 2  ;;  %v5365_v62 = vld [vmem:[%s5749_s23 + $0x30] sm:$0xff]   ;;  %v1424_v35 = vrot.slane %v5366_v40, 1 }
 0x13f   : > { %3874 = vperm.xlu1 %5298, %v3712_v12   ;;  %v3024_v15 = vsel %vm2926_vm6, %v3014_v4, %v3023_v37  ;;  %v3033_v27 = vsel %vm2926_vm6, %v3023_v37, %v3032_v29  ;;  %v3053_v12 = vshrl.u32 %v6238_v7, 16 }
 0x140   : > { %4849 = vmatmul.mubr.msk.bf16.gmra.mrb[8].mxu0 %vm515_vm2, %v2988_v46  ;;  %v3038_v46 = vshll.u32 %v6218_v22, 16  ;;  %v1427_v45 = vsel %vm973_vm5, %v1424_v35, %v1426_v59 }
 0x141   : > { %4852 = vmatprep.mubr.msk.bf16.mxu0 %vm515_vm2, %v2997_v49  ;;  %v3715_v49 = vld [vmem:[#allocation7 + $0x110] sm:$0xff]  ;;  %v3055_v44 = vrot.slane %v3053_v12, 2 }
 0x142   : > { %3869 = vperm.xlu0 %5297, %v3711_v2   ;;  %v3056_v2 = vshll.u32 %v6238_v7, 16 }
 0x143   : > { %3884 = vperm.xlu1 %5298, %v3714_v42  }
 0x145   : > { %4683 = vmatmul.mubr.msk.bf16.gmra.mrb[32].mxu1 %vm515_vm2, %v1010_v24  ;;  %v3040_v24 = vrot.slane %v3038_v46, 3  ;;  %v3071_v46 = vshrl.u32 %v6256_v54, 16 }
 0x146   : > { %4688 = vmatprep.mubr.msk.bf16.mxu1 %vm515_vm2, %v1415_v16  ;;  %3879 = vperm.xlu0 %5297, %v3713_v0   ;;  %v1422_v16 = vrot.slane %v5365_v62, 1  ;;  %v3064_v0 = vrot.slane %v3062_v17, 2  ;;  %v3367_v17 = vld [vmem:[%s5749_s23 + $0x10] sm:$0x8] }
 0x147   : > { %3894 = vperm.xlu1 %5298, %v3716_v39   ;;  %v3083_v39 = vshll.u32 %v6260_v28, 16 }
 0x148   : > { %4853 = vmatmul.mubr.msk.bf16.gmra.mrb[12].mxu0 %vm515_vm2, %v3006_v19  ;;  %v1423_v4 = vsel %vm973_vm5, %v1420_v18, %v1422_v16  ;;  %v3065_v19 = vshll.u32 %v6243_v52, 16  ;;  %v1425_v37 = vsel %vm973_vm5, %v1422_v16, %v1424_v35  ;;  %v6396_v16 = vld [vmem:[%s5749_s23 + $0xa0] ss:$0 sps:$4 sm:$0x77]  }
 0x149   : > { %4856 = vmatprep.mubr.msk.bf16.mxu0 %vm515_vm2, %v3015_v14  ;;  %v3058_v14 = vrot.slane %v3056_v2, 3  ;;  %v3085_v56 = vrot.slane %v3083_v39, 3  ;;  %v3089_v12 = vshrl.u32 %v6396_v16, 16  ;;  %v3092_v2 = vshll.u32 %v6396_v16, 16 }
 0x14a   : > { %3889 = vperm.xlu0 %5297, %v3715_v49   ;;  %v5368_v49 = vld [vmem:[%s5749_s23 + $0x48] sm:$0xff]   ;;  %v3379_v39 = vrot.slane %v6128_v21, 3  ;;  %v3381_v21 = vrot.slane %v6140_v53, 3 }
 0x14b   : > { %v1428_v30 = vrot.slane %v5368_v49, 1  ;;  %v1440_v49 = vrot.slane %v6068_v11, 1 }
 0x14d   : > { %4689 = vmatmul.mubr.msk.bf16.vlgmr.msra.gmra.mrb[0].mxu1 %vm515_vm2, %v1417_v58  ;;  %v3067_v58 = vrot.slane %v3065_v19, 3  ;;  %v5370_v19 = vld [vmem:[%s5749_s23 + $0x58] sm:$0xff]  }
 0x14e   : > { %4692 = vmatprep.mubr.msk.bf16.mxu1 %vm515_vm2, %v1419_v43  ;;  %4915 = vmatpush3.bf16.msra.mxu1 %v5767_v3  ;;  %v3041_v3 = vor.u32 %v3040_v24, %v3037_v57  ;;  %v3059_v43 = vor.u32 %v3058_v14, %v3055_v44  ;;  %v5369_v24 = vld [vmem:[%s5749_s23 + $0x50] sm:$0xff]   ;;  %v1432_v40 = vrot.slane %v5370_v19, 1  ;;  %v3094_v44 = vrot.slane %v3092_v2, 3 }
 0x14f   : > { %v3068_v48 = vor.u32 %v3067_v58, %v3064_v0  ;;  %v1430_v62 = vrot.slane %v5369_v24, 1  ;;  %v1434_v14 = vrot.slane %v6034_v25, 1  ;;  %v3383_v24 = vrot.slane %v6146_v6, 3 }
 0x150   : > { %4857 = vmatmul.mubr.msk.bf16.gmra.mrb[16].mxu0 %vm515_vm2, %v3024_v15  ;;  %v3042_v55 = vsel %vm2926_vm6, %v3032_v29, %v3041_v3  ;;  %v3051_v42 = vsel %vm2926_vm6, %v3041_v3, %v3050_v51  ;;  %v3074_v29 = vshll.u32 %v6256_v54, 16  ;;  %v3060_v18 = vsel %vm2926_vm6, %v3050_v51, %v3059_v43 }
 0x151   : > { %4860 = vmatprep.mubr.msk.bf16.mxu0 %vm515_vm2, %v3033_v27  ;;  %v3073_v15 = vrot.slane %v3071_v46, 2  ;;  %v3069_v27 = vsel %vm2926_vm6, %v3059_v43, %v3068_v48  ;;  %v3086_v51 = vor.u32 %v3085_v56, %v3082_v34  ;;  %v1435_v58 = vsel %vm973_vm5, %v1432_v40, %v1434_v14 }
 0x152   : > { %v3076_v57 = vrot.slane %v3074_v29, 3  ;;  %v3375_v43 = vrot.slane %v6111_v41, 3  ;;  %v1438_v46 = vrot.slane %v6056_v31, 1  ;;  %v3377_v41 = vrot.slane %v6124_v47, 3 }
 0x153   : > { %v1446_v34 = vrot.slane %v6088_v9, 1  ;;  %v1826_v56 = vshrl.u32 %v6034_v25, 16  ;;  %v3384_v53 = vsel %vm3373_vm7, %v3381_v21, %v3383_v24  ;;  %v1835_v19 = vshrl.u32 %v6050_v60, 16 }
 0x154   : > { %v3077_v3 = vor.u32 %v3076_v57, %v3073_v15  ;;  %v3380_v15 = vsel %vm3373_vm7, %v3377_v41, %v3379_v39  ;;  %v1441_v47 = vsel %vm973_vm5, %v1438_v46, %v1440_v49 }
 0x155   : > { %4693 = vmatmul.mubr.msk.bf16.gmra.mrb[4].mxu1 %vm515_vm2, %v1421_v1  ;;  %v1429_v1 = vsel %vm973_vm5, %v1426_v59, %v1428_v30  ;;  %v4375_v59 = vcombine.low %v3367_v17, %v6098_v33  ;;  %v1828_v2 = vrot.slane %v1826_v56, 1  ;;  %v3387_v17 = vrot.slane %v6166_v20, 3 }
 0x156   : > { %4696 = vmatprep.mubr.msk.bf16.mxu1 %vm515_vm2, %v1423_v4  ;;  %v1431_v4 = vsel %vm973_vm5, %v1428_v30, %v1430_v62  ;;  %v3078_v35 = vsel %vm2926_vm6, %v3068_v48, %v3077_v3  ;;  %v3087_v61 = vsel %vm2926_vm6, %v3077_v3, %v3086_v51  ;;  %v3378_v30 = vsel %vm3373_vm7, %v3375_v43, %v3377_v41  ;;  %v5360_v3 = vld [vmem:[%s5749_s23 + $0x98] ss:$0 sps:$4 sm:$0x11]  }
 0x158   : > { %4861 = vmatmul.mubr.msk.bf16.gmra.mrb[20].mxu0 %vm515_vm2, %v3042_v55  ;;  %v3091_v55 = vrot.slane %v3089_v12, 2 }
 0x159   : > { %4864 = vmatprep.mubr.msk.bf16.mxu0 %vm515_vm2, %v3051_v42  ;;  %v1433_v42 = vsel %vm973_vm5, %v1430_v62, %v1432_v40  ;;  %v1444_v62 = vrot.slane %v6084_v23, 1  ;;  %v1838_v40 = vshll.u32 %v6050_v60, 16 }
 0x15a   : > { %v3095_v0 = vor.u32 %v3094_v44, %v3091_v55  ;;  %v1847_v44 = vshll.u32 %v6056_v31, 16 }
 0x15b   : > { %v1447_v12 = vsel %vm973_vm5, %v1444_v62, %v1446_v34 }
 0x15c   : > { %v3096_v33 = vsel %vm2926_vm6, %v3086_v51, %v3095_v0 }
 0x15d   : > { %4697 = vmatmul.mubr.msk.bf16.gmra.mrb[8].mxu1 %vm515_vm2, %v1425_v37  ;;  %v3374_v37 = vrot.slane %v4375_v59, 3  ;;  %v1840_v59 = vrot.slane %v1838_v40, 2 }
 0x15e   : > { %4700 = vmatprep.mubr.msk.bf16.mxu1 %vm515_vm2, %v1427_v45  ;;  %v1436_v45 = vrot.slane %v6050_v60, 1 }
 0x15f   : > { %v3376_v29 = vsel %vm3373_vm7, %v3374_v37, %v3375_v43  ;;  %v3391_v37 = vrot.slane %v6185_v5, 3  ;;  %v1853_v43 = vshrl.u32 %v6068_v11, 16 }
 0x160   : > { %4865 = vmatmul.mubr.msk.bf16.gmra.mrb[24].mxu0 %vm515_vm2, %v3060_v18  ;;  %v1437_v48 = vsel %vm973_vm5, %v1434_v14, %v1436_v45  ;;  %v1439_v50 = vsel %vm973_vm5, %v1436_v45, %v1438_v46  ;;  %v1442_v18 = vrot.slane %v6072_v13, 1  ;;  %v1856_v45 = vshll.u32 %v6068_v11, 16 }
 0x161   : > { %4868 = vmatprep.mubr.msk.bf16.mxu0 %vm515_vm2, %v3069_v27  ;;  %v3382_v27 = vsel %vm3373_vm7, %v3379_v39, %v3381_v21 }
 0x162   : > { %v1443_v57 = vsel %vm973_vm5, %v1440_v49, %v1442_v18  ;;  %v1445_v6 = vsel %vm973_vm5, %v1442_v18, %v1444_v62  ;;  %v1858_v41 = vrot.slane %v1856_v45, 2  ;;  %v1871_v18 = vshrl.u32 %v6084_v23, 16 }
 0x164   : > { %v1873_v62 = vrot.slane %v1871_v18, 1 }
 0x165   : > { %4701 = vmatmul.mubr.msk.bf16.gmra.mrb[12].mxu1 %vm515_vm2, %v1429_v1  ;;  %v1829_v1 = vshll.u32 %v6034_v25, 16  ;;  %v1448_v25 = vrot.slane %v5360_v3, 1  ;;  %v1892_v3 = vshll.u32 %v6104_v36, 16 }
 0x166   : > { %4704 = vmatprep.mubr.msk.bf16.mxu1 %vm515_vm2, %v1431_v4  ;;  %v3385_v4 = vrot.slane %v6162_v63, 3  ;;  %v1844_v63 = vshrl.u32 %v6056_v31, 16 }
 0x167   : > { %v1831_v51 = vrot.slane %v1829_v1, 2  ;;  %v1449_v20 = vsel %vm973_vm5, %v1446_v34, %v1448_v25  ;;  %v3397_v34 = vrot.slane %v6218_v22, 3 }
 0x168   : > { %4869 = vmatmul.mubr.msk.bf16.gmra.mrb[28].mxu0 %vm515_vm2, %v3078_v35  ;;  %v3386_v35 = vsel %vm3373_vm7, %v3383_v24, %v3385_v4  ;;  %v3388_v14 = vsel %vm3373_vm7, %v3385_v4, %v3387_v17  ;;  %v1846_v0 = vrot.slane %v1844_v63, 1  ;;  %v3407_v63 = vrot.slane %v6260_v28, 3 }
 0x169   : > { %4872 = vmatprep.mubr.msk.bf16.mxu0 %vm515_vm2, %v3087_v61  ;;  %v1832_v55 = vor.u32 %v1831_v51, %v1828_v2  ;;  %v1837_v61 = vrot.slane %v1835_v19, 1  ;;  %v3403_v19 = vrot.slane %v6243_v52, 3 }
 0x16b   : > { %v1833_v60 = vsel %vm1726_vm3, %v5947_v10, %v1832_v55  ;;  %v1841_v31 = vor.u32 %v1840_v59, %v1837_v61  ;;  %v1865_v10 = vshll.u32 %v6072_v13, 16 }
 0x16d   : > { %4705 = vmatmul.mubr.msk.bf16.gmra.mrb[16].mxu1 %vm515_vm2, %v1433_v42  ;;  %v3389_v42 = vrot.slane %v6180_v32, 3  ;;  %v1862_v32 = vshrl.u32 %v6072_v13, 16  ;;  %v1842_v5 = vsel %vm1726_vm3, %v1832_v55, %v1841_v31  ;;  %v1867_v49 = vrot.slane %v1865_v10, 2 }
 0x16e   : > { %4708 = vmatprep.mubr.msk.bf16.mxu1 %vm515_vm2, %v1435_v58  ;;  %v1849_v58 = vrot.slane %v1847_v44, 2 }
 0x16f   : > { %v1864_v39 = vrot.slane %v1862_v32, 1 }
 0x170   : > { %4873 = vmatmul.mubr.msk.bf16.gmra.mrb[32].mxu0 %vm515_vm2, %v3096_v33  ;;  %v3390_v33 = vsel %vm3373_vm7, %v3387_v17, %v3389_v42  ;;  %v1850_v46 = vor.u32 %v1849_v58, %v1846_v0  ;;  %v3401_v17 = vrot.slane %v6238_v7, 3  ;;  %v3405_v7 = vrot.slane %v6256_v54, 3 }
 0x171   : > { %4878 = vmatprep.mubr.msk.bf16.mxu0 %vm515_vm2, %v3376_v29  ;;  %v3392_v29 = vsel %vm3373_vm7, %v3389_v42, %v3391_v37  ;;  %v1868_v21 = vor.u32 %v1867_v49, %v1864_v39 }
 0x172   : > { %v1851_v11 = vsel %vm1726_vm3, %v1841_v31, %v1850_v46  ;;  %v3406_v52 = vsel %vm3373_vm7, %v3403_v19, %v3405_v7  ;;  %v3408_v44 = vsel %vm3373_vm7, %v3405_v7, %v3407_v63 }
 0x175   : > { %4709 = vmatmul.mubr.msk.bf16.gmra.mrb[20].mxu1 %vm515_vm2, %v1437_v48  ;;  %v1855_v48 = vrot.slane %v1853_v43, 1 }
 0x176   : > { %4712 = vmatprep.mubr.msk.bf16.mxu1 %vm515_vm2, %v1439_v50  ;;  %v3393_v50 = vrot.slane %v6198_v38, 3  ;;  %v1880_v38 = vshrl.u32 %v6088_v9, 16 }
 0x177   : > { %v1859_v13 = vor.u32 %v1858_v41, %v1855_v48 }
 0x178   : > { %4879 = vmatmul.mubr.msk.bf16.vlgmr.msra.gmra.mrb[0].mxu0 %vm515_vm2, %v3378_v30  ;;  %v3395_v30 = vrot.slane %v6203_v8, 3  ;;  %v1882_v56 = vrot.slane %v1880_v38, 1 }
 0x179   : > { %4882 = vmatprep.mubr.msk.bf16.mxu0 %vm515_vm2, %v3380_v15  ;;  %v1874_v15 = vshll.u32 %v6084_v23, 16  ;;  %v1860_v8 = vsel %vm1726_vm3, %v1850_v46, %v1859_v13  ;;  %v1869_v23 = vsel %vm1726_vm3, %v1859_v13, %v1868_v21 }
 0x17a   : > { %v3396_v24 = vsel %vm3373_vm7, %v3393_v50, %v3395_v30  ;;  %v3398_v4 = vsel %vm3373_vm7, %v3395_v30, %v3397_v34 }
 0x17d   : > { %4713 = vmatmul.mubr.msk.bf16.gmra.mrb[24].mxu1 %vm515_vm2, %v1441_v47  ;;  %v3394_v47 = vsel %vm3373_vm7, %v3391_v37, %v3393_v50  ;;  %v3730_v37 = vpop.permute.xlu1 %3729 }
 0x17e   : > { %4716 = vmatprep.mubr.msk.bf16.mxu1 %vm515_vm2, %v1443_v57  ;;  %v1883_v57 = vshll.u32 %v6088_v9, 16 }
 0x180   : > { %4883 = vmatmul.mubr.msk.bf16.gmra.mrb[4].mxu0 %vm515_vm2, %v3382_v27  ;;  %v1876_v27 = vrot.slane %v1874_v15, 2  ;;  %v1885_v1 = vrot.slane %v1883_v57, 2 }
 0x181   : > { %4886 = vmatprep.mubr.msk.bf16.mxu0 %vm515_vm2, %v3384_v53  ;;  %v3399_v53 = vrot.slane %v6225_v26, 3  ;;  %v1894_v26 = vrot.slane %v1892_v3, 2 }
 0x182   : > { %v1877_v9 = vor.u32 %v1876_v27, %v1873_v62 }
 0x183   : > { %v3400_v22 = vsel %vm3373_vm7, %v3397_v34, %v3399_v53  ;;  %v3402_v40 = vsel %vm3373_vm7, %v3399_v53, %v3401_v17 }
 0x184   : > { %v1878_v2 = vsel %vm1726_vm3, %v1868_v21, %v1877_v9 }
 0x185   : > { %4717 = vmatmul.mubr.msk.bf16.gmra.mrb[28].mxu1 %vm515_vm2, %v1445_v6  ;;  %v1889_v6 = vshrl.u32 %v6104_v36, 16 }
 0x186   : > { %4720 = vmatprep.mubr.msk.bf16.mxu1 %vm515_vm2, %v1447_v12  ;;  %v1886_v12 = vor.u32 %v1885_v1, %v1882_v56 }
 0x187   : > { %v1891_v51 = vrot.slane %v1889_v6, 1 }
 0x188   : > { %4887 = vmatmul.mubr.msk.bf16.gmra.mrb[8].mxu0 %vm515_vm2, %v3386_v35  ;;  %v1887_v25 = vsel %vm1726_vm3, %v1877_v9, %v1886_v12  ;;  %v3404_v35 = vsel %vm3373_vm7, %v3401_v17, %v3403_v19 }
 0x189   : > { %4890 = vmatprep.mubr.msk.bf16.mxu0 %vm515_vm2, %v3388_v14  ;;  %v1895_v36 = vor.u32 %v1894_v26, %v1891_v51  ;;  %v3409_v14 = vrot.slane %v6396_v16, 3 }
 0x18b   : > { %v1896_v55 = vsel %vm1726_vm3, %v1886_v12, %v1895_v36 }
 0x18d   : > { %4721 = vmatmul.mubr.msk.bf16.gmra.mrb[32].mxu1 %vm515_vm2, %v1449_v20  ;;  %v3410_v20 = vsel %vm3373_vm7, %v3407_v63, %v3409_v14 }
 0x18e   : > { %4746 = vmatprep.mubr.msk.bf16.mxu1 %vm515_vm2, %v1833_v60  ;;  %v3720_v60 = vpop.permute.xlu0 %3719 }
 0x190   : > { %4891 = vmatmul.mubr.msk.bf16.gmra.mrb[12].mxu0 %vm515_vm2, %v3390_v33  ;;  %v3735_v33 = vpop.permute.xlu1 %3734 }
 0x191   : > { %4894 = vmatprep.mubr.msk.bf16.mxu0 %vm515_vm2, %v3392_v29 }
 0x192   : > { %v3725_v43 = vpop.permute.xlu0 %3724 }
 0x194   : > { %v3745_v29 = vpop.permute.xlu1 %3744 }
 0x195   : > { %4747 = vmatmul.mubr.msk.bf16.vlgmr.msra.gmra.mrb[20].mxu1 %vm515_vm2, %v1842_v5 }
 0x196   : > { %4750 = vmatprep.mubr.msk.bf16.mxu1 %vm515_vm2, %v1851_v11  ;;  %v3740_v10 = vpop.permute.xlu0 %3739 }
 0x198   : > { %4895 = vmatmul.mubr.msk.bf16.gmra.mrb[16].mxu0 %vm515_vm2, %v3394_v47  ;;  %v3755_v39 = vpop.permute.xlu1 %3754 }
 0x199   : > { %4898 = vmatprep.mubr.msk.bf16.mxu0 %vm515_vm2, %v3396_v24 }
 0x19a   : > { %v3750_v50 = vpop.permute.xlu0 %3749 }
 0x19c   : > { %v3765_v15 = vpop.permute.xlu1 %3764 }
 0x19d   : > { %4751 = vmatmul.mubr.msk.bf16.gmra.mrb[24].mxu1 %vm515_vm2, %v1860_v8 }
 0x19e   : > { %4754 = vmatprep.mubr.msk.bf16.mxu1 %vm515_vm2, %v1869_v23  ;;  %v3760_v30 = vpop.permute.xlu0 %3759 }
 0x1a0   : > { %4899 = vmatmul.mubr.msk.bf16.gmra.mrb[20].mxu0 %vm515_vm2, %v3398_v4  ;;  %v3775_v38 = vpop.permute.xlu1 %3774 }
 0x1a1   : > { %4902 = vmatprep.mubr.msk.bf16.mxu0 %vm515_vm2, %v3400_v22 }
 0x1a2   : > { %v3770_v21 = vpop.permute.xlu0 %3769 }
 0x1a4   : > { %v3785_v27 = vpop.permute.xlu1 %3784 }
 0x1a5   : > { %4755 = vmatmul.mubr.msk.bf16.gmra.mrb[28].mxu1 %vm515_vm2, %v1878_v2 }
 0x1a6   : > { %4758 = vmatprep.mubr.msk.bf16.mxu1 %vm515_vm2, %v1887_v25  ;;  %v3780_v57 = vpop.permute.xlu0 %3779 }
 0x1a8   : > { %4903 = vmatmul.mubr.msk.bf16.gmra.mrb[24].mxu0 %vm515_vm2, %v3402_v40  ;;  %v3795_v22 = vpop.permute.xlu1 %3794 }
 0x1a9   : > { %4906 = vmatprep.mubr.msk.bf16.mxu0 %vm515_vm2, %v3404_v35 }
 0x1aa   : > { %v3790_v4 = vpop.permute.xlu0 %3789 }
 0x1ad   : > { %4759 = vmatmul.mubr.msk.bf16.gmra.mrb[32].mxu1 %vm515_vm2, %v1896_v55 }
 0x1ae   : > { %v3800_v35 = vpop.permute.xlu0 %3799 }
 0x1b0   : > { %4907 = vmatmul.mubr.msk.bf16.gmra.mrb[28].mxu0 %vm515_vm2, %v3406_v52  ;;  %v3805_v52 = vpop.permute.xlu1 %3804 }
 0x1b1   : > { %4910 = vmatprep.mubr.msk.bf16.mxu0 %vm515_vm2, %v3408_v44 }
 0x1b8   : > { %4911 = vmatmul.mubr.msk.bf16.gmra.mrb[32].mxu0 %vm515_vm2, %v3410_v20 }
 0x220   : > { %v4690_v61 = vpop.f32.mrb[0].mxu1 }
 0x221   : > { %v1541_v54 = vpop.f32.mrb[1].mxu1 }
 0x222   : > { %v4691_v59 = vpop.f32.mrb[2].mxu1 }
 0x223   : > { %v1544_v28 = vpop.f32.mrb[3].mxu1 }
 0x228   : > { %v4694_v42 = vpop.f32.mrb[4].mxu1 }
 0x229   : > { %v1557_v0 = vpop.f32.mrb[5].mxu1 }
 0x22a   : > { %v4695_v58 = vpop.f32.mrb[6].mxu1 }
 0x22b   : > { %v1560_v31 = vpop.f32.mrb[7].mxu1 }
 0x230   : > { %v4698_v45 = vpop.f32.mrb[8].mxu1 }
 0x231   : > { %v1573_v46 = vpop.f32.mrb[9].mxu1 }
 0x232   : > { %v4699_v32 = vpop.f32.mrb[10].mxu1 }
 0x233   : > { %v1576_v16 = vpop.f32.mrb[11].mxu1 }
 0x238   : > { %v4702_v5 = vpop.f32.mrb[12].mxu1 }
 0x239   : > { %v1589_v48 = vpop.f32.mrb[13].mxu1 }
 0x23a   : > { %v6529_v41 = vpop.f32.mrb[14].mxu1 }
 0x23b   : > { %v6531_v11 = vpop.f32.mrb[15].mxu1 }
 0x240   : > { %v6533_v49 = vpop.f32.mrb[16].mxu1 }
 0x241   : > { %v6535_v13 = vpop.f32.mrb[17].mxu1 }
 0x242   : > { %v6537_v18 = vpop.f32.mrb[18].mxu1 }
 0x243   : > { %v6539_v47 = vpop.f32.mrb[19].mxu1 }
 0x24b   : > { %v4880_v24 = vpop.f32.mrb[0].mxu0 }
 0x24c   : > { %v4916_v8 = vadd.f32 %v4880_v24, %v4690_v61  ;;  %v3502_v62 = vpop.f32.mrb[1].mxu0 }
 0x24d   : > { %v4917_v34 = vadd.f32 %v3502_v62, %v1541_v54  ;;  %v4881_v23 = vpop.f32.mrb[2].mxu0  ;;  %v3810_v54 = vpop.permute.xlu0 %3809 }
 0x24e   : > { %v6541_v56 = vmul.f32 %v4916_v8, %v3730_v37  ;;  %v4918_v1 = vadd.f32 %v4881_v23, %v4691_v59  ;;  %v3505_v53 = vpop.f32.mrb[3].mxu0 }
 0x24f   : > { %v6543_v9 = vmul.f32 %v4917_v34, %v3720_v60  ;;  %v4919_v6 = vadd.f32 %v3505_v53, %v1544_v28 }
 0x250   : > { %v6545_v3 = vmul.f32 %v4918_v1, %v3735_v33 }
 0x251   : > { %v6547_v12 = vmul.f32 %v4919_v6, %v3725_v43 }
 0x253   : > { %v4884_v2 = vpop.f32.mrb[4].mxu0 }
 0x254   : > { %v4920_v51 = vadd.f32 %v4884_v2, %v4694_v42  ;;  %v3518_v26 = vpop.f32.mrb[5].mxu0 }
 0x255   : > { %v4921_v17 = vadd.f32 %v3518_v26, %v1557_v0  ;;  %v4885_v25 = vpop.f32.mrb[6].mxu0 }
 0x256   : > { %v6549_v19 = vmul.f32 %v4920_v51, %v3750_v50  ;;  %v4922_v36 = vadd.f32 %v4885_v25, %v4695_v58  ;;  %v3521_v40 = vpop.f32.mrb[7].mxu0  ;;  %v3815_v58 = vpop.permute.xlu1 %3814 }
 0x257   : > { %v6551_v55 = vmul.f32 %v4921_v17, %v3740_v10  ;;  %v4923_v7 = vadd.f32 %v3521_v40, %v1560_v31  ;;  %v3820_v10 = vpop.permute.xlu0 %3819 }
 0x258   : > { %v6553_v63 = vmul.f32 %v4922_v36, %v3755_v39 }
 0x259   : > { %v6555_v44 = vmul.f32 %v4923_v7, %v3745_v29 }
 0x25a   : > { %v3825_v39 = vpop.permute.xlu1 %3824 }
 0x25b   : > { %v4888_v14 = vpop.f32.mrb[8].mxu0  ;;  %v3830_v23 = vpop.permute.xlu0 %3829 }
 0x25c   : > { %v4924_v20 = vadd.f32 %v4888_v14, %v4698_v45  ;;  %v3534_v61 = vpop.f32.mrb[9].mxu0 }
 0x25d   : > { %v4925_v59 = vadd.f32 %v3534_v61, %v1573_v46  ;;  %v4889_v28 = vpop.f32.mrb[10].mxu0 }
 0x25e   : > { %v6557_v42 = vmul.f32 %v4924_v20, %v3770_v21  ;;  %v4926_v60 = vadd.f32 %v4889_v28, %v4699_v32  ;;  %v3537_v0 = vpop.f32.mrb[11].mxu0 }
 0x25f   : > { %v6559_v37 = vmul.f32 %v4925_v59, %v3760_v30  ;;  %v4927_v43 = vadd.f32 %v3537_v0, %v1576_v16  ;;  %v3840_v26 = vpop.permute.xlu0 %3839 }
 0x260   : > { %v6561_v31 = vmul.f32 %v4926_v60, %v3775_v38 }
 0x261   : > { %v6563_v33 = vmul.f32 %v4927_v43, %v3765_v15 }
 0x263   : > { %v4892_v29 = vpop.f32.mrb[12].mxu0 }
 0x264   : > { %v4928_v50 = vadd.f32 %v4892_v29, %v4702_v5  ;;  %v3550_v45 = vpop.f32.mrb[13].mxu0 }
 0x265   : > { %v4929_v24 = vadd.f32 %v3550_v45, %v1589_v48  ;;  %v4893_v46 = vpop.f32.mrb[14].mxu0  ;;  %v3835_v48 = vpop.permute.xlu1 %3834 }
 0x266   : > { %v6565_v8 = vmul.f32 %v4928_v50, %v3790_v4  ;;  %v4930_v32 = vadd.f32 %v4893_v46, %v6529_v41  ;;  %v3553_v21 = vpop.f32.mrb[15].mxu0 }
 0x267   : > { %v6568_v30 = vmul.f32 %v4929_v24, %v3780_v57  ;;  %v4931_v16 = vadd.f32 %v3553_v21, %v6531_v11 }
 0x268   : > { %v4748_v62 = vpop.f32.mrb[20].mxu1  ;;  %v6571_v15 = vmul.f32 %v4930_v32, %v3795_v22 }
 0x269   : > { %v2068_v38 = vpop.f32.mrb[21].mxu1  ;;  %v6573_v5 = vmul.f32 %v4931_v16, %v3785_v27 }
 0x26a   : > { %v4749_v34 = vpop.f32.mrb[22].mxu1 }
 0x26b   : > { %v2071_v1 = vpop.f32.mrb[23].mxu1  ;;  %v4896_v53 = vpop.f32.mrb[16].mxu0 }
 0x26c   : > { %v4932_v6 = vadd.f32 %v4896_v53, %v6533_v49  ;;  %v3566_v4 = vpop.f32.mrb[17].mxu0  ;;  %v3845_v49 = vpop.permute.xlu1 %3844 }
 0x26d   : > { %v4933_v41 = vadd.f32 %v3566_v4, %v6535_v13  ;;  %v4897_v2 = vpop.f32.mrb[18].mxu0 }
 0x26e   : > { %v6577_v57 = vmul.f32 %v4932_v6, %v3810_v54  ;;  %v4934_v11 = vadd.f32 %v4897_v2, %v6537_v18  ;;  %v3569_v51 = vpop.f32.mrb[19].mxu0  ;;  %v3850_v54 = vpop.permute.xlu0 %3849 }
 0x26f   : > { %v6580_v17 = vmul.f32 %v4933_v41, %v3800_v35  ;;  %v4935_v27 = vadd.f32 %v3569_v51, %v6539_v47 }
 0x270   : > { %v4752_v22 = vpop.f32.mrb[24].mxu1  ;;  %v6583_v36 = vmul.f32 %v4934_v11, %v3815_v58  ;;  %v3855_v47 = vpop.permute.xlu1 %3854 }
 0x271   : > { %v2084_v25 = vpop.f32.mrb[25].mxu1  ;;  %v6585_v7 = vmul.f32 %v4935_v27, %v3805_v52 }
 0x272   : > { %v4753_v40 = vpop.f32.mrb[26].mxu1  ;;  %v3860_v46 = vpop.permute.xlu0 %3859 }
 0x273   : > { %v2087_v13 = vpop.f32.mrb[27].mxu1  ;;  %v4900_v14 = vpop.f32.mrb[20].mxu0 }
 0x274   : > { %v4936_v20 = vadd.f32 %v4900_v14, %v4748_v62  ;;  %v3582_v61 = vpop.f32.mrb[21].mxu0  ;;  %v3865_v16 = vpop.permute.xlu1 %3864 }
 0x275   : > { %v4937_v18 = vadd.f32 %v3582_v61, %v2068_v38  ;;  %v4901_v59 = vpop.f32.mrb[22].mxu0 }
 0x276   : > { %v6587_v28 = vmul.f32 %v4936_v20, %v3830_v23  ;;  %v4938_v35 = vadd.f32 %v4901_v59, %v4749_v34  ;;  %v3585_v60 = vpop.f32.mrb[23].mxu0  ;;  %v3870_v2 = vpop.permute.xlu0 %3869 }
 0x277   : > { %v6589_v43 = vmul.f32 %v4937_v18, %v3820_v10  ;;  %v4939_v58 = vadd.f32 %v3585_v60, %v2071_v1 }
 0x278   : > { %v4756_v0 = vpop.f32.mrb[28].mxu1  ;;  %v6591_v50 = vmul.f32 %v4938_v35, %v3835_v48 }
 0x279   : > { %v2100_v29 = vpop.f32.mrb[29].mxu1  ;;  %v6593_v45 = vmul.f32 %v4939_v58, %v3825_v39 }
 0x27a   : > { %v4757_v52 = vpop.f32.mrb[30].mxu1  ;;  %v3880_v18 = vpop.permute.xlu0 %3879 }
 0x27b   : > { %v2103_v24 = vpop.f32.mrb[31].mxu1  ;;  %v4904_v32 = vpop.f32.mrb[24].mxu0 }
 0x27c   : > { %v4940_v21 = vadd.f32 %v4904_v32, %v4752_v22  ;;  %v3598_v62 = vpop.f32.mrb[25].mxu0  ;;  %v3875_v22 = vpop.permute.xlu1 %3874 }
 0x27d   : > { %v4941_v38 = vadd.f32 %v3598_v62, %v2084_v25  ;;  %v4905_v34 = vpop.f32.mrb[26].mxu0 }
 0x27e   : > { %v6595_v23 = vmul.f32 %v4940_v21, %v3850_v54  ;;  %v4942_v53 = vadd.f32 %v4905_v34, %v4753_v40  ;;  %v3601_v10 = vpop.f32.mrb[27].mxu0 }
 0x27f   : > { %v6597_v1 = vmul.f32 %v4941_v38, %v3840_v26  ;;  %v4943_v48 = vadd.f32 %v3601_v10, %v2087_v13 }
 0x280   : > { %v4760_v6 = vpop.f32.mrb[32].mxu1  ;;  %v6599_v41 = vmul.f32 %v4942_v53, %v3855_v47  ;;  %v3885_v60 = vpop.permute.xlu1 %3884 }
 0x281   : > { %v2116_v4 = vpop.f32.mrb[33].mxu1  ;;  %v6601_v11 = vmul.f32 %v4943_v48, %v3845_v49 }
 0x282   : > { %v4761_v39 = vpop.f32.mrb[34].mxu1 }
 0x283   : > { %v2119_v51 = vpop.f32.mrb[35].mxu1  ;;  %v4908_v27 = vpop.f32.mrb[28].mxu0 }
 0x284   : > { %v4944_v25 = vadd.f32 %v4908_v27, %v4756_v0  ;;  %v3614_v14 = vpop.f32.mrb[29].mxu0  ;;  %v3890_v0 = vpop.permute.xlu0 %3889 }
 0x285   : > { %v4945_v20 = vadd.f32 %v3614_v14, %v2100_v29  ;;  %v4909_v61 = vpop.f32.mrb[30].mxu0  ;;  %v3895_v34 = vpop.permute.xlu1 %3894 }
 0x286   : > { %v6603_v40 = vmul.f32 %v4944_v25, %v3870_v2  ;;  %v4946_v54 = vadd.f32 %v4909_v61, %v4757_v52  ;;  %v3617_v26 = vpop.f32.mrb[31].mxu0 }
 0x287   : > { %v6605_v13 = vmul.f32 %v4945_v20, %v3860_v46  ;;  %v4947_v59 = vadd.f32 %v3617_v26, %v2103_v24 }
 0x288   : > { %v6607_v35 = vmul.f32 %v4946_v54, %v3875_v22 }
 0x289   : > { %v6609_v49 = vmul.f32 %v4947_v59, %v3865_v16  ;;  %v5565_v16 = vmov (!%p6803_p7), 0.0  }
 0x28a   : > { %3937 = vst [vmem:[#allocation8] sm:$0x1] (!%p6803_p7), %v5565_v16  ;;  %3938 = vst [vmem:[#allocation9] sm:$0x1] (!%p6803_p7), %v5565_v16 }
 0x28b   : > { %v4912_v47 = vpop.f32.mrb[32].mxu0  ;;  %3936 = sbr.rel (%p6803_p7) target bundleno = 658 (0x292), region = 48 }
 0x28c   : > { %v4948_v58 = vadd.f32 %v4912_v47, %v4760_v6  ;;  %v3630_v32 = vpop.f32.mrb[33].mxu0 }
 0x28d   : > { %v4949_v21 = vadd.f32 %v3630_v32, %v2116_v4  ;;  %v4913_v29 = vpop.f32.mrb[34].mxu0 }
 0x28e   : > { %v6611_v62 = vmul.f32 %v4948_v58, %v3890_v0  ;;  %v4950_v38 = vadd.f32 %v4913_v29, %v4761_v39  ;;  %v3633_v52 = vpop.f32.mrb[35].mxu0 }
 0x28f   : > { %v6613_v53 = vmul.f32 %v4949_v21, %v3880_v18  ;;  %v4951_v46 = vadd.f32 %v3633_v52, %v2119_v51 }
 0x290   : > { %v6615_v24 = vmul.f32 %v4950_v38, %v3895_v34 }
 0x291   : > { %v6617_v10 = vmul.f32 %v4951_v46, %v3885_v60 }
 0x292 PF: > { %v3940_v6 = vadd.f32 %v6547_v12, %v6543_v9  ;;  %v3984_v2 = vmul.f32 %v6543_v9, %v6543_v9  ;;  %v3985_v51 = vmul.f32 %v6547_v12, %v6547_v12  ;;  %v3986_v27 = vmul.f32 %v6541_v56, %v6541_v56  ;;  %s5566_s20 = smov [#allocation8]   ;;  %p5251_p10 = scmp.eq.s32.totalorder %s5612_s19, 1 }
 0x293   : > { %v3987_v14 = vmul.f32 %v6545_v3, %v6545_v3  ;;  %v3988_v54 = vmul.f32 %v6551_v55, %v6551_v55  ;;  %v3989_v12 = vmul.f32 %v6555_v44, %v6555_v44  ;;  %v3990_v59 = vmul.f32 %v6549_v19, %v6549_v19  ;;  %s4070_s21 = sshll.u32 %s5566_s20, 4  ;;  %s4071_s21 = int_to_ptr.vmem [resolvable:$true] %s4070_s21 }
 0x294   : > { %v3941_v48 = vadd.f32 %v3940_v6, %v6541_v56  ;;  %v4020_v20 = vadd.f32 %v3985_v51, %v3984_v2  ;;  %v3991_v47 = vmul.f32 %v6553_v63, %v6553_v63  ;;  %v3992_v32 = vmul.f32 %v6559_v37, %v6559_v37  ;;  %s5457_s9 = scalar_lea.vmem %s4071_s21, 16  ;;  %s5463_s10 = scalar_lea.vmem %s4071_s21, 32 }
 0x295   : > { %v3993_v21 = vmul.f32 %v6563_v33, %v6563_v33  ;;  %v3994_v38 = vmul.f32 %v6557_v42, %v6557_v42  ;;  %v3995_v34 = vmul.f32 %v6561_v31, %v6561_v31  ;;  %v3996_v16 = vmul.f32 %v6568_v30, %v6568_v30  ;;  %p5458_p1 = scmp.ne.s32.totalorder %s4071_s21, %s5457_s9  ;;  %p5464_p6 = scmp.lt.s32.totalorder %s4071_s21, %s4071_s21 }
 0x296   : > { %v3942_v4 = vadd.f32 %v3941_v48, %v6545_v3  ;;  %v4021_v9 = vadd.f32 %v4020_v20, %v3986_v27  ;;  %v3997_v48 = vmul.f32 %v6573_v5, %v6573_v5  ;;  %v3999_v51 = vmul.f32 %v6571_v15, %v6571_v15  ;;  %p5465_p8 = scmp.lt.s32.totalorder %s5463_s10, %s5457_s9 }
 0x297   : > { %v4000_v27 = vmul.f32 %v6580_v17, %v6580_v17  ;;  %p5459_p4 = pnand %p5458_p1, %p5251_p10 }
 0x298   : > { %v3943_v39 = vadd.f32 %v3942_v4, %v6551_v55  ;;  %v4022_v18 = vadd.f32 %v4021_v9, %v3987_v14  ;;  %v4001_v14 = vmul.f32 %v6585_v7, %v6585_v7  ;;  %v4003_v9 = vmul.f32 %v6583_v36, %v6583_v36  ;;  %p5466_p12 = por %p5465_p8, %p5464_p6 }
 0x299   : > { %p5460_p5 = pneg %p5459_p4 }
 0x29a   : > { %v3944_v22 = vadd.f32 %v3943_v39, %v6555_v44  ;;  %v4023_v60 = vadd.f32 %v4022_v18, %v3988_v54  ;;  %v3998_v39 = vmul.f32 %v6565_v8, %v6565_v8 }
 0x29b   : > { %p5467_p0 = pnand %p5466_p12, %p5460_p5 }
 0x29c   : > { %v3945_v25 = vadd.f32 %v3944_v22, %v6549_v19  ;;  %v4024_v58 = vadd.f32 %v4023_v60, %v3989_v12  ;;  %v4004_v12 = vmul.f32 %v6589_v43, %v6589_v43  ;;  %v4006_v60 = vmul.f32 %v6587_v28, %v6587_v28 }
 0x29e   : > { %v3946_v61 = vadd.f32 %v3945_v25, %v6553_v63  ;;  %v4025_v0 = vadd.f32 %v4024_v58, %v3990_v59 }
 0x2a0   : > { %v3947_v26 = vadd.f32 %v3946_v61, %v6559_v37  ;;  %v4026_v29 = vadd.f32 %v4025_v0, %v3991_v47  ;;  %v4002_v61 = vmul.f32 %v6577_v57, %v6577_v57  ;;  %v4007_v47 = vmul.f32 %v6591_v50, %v6591_v50 }
 0x2a1   : > { %v4009_v0 = vmul.f32 %v6601_v11, %v6601_v11 }
 0x2a2   : > { %v3948_v56 = vadd.f32 %v3947_v26, %v6563_v33  ;;  %v4027_v52 = vadd.f32 %v4026_v29, %v3992_v32 }
 0x2a4   : > { %v3949_v3 = vadd.f32 %v3948_v56, %v6557_v42  ;;  %v4028_v46 = vadd.f32 %v4027_v52, %v3993_v21  ;;  %v4005_v56 = vmul.f32 %v6593_v45, %v6593_v45  ;;  %v4010_v21 = vmul.f32 %v6595_v23, %v6595_v23 }
 0x2a5   : > { %v4012_v52 = vmul.f32 %v6605_v13, %v6605_v13 }
 0x2a6   : > { %v3950_v55 = vadd.f32 %v3949_v3, %v6561_v31  ;;  %v4029_v6 = vadd.f32 %v4028_v46, %v3994_v38 }
 0x2a8   : > { %v3951_v44 = vadd.f32 %v3950_v55, %v6568_v30  ;;  %v4030_v4 = vadd.f32 %v4029_v6, %v3995_v34  ;;  %v4008_v55 = vmul.f32 %v6597_v1, %v6597_v1  ;;  %v4013_v34 = vmul.f32 %v6609_v49, %v6609_v49 }
 0x2a9   : > { %v4015_v6 = vmul.f32 %v6607_v35, %v6607_v35 }
 0x2aa   : > { %v3952_v19 = vadd.f32 %v3951_v44, %v6573_v5  ;;  %v4031_v2 = vadd.f32 %v4030_v4, %v3996_v16 }
 0x2ac   : > { %v3953_v63 = vadd.f32 %v3952_v19, %v6565_v8  ;;  %v4032_v22 = vadd.f32 %v4031_v2, %v3997_v48  ;;  %v4011_v19 = vmul.f32 %v6599_v41, %v6599_v41  ;;  %v4016_v48 = vmul.f32 %v6613_v53, %v6613_v53 }
 0x2ad   : > { %v4018_v2 = vmul.f32 %v6611_v62, %v6611_v62 }
 0x2ae   : > { %v3954_v37 = vadd.f32 %v3953_v63, %v6571_v15  ;;  %v4033_v25 = vadd.f32 %v4032_v22, %v3998_v39 }
 0x2b0   : > { %v3955_v33 = vadd.f32 %v3954_v37, %v6580_v17  ;;  %v4034_v20 = vadd.f32 %v4033_v25, %v3999_v51  ;;  %v4014_v37 = vmul.f32 %v6603_v40, %v6603_v40 }
 0x2b2   : > { %v3956_v42 = vadd.f32 %v3955_v33, %v6585_v7  ;;  %v4035_v54 = vadd.f32 %v4034_v20, %v4000_v27 }
 0x2b4   : > { %v3957_v31 = vadd.f32 %v3956_v42, %v6577_v57  ;;  %v4036_v26 = vadd.f32 %v4035_v54, %v4001_v14  ;;  %v4017_v42 = vmul.f32 %v6617_v10, %v6617_v10 }
 0x2b6   : > { %v3958_v30 = vadd.f32 %v3957_v31, %v6583_v36  ;;  %v4037_v18 = vadd.f32 %v4036_v26, %v4002_v61 }
 0x2b8   : > { %v3959_v5 = vadd.f32 %v3958_v30, %v6589_v43  ;;  %v4038_v59 = vadd.f32 %v4037_v18, %v4003_v9 }
 0x2ba   : > { %v3960_v8 = vadd.f32 %v3959_v5, %v6593_v45  ;;  %v4039_v3 = vadd.f32 %v4038_v59, %v4004_v12  ;;  %v3939_v5 = vld [vmem:[#allocation8] sm:$0x1] }
 0x2bc   : > { %v3961_v15 = vadd.f32 %v3960_v8, %v6587_v28  ;;  %v4040_v58 = vadd.f32 %v4039_v3, %v4005_v56 }
 0x2be   : > { %v3962_v17 = vadd.f32 %v3961_v15, %v6591_v50  ;;  %v4041_v32 = vadd.f32 %v4040_v58, %v4006_v60 }
 0x2c0   : > { %v3963_v7 = vadd.f32 %v3962_v17, %v6597_v1  ;;  %v4042_v44 = vadd.f32 %v4041_v32, %v4007_v47 }
 0x2c2   : > { %v3964_v57 = vadd.f32 %v3963_v7, %v6601_v11  ;;  %v4043_v29 = vadd.f32 %v4042_v44, %v4008_v55 }
 0x2c4   : > { %v3965_v36 = vadd.f32 %v3964_v57, %v6595_v23  ;;  %v4044_v38 = vadd.f32 %v4043_v29, %v4009_v0 }
 0x2c6   : > { %v3966_v43 = vadd.f32 %v3965_v36, %v6599_v41  ;;  %v4045_v63 = vadd.f32 %v4044_v38, %v4010_v21 }
 0x2c8   : > { %v3967_v45 = vadd.f32 %v3966_v43, %v6605_v13  ;;  %v4046_v46 = vadd.f32 %v4045_v63, %v4011_v19 }
 0x2ca   : > { %v3968_v28 = vadd.f32 %v3967_v45, %v6609_v49  ;;  %v4047_v16 = vadd.f32 %v4046_v46, %v4012_v52 }
 0x2cc   : > { %v3969_v50 = vadd.f32 %v3968_v28, %v6603_v40  ;;  %v4048_v33 = vadd.f32 %v4047_v16, %v4013_v34 }
 0x2ce   : > { %v3970_v1 = vadd.f32 %v3969_v50, %v6607_v35  ;;  %v4049_v4 = vadd.f32 %v4048_v33, %v4014_v37  ;;  %v4019_v35 = vmul.f32 %v6615_v24, %v6615_v24 }
 0x2d0   : > { %v3971_v11 = vadd.f32 %v3970_v1, %v6613_v53  ;;  %v4050_v39 = vadd.f32 %v4049_v4, %v4015_v6 }
 0x2d2   : > { %v3972_v23 = vadd.f32 %v3971_v11, %v6617_v10  ;;  %v4051_v31 = vadd.f32 %v4050_v39, %v4016_v48 }
 0x2d4   : > { %v3973_v41 = vadd.f32 %v3972_v23, %v6611_v62  ;;  %v4052_v22 = vadd.f32 %v4051_v31, %v4017_v42 }
 0x2d6   : > { %v3974_v13 = vadd.f32 %v3973_v41, %v6615_v24  ;;  %v4053_v27 = vadd.f32 %v4052_v22, %v4018_v2 }
 0x2d8   : > { %v3975_v49 = vrot.slane %v3974_v13, 4  ;;  %v4054_v25 = vadd.f32 %v4053_v27, %v4019_v35 }
 0x2da   : > { %v3976_v40 = vadd.f32 %v3975_v49, %v3974_v13  ;;  %v4055_v14 = vrot.slane %v4054_v25, 4 }
 0x2dc   : > { %v3977_v51 = vrot.slane %v3976_v40, 2  ;;  %v4056_v8 = vadd.f32 %v4055_v14, %v4054_v25 }
 0x2de   : > { %v3978_v30 = vadd.f32 %v3977_v51, %v3976_v40  ;;  %v4057_v62 = vrot.slane %v4056_v8, 2 }
 0x2e0   : > { %v3979_v53 = vrot.slane %v3978_v30, 1 }
 0x2e2   : > { %v3980_v10 = vadd.f32 %v3979_v53, %v3978_v30 }
 0x2e4   : > { %v3981_v20 = vadd.f32 %v3980_v10, %v3939_v5 }
 0x2e6   : > { %3982 = vst [vmem:[#allocation8] sm:$0x1] %v3981_v20 }
 0x2e7   : > { %5470 = shalt.err (!%p5467_p0)
}
 0x2e8   : > { %s5471_s28 = scalar_lea.hbm %s6790_s3, 16 }
 0x2e9   : > { %p5472_p2 = scmp.ne.s32.totalorder %s6790_s3, %s5471_s28  ;;  %p5477_p3 = scmp.lt.u32.totalorder %s5471_s28, %s6790_s3 }
 0x2eb   : > { %p5473_p11 = pnand %p5472_p2, %p5251_p10 }
 0x2ed   : > { %p5474_p13 = pneg %p5473_p11 }
 0x2ef   : > { %p5479_p9 = pnand %p5477_p3, %p5474_p13 }
 0x2f1   : > { %5482 = shalt.err (!%p5479_p9)
}
 0x2f2   : > { %5228 = dma.vmem_to_hbm [thread:$0]  (%p5251_p10), %s4071_s21, 16, %s6790_s3, [#allocation4]   ;;  %v4058_v24 = vadd.f32 %v4057_v62, %v4056_v8  ;;  %v3983_v54 = vld [vmem:[#allocation9] sm:$0x1] }
 0x2f3   : > { %s5567_s11 = smov [#allocation9]  }
 0x2f4   : > { %v4059_v61 = vrot.slane %v4058_v24, 1  ;;  %s4081_s13 = sshll.u32 %s5567_s11, 4  ;;  %s4082_s13 = int_to_ptr.vmem [resolvable:$true] %s4081_s13 }
 0x2f5   : > { %s5483_s14 = scalar_lea.vmem %s4082_s13, 16  ;;  %s5489_s15 = scalar_lea.vmem %s4082_s13, 32 }
 0x2f6   : > { %v4060_v15 = vadd.f32 %v4059_v61, %v4058_v24  ;;  %p5484_p7 = scmp.ne.s32.totalorder %s4082_s13, %s5483_s14  ;;  %p5490_p5 = scmp.lt.s32.totalorder %s4082_s13, %s4082_s13 }
 0x2f7   : > { %p5491_p6 = scmp.lt.s32.totalorder %s5489_s15, %s5483_s14 }
 0x2f8   : > { %v4061_v9 = vadd.f32 %v4060_v15, %v3983_v54  ;;  %p5485_p1 = pnand %p5484_p7, %p5251_p10 }
 0x2f9   : > { %p5492_p8 = por %p5491_p6, %p5490_p5 }
 0x2fa   : > { %4062 = vst [vmem:[#allocation9] sm:$0x1] %v4061_v9  ;;  %p5486_p4 = pneg %p5485_p1 }
 0x2fc   : > { %p5493_p12 = pnand %p5492_p8, %p5486_p4 }
 0x2fe   : > { %5496 = shalt.err (!%p5493_p12)
}
 0x2ff   : > { %s5497_s27 = scalar_lea.hbm %s6791_s4, 16 }
 0x300   : > { %p5498_p0 = scmp.ne.s32.totalorder %s6791_s4, %s5497_s27  ;;  %p5503_p13 = scmp.lt.u32.totalorder %s5497_s27, %s6791_s4 }
 0x302   : > { %p5499_p2 = pnand %p5498_p0, %p5251_p10 }
 0x304   : > { %p5500_p11 = pneg %p5499_p2 }
 0x306   : > { %p5505_p3 = pnand %p5503_p13, %p5500_p11 }
 0x308   : > { %5508 = shalt.err (!%p5505_p3)
}
 0x309   : > { %5230 = dma.vmem_to_hbm [thread:$0]  (%p5251_p10), %s4082_s13, 16, %s6791_s4, [#allocation10]  }
 0x30a   : > { %5534 = dma.done.wait (%p5251_p10), [#allocation4], 16  }
 0x30b   : > { %5536 = vsyncadd (%p5251_p10), [#allocation4], 4294967280 }
 0x30c   : > { %5538 = dma.done.wait (%p5251_p10), [#allocation10], 16  }
 0x30d   : > { %5540 = vsyncadd (%p5251_p10), [#allocation10], 4294967280 }
 0x30e PF: > { %p18_p9 = scmp.ge.s32.totalorder %s5690_s7, 4   ;;  %s6804_s15 = smov %s5547_s16 }
 0x30f   : > { %s6805_s16 = smov %s5551_s17  ;;  %s6806_s17 = smov %s5699_s12 }
 0x310   : > { %s6807_s18 = smov %s5690_s7  ;;  %20 = sbr.rel (!%p18_p9) target bundleno = 6 (0x6), region = 97 }
 0x317   :  { %4098 = vsyncpa [#allocation3], 1 }
 0x318   :  { %4100 = vsyncpa [#allocation3 + $0x1], 1 }
 0x319   :  { %4101 = vsyncpa [#allocation6], 1 }
 0x31a   :  { %4102 = vsyncpa [#allocation4], 1 }
 0x31b   :  { %4104 = vsyncpa [#allocation4 + $0x1], 1 }
 0x31c   :  { %4105 = vsyncpa [#allocation10], 1 }

</bundles_post_ra>
